<compile_context>
chip_gen: v5e
topology: v5e:2x2
jax: 0.10.0
libtpu: 0.0.40
codegen_flags: <defaults>
</compile_context>

<pallas_src>
import functools

import numpy as np

import jax
import jax.numpy as jnp
from jax.experimental import pallas as pl
from jax.experimental.pallas import tpu as pltpu


# Tap order for 3x3 convs (row-major); the 8 non-center taps get boundary masks.
_CONV_TAPS = tuple((dh, dw) for dh in (-1, 0, 1) for dw in (-1, 0, 1))
_SHIFT_TAPS = tuple(t for t in _CONV_TAPS if t != (0, 0))
_SHIFT_ROW = {t: i for i, t in enumerate(_SHIFT_TAPS)}


# ----------------------------------------------------------------------------
# Fused kernel: cv1(1x1+SiLU) -> n x Bottleneck(3x3+SiLU, 3x3+SiLU)
#               -> cv2(1x1+SiLU over the chunk concat) -> PHDE
# Activations are (C, L) with L = B_BLK * H * W in the lane dimension.
# ----------------------------------------------------------------------------
def _c2f_phde_kernel(x_ref, mask_ref, segT_ref, segB_ref,
                     wcv1_ref, bcv1_ref, wm_ref, bm_ref,
                     wcv2_ref, bcv2_ref, rw_ref, w1_ref, w2_ref, sc_ref,
                     o_ref, *, W, n_bneck, c_hidden, n_times, cv2_split):
    L = x_ref.shape[-1]                                   # B_BLK * H * W
    x = x_ref[0]                                          # (C1, L) f32

    def silu(v):
        return v * jax.nn.sigmoid(v)

    def shifted(v, dh, dw):
        # out[:, p] = v[:, p + dh*W + dw] when the neighbour lies inside the same
        # image, else 0 (zero padding).  The host-built masks zero image edges, so
        # the lane rotation wrapping across image boundaries is masked correctly.
        if dh == 0 and dw == 0:
            return v
        s = dh * W + dw
        r = pltpu.roll(v, shift=(-s) % L, axis=1)         # XLU lane rotation
        row = _SHIFT_ROW[(dh, dw)]
        return r * mask_ref[row:row + 1, :]

    def conv3x3_silu(v, layer):
        # Per-tap accumulation (no (9*Cin, L) im2col slab): 9 bf16 matmuls, f32 acc.
        acc = None
        for k, (dh, dw) in enumerate(_CONV_TAPS):
            tap = shifted(v, dh, dw).astype(jnp.bfloat16)
            d = jnp.dot(wm_ref[layer, k], tap, preferred_element_type=jnp.float32)
            acc = d if acc is None else acc + d
        return silu(acc + bm_ref[layer])

    # ---- cv1: 1x1 conv (folded BN) + SiLU, then chunk(2) along channels ----
    t = jnp.dot(wcv1_ref[...], x.astype(jnp.bfloat16),
                preferred_element_type=jnp.float32) + bcv1_ref[...]
    t = silu(t)                                           # (2c, L) f32
    c = c_hidden
    chunks = [t[:c, :], t[c:, :]]

    # ---- bottlenecks (shortcut=False): two fused 3x3 convs each ----
    for i in range(n_bneck):
        h1 = conv3x3_silu(chunks[-1], 2 * i)
        chunks.append(conv3x3_silu(h1, 2 * i + 1))

    # ---- cv2: 1x1 conv over the chunk concat (folded BN) + SiLU ----
    if cv2_split:                                         # per-chunk accumulate (c >= 64)
        acc = None
        for j, ch in enumerate(chunks):
            d = jnp.dot(wcv2_ref[j], ch.astype(jnp.bfloat16),
                        preferred_element_type=jnp.float32)
            acc = d if acc is None else acc + d
        out = silu(acc + bcv2_ref[...])
    else:                                                 # single K=(2+n)*c matmul
        cat = jnp.concatenate(chunks, axis=0).astype(jnp.bfloat16)
        out = silu(jnp.dot(wcv2_ref[...], cat,
                           preferred_element_type=jnp.float32) + bcv2_ref[...])

    # ---- PHDE ----
    y = jnp.dot(rw_ref[...], out.astype(jnp.bfloat16),
                preferred_element_type=jnp.float32)       # (cr, L) f32

    def lap(v):                                           # fixed depthwise Laplacian
        nb = (shifted(v, -1, 0) + shifted(v, 1, 0) +
              shifted(v, 0, -1) + shifted(v, 0, 1))
        return nb - 4.0 * v

    y1 = lap(y)
    y2 = lap(y1)
    m1 = jnp.mean(y1, axis=0, keepdims=True)              # (1, L) channel mean of L y
    m2 = jnp.mean(y2, axis=0, keepdims=True)              # (1, L) channel mean of L^2 y

    # per-image global context (AdaptiveAvgPool2d(1)) via segment-mean matmul
    ctx = jnp.dot(y, segT_ref[...], preferred_element_type=jnp.float32)    # (cr, Bb)
    g = jnp.maximum(jnp.dot(w1_ref[...], ctx,
                            preferred_element_type=jnp.float32), 0.0)      # (cm, Bb)
    logits = jnp.dot(w2_ref[...], g, preferred_element_type=jnp.float32)   # (T, Bb)
    logits = logits - jnp.max(logits, axis=0, keepdims=True)
    e = jnp.exp(logits)
    wts = e / jnp.sum(e, axis=0, keepdims=True)           # softmax over times, per image

    # alpha/beta per image from SMEM-held Taylor-difference coefficients
    # (feats_{j+1} - feats_j = c1_j * L y + c2_j * L^2 y, channel-averaged)
    alpha = sc_ref[0] * wts[0:1, :]
    beta = sc_ref[n_times - 1] * wts[0:1, :]
    for j in range(1, n_times - 1):
        alpha = alpha + sc_ref[j] * wts[j:j + 1, :]
        beta = beta + sc_ref[(n_times - 1) + j] * wts[j:j + 1, :]

    ab = jnp.concatenate([alpha, beta], axis=0)            # (2, Bb)
    ab_full = jnp.dot(ab, segB_ref[...],
                      preferred_element_type=jnp.float32)  # broadcast per image -> (2, L)
    fw = sc_ref[2 * (n_times - 1)]                         # fuse 1x1 weight (scalar)
    a = jax.nn.sigmoid(fw * (ab_full[0:1, :] * m1 + ab_full[1:2, :] * m2))  # (1, L)
    o_ref[0] = out * (1.0 + a)


# ----------------------------------------------------------------------------
# Host-built constants
# ----------------------------------------------------------------------------
def _build_masks(H, W, b_blk):
    hh, ww = np.meshgrid(np.arange(H), np.arange(W), indexing="ij")
    hh = hh.reshape(-1)
    ww = ww.reshape(-1)
    rows = []
    for dh, dw in _SHIFT_TAPS:
        valid = ((hh + dh >= 0) & (hh + dh < H) & (ww + dw >= 0) & (ww + dw < W))
        rows.append(np.tile(valid.astype(np.float32), b_blk))
    return jnp.asarray(np.stack(rows, axis=0))              # (8, b_blk*H*W)


def _build_segments(hw, b_blk):
    seg = np.repeat(np.eye(b_blk, dtype=np.float32), hw, axis=1)  # (b_blk, b_blk*hw)
    return jnp.asarray(seg.T / hw), jnp.asarray(seg)              # mean-T, broadcast


def _const_spec(shape):
    rank = len(shape)
    return pl.BlockSpec(shape, lambda g, _r=rank: (0,) * _r)


# ----------------------------------------------------------------------------
# Wrapper
# ----------------------------------------------------------------------------
def c2f_phde_forward(x_nchw, params, *, b_blk=2):
    # x_nchw: (B, C1, H, W), same layout as the PyTorch module.
    B, C1, H, W = x_nchw.shape
    HW = H * W
    assert B % b_blk == 0, "batch must be divisible by b_blk"
    G = B // b_blk
    L = b_blk * HW

    wcv1, bcv1 = params["cv1"]
    wm, bm = params["m"]
    wcv2, bcv2 = params["cv2"]
    p = params["phde"]
    C2 = bcv2.shape[0]
    c = wm.shape[-1]
    n = wm.shape[0] // 2
    T = p["t"].shape[0]

    # cv2 path choice (review: split only pays once c >= ~64)
    cv2_split = c >= 64
    wcv2_arg = (wcv2.reshape(C2, 2 + n, c).transpose(1, 0, 2) if cv2_split else wcv2)

    # Taylor-difference coefficients of the heat steps + fuse weight -> SMEM scalars
    tvec = p["t"].astype(jnp.float32)
    c1c = tvec[:-1] - tvec[1:]
    c2c = 0.5 * (tvec[1:] ** 2 - tvec[:-1] ** 2)
    sc = jnp.concatenate([c1c, c2c, p["fuse"]]).astype(jnp.float32)   # (2*(T-1)+1,)

    masks = _build_masks(H, W, b_blk)
    segT, segB = _build_segments(HW, b_blk)

    # Layout plumbing on the host: stack b_blk images along the lane axis.
    x_stacked = (x_nchw.reshape(G, b_blk, C1, HW)
                 .transpose(0, 2, 1, 3).reshape(G, C1, L))

    weight_args = (masks, segT, segB, wcv1, bcv1, wm, bm, wcv2_arg, bcv2,
                   p["reduce"], p["w1"], p["w2"])

    kernel = functools.partial(_c2f_phde_kernel, W=W, n_bneck=n, c_hidden=c,
                               n_times=T, cv2_split=cv2_split)

    out = pl.pallas_call(
        kernel,
        out_shape=jax.ShapeDtypeStruct((G, C2, L), jnp.float32),
        grid_spec=pltpu.PrefetchScalarGridSpec(
            num_scalar_prefetch=0,
            grid=(G,),
            in_specs=[pl.BlockSpec((1, C1, L), lambda g: (g, 0, 0))]
                     + [_const_spec(a.shape) for a in weight_args]
                     + [pl.BlockSpec(memory_space=pltpu.MemorySpace.SMEM)],
            out_specs=pl.BlockSpec((1, C2, L), lambda g: (g, 0, 0)),
        ),
        compiler_params=pltpu.CompilerParams(
            dimension_semantics=("parallel",),
            vmem_limit_bytes=48 * 1024 * 1024),
    )(x_stacked, *weight_args, sc)

    return (out.reshape(G, C2, b_blk, HW)
            .transpose(0, 2, 1, 3).reshape(B, C2, H, W))


# ----------------------------------------------------------------------------
# Pure-jnp reference (same bf16-matmul / f32-accumulate precision choices)
# ----------------------------------------------------------------------------
def _silu(v):
    return v * jax.nn.sigmoid(v)


def c2f_phde_reference(x_nchw, params):
    B, C1, H, W = x_nchw.shape
    wcv1, bcv1 = params["cv1"]
    wm, bm = params["m"]
    wcv2, bcv2 = params["cv2"]
    p = params["phde"]
    c = wm.shape[-1]
    n = wm.shape[0] // 2
    tvec = p["t"].astype(jnp.float32)
    c1c = tvec[:-1] - tvec[1:]
    c2c = 0.5 * (tvec[1:] ** 2 - tvec[:-1] ** 2)

    def shift2d(v, dh, dw):                              # zero-padded neighbour gather
        pad = jnp.pad(v, ((0, 0), (1, 1), (1, 1)))
        return pad[:, 1 + dh:1 + dh + H, 1 + dw:1 + dw + W]

    def conv1x1(v, w, b=None):
        y = jnp.einsum("oc,chw->ohw", w, v.astype(jnp.bfloat16),
                       preferred_element_type=jnp.float32)
        return y if b is None else y + b.reshape(-1, 1, 1)

    def conv3x3(v, w_taps, b):
        acc = 0.0
        for k, (dh, dw) in enumerate(_CONV_TAPS):
            acc = acc + jnp.einsum("oc,chw->ohw", w_taps[k],
                                   shift2d(v, dh, dw).astype(jnp.bfloat16),
                                   preferred_element_type=jnp.float32)
        return _silu(acc + b.reshape(-1, 1, 1))

    def lap(v):
        return (shift2d(v, -1, 0) + shift2d(v, 1, 0) +
                shift2d(v, 0, -1) + shift2d(v, 0, 1) - 4.0 * v)

    outs = []
    for bi in range(B):
        xb = x_nchw[bi]
        t = _silu(conv1x1(xb, wcv1, bcv1))
        chunks = [t[:c], t[c:]]
        for i in range(n):
            h1 = conv3x3(chunks[-1], wm[2 * i], bm[2 * i])
            chunks.append(conv3x3(h1, wm[2 * i + 1], bm[2 * i + 1]))
        out = _silu(conv1x1(jnp.concatenate(chunks, axis=0), wcv2, bcv2))
        y = conv1x1(out, p["reduce"])
        y1 = lap(y)
        y2 = lap(y1)
        m1 = jnp.mean(y1, axis=0)
        m2 = jnp.mean(y2, axis=0)
        ctx = jnp.mean(y, axis=(1, 2))
        g = jnp.maximum(p["w1"] @ ctx, 0.0)
        wts = jax.nn.softmax(p["w2"] @ g)[:-1]
        alpha = jnp.sum(wts * c1c)
        beta = jnp.sum(wts * c2c)
        a = jax.nn.sigmoid(p["fuse"][0] * (alpha * m1 + beta * m2))
        outs.append(out * (1.0 + a))
    return jnp.stack(outs, axis=0)


# ----------------------------------------------------------------------------
# Deterministic synthetic parameters (BN folded, bf16 matmul weights)
# ----------------------------------------------------------------------------
def make_params(key, c1, c2, n):
    c = int(c2 * 0.5)
    keys = iter(jax.random.split(key, 64))

    def bn_fold(cout):
        gamma = jax.random.uniform(next(keys), (cout,), jnp.float32, 0.5, 1.5)
        beta = jax.random.normal(next(keys), (cout,), jnp.float32) * 0.1
        mean = jax.random.normal(next(keys), (cout,), jnp.float32) * 0.1
        var = jax.random.uniform(next(keys), (cout,), jnp.float32, 0.5, 1.5)
        scale = gamma / jnp.sqrt(var + 1e-5)
        bias = (beta - mean * scale).reshape(cout, 1)
        return scale, bias

    def conv_bn_1x1(cin, cout):
        w = jax.random.normal(next(keys), (cout, cin), jnp.float32) / jnp.sqrt(jnp.float32(cin))
        scale, bias = bn_fold(cout)
        return (w * scale[:, None]).astype(jnp.bfloat16), bias

    def conv_bn_3x3(cin, cout):
        # stored per-tap: (9, cout, cin), tap k = (dh+1)*3 + (dw+1)
        w = (jax.random.normal(next(keys), (9, cout, cin), jnp.float32)
             / jnp.sqrt(jnp.float32(9 * cin)))
        scale, bias = bn_fold(cout)
        return (w * scale[None, :, None]).astype(jnp.bfloat16), bias

    params = {"cv1": conv_bn_1x1(c1, 2 * c)}
    wm_list, bm_list = [], []
    for _ in range(n):
        for _ in range(2):                                 # Bottleneck = two 3x3 convs
            wf, bf = conv_bn_3x3(c, c)
            wm_list.append(wf)
            bm_list.append(bf)
    params["m"] = (jnp.stack(wm_list, axis=0), jnp.stack(bm_list, axis=0))
    params["cv2"] = conv_bn_1x1((2 + n) * c, c2)

    cr = max(8, c2 // 4)
    cm = max(8, cr // 2)
    params["phde"] = {
        "reduce": (jax.random.normal(next(keys), (cr, c2), jnp.float32)
                   / jnp.sqrt(jnp.float32(c2))).astype(jnp.bfloat16),
        "w1": jax.random.normal(next(keys), (cm, cr), jnp.float32) / jnp.sqrt(jnp.float32(cr)),
        "w2": jax.random.normal(next(keys), (3, cm), jnp.float32) / jnp.sqrt(jnp.float32(cm)),
        "fuse": jax.random.normal(next(keys), (1,), jnp.float32),
        "t": jnp.array([0.5, 1.0, 2.0], jnp.float32),      # t_scale init
    }
    return params


if __name__ == "__main__":
    # Shapes chosen so channels are multiples of 8/16 and HW is a multiple of 128.
    B, C1, C2, H, W, N = 4, 16, 32, 16, 16, 1
    key = jax.random.PRNGKey(0)
    kx, kp = jax.random.split(key)
    x = jax.random.normal(kx, (B, C1, H, W), jnp.float32)   # NCHW, like the PyTorch spec
    params = make_params(kp, C1, C2, N)

    fwd = jax.jit(functools.partial(c2f_phde_forward, params=params, b_blk=2))
    out = fwd(x)
    jax.block_until_ready(out)
    assert out.shape == (B, C2, H, W) and out.dtype == jnp.float32
    assert bool(jnp.isfinite(out).all())

    # Numerical check against a pure-jnp reference with matching precision.
    ref = jax.jit(functools.partial(c2f_phde_reference, params=params))(x)
    jax.block_until_ready(ref)
    err = float(jnp.max(jnp.abs(out - ref)))
    scale = float(jnp.max(jnp.abs(ref))) + 1e-6
    assert err <= 3e-2 * scale + 3e-3, f"max abs err {err} vs scale {scale}"
    print("KERNEL_OK")
</pallas_src>

<mosaic_0001>
module attributes {stable_mosaic.version = 11 : i64} {
  func.func @_c2f_phde_kernel(%arg0: i32, %arg1: memref<1x16x512xf32, #tpu.memory_space<vmem>>, %arg2: memref<8x512xf32, #tpu.memory_space<vmem>>, %arg3: memref<512x2xf32, #tpu.memory_space<vmem>>, %arg4: memref<2x512xf32, #tpu.memory_space<vmem>>, %arg5: memref<32x16xbf16, #tpu.memory_space<vmem>>, %arg6: memref<32x1xf32, #tpu.memory_space<vmem>>, %arg7: memref<2x9x16x16xbf16, #tpu.memory_space<vmem>>, %arg8: memref<2x16x1xf32, #tpu.memory_space<vmem>>, %arg9: memref<32x48xbf16, #tpu.memory_space<vmem>>, %arg10: memref<32x1xf32, #tpu.memory_space<vmem>>, %arg11: memref<8x32xbf16, #tpu.memory_space<vmem>>, %arg12: memref<8x8xf32, #tpu.memory_space<vmem>>, %arg13: memref<3x8xf32, #tpu.memory_space<vmem>>, %arg14: memref<5xf32, #tpu.memory_space<smem>>, %arg15: memref<1x32x512xf32, #tpu.memory_space<vmem>>) attributes {dimension_semantics = [#tpu.dimension_semantics<parallel>], iteration_bounds = array<i64: 2>, scalar_prefetch = 0 : i64, scratch_operands = 0 : i64, tpu.core_type = #tpu.core_type<tc>, window_params = [{transform_indices = @transform_0, window_bounds = array<i64: 1, 16, 512>}, {pipeline_mode = #tpu.pipeline_mode<synchronous>, transform_indices = @transform_1, window_bounds = array<i64: 8, 512>}, {pipeline_mode = #tpu.pipeline_mode<synchronous>, transform_indices = @transform_2, window_bounds = array<i64: 512, 2>}, {pipeline_mode = #tpu.pipeline_mode<synchronous>, transform_indices = @transform_3, window_bounds = array<i64: 2, 512>}, {pipeline_mode = #tpu.pipeline_mode<synchronous>, transform_indices = @transform_4, window_bounds = array<i64: 32, 16>}, {pipeline_mode = #tpu.pipeline_mode<synchronous>, transform_indices = @transform_5, window_bounds = array<i64: 32, 1>}, {pipeline_mode = #tpu.pipeline_mode<synchronous>, transform_indices = @transform_6, window_bounds = array<i64: 2, 9, 16, 16>}, {pipeline_mode = #tpu.pipeline_mode<synchronous>, transform_indices = @transform_7, window_bounds = array<i64: 2, 16, 1>}, {pipeline_mode = #tpu.pipeline_mode<synchronous>, transform_indices = @transform_8, window_bounds = array<i64: 32, 48>}, {pipeline_mode = #tpu.pipeline_mode<synchronous>, transform_indices = @transform_9, window_bounds = array<i64: 32, 1>}, {pipeline_mode = #tpu.pipeline_mode<synchronous>, transform_indices = @transform_10, window_bounds = array<i64: 8, 32>}, {pipeline_mode = #tpu.pipeline_mode<synchronous>, transform_indices = @transform_11, window_bounds = array<i64: 8, 8>}, {pipeline_mode = #tpu.pipeline_mode<synchronous>, transform_indices = @transform_12, window_bounds = array<i64: 3, 8>}, {transform_indices = @transform_13, window_bounds = array<i64: 5>}, {transform_indices = @transform_14, window_bounds = array<i64: 1, 32, 512>}]} {
    %c0 = arith.constant 0 : index
    %c0_0 = arith.constant 0 : index
    %c0_1 = arith.constant 0 : index
    %0 = vector.load %arg1[%c0, %c0_0, %c0_1] : memref<1x16x512xf32, #tpu.memory_space<vmem>>, vector<1x16x512xf32>
    %1 = vector.shape_cast %0 : vector<1x16x512xf32> to vector<16x512xf32>
    %c0_2 = arith.constant 0 : index
    %c0_3 = arith.constant 0 : index
    %2 = vector.load %arg5[%c0_2, %c0_3] : memref<32x16xbf16, #tpu.memory_space<vmem>>, vector<32x16xbf16>
    %3 = arith.truncf %1 : vector<16x512xf32> to vector<16x512xbf16>
    %cst = arith.constant dense<0.000000e+00> : vector<32x512xf32>
    %4 = tpu.matmul %2, %3, %cst {dimension_numbers = #tpu.dot_dimension_numbers<[1], [0], [0], [1], [0, 0, 1, 1], [], []>} : vector<32x16xbf16>, vector<16x512xbf16>, vector<32x512xf32> -> vector<32x512xf32>
    %c0_4 = arith.constant 0 : index
    %c0_5 = arith.constant 0 : index
    %5 = vector.load %arg6[%c0_4, %c0_5] : memref<32x1xf32, #tpu.memory_space<vmem>>, vector<32x1xf32>
    %6 = vector.broadcast %5 : vector<32x1xf32> to vector<32x512xf32>
    %7 = arith.addf %4, %6 : vector<32x512xf32>
    %8 = arith.negf %7 : vector<32x512xf32>
    %9 = math.exp %8 : vector<32x512xf32>
    %cst_6 = arith.constant 1.000000e+00 : f32
    %10 = vector.broadcast %cst_6 : f32 to vector<32x512xf32>
    %11 = arith.addf %10, %9 : vector<32x512xf32>
    %12 = arith.divf %10, %11 : vector<32x512xf32>
    %13 = arith.mulf %7, %12 : vector<32x512xf32>
    %14 = vector.extract_strided_slice %13 {offsets = [0, 0], sizes = [16, 512], strides = [1, 1]} : vector<32x512xf32> to vector<16x512xf32>
    %15 = vector.extract_strided_slice %13 {offsets = [16, 0], sizes = [16, 512], strides = [1, 1]} : vector<32x512xf32> to vector<16x512xf32>
    %c17_i32 = arith.constant 17 : i32
    %16 = tpu.dynamic_rotate %15 by %c17_i32 dim 1 : vector<16x512xf32>, i32 -> vector<16x512xf32>
    %c0_7 = arith.constant 0 : index
    %c0_8 = arith.constant 0 : index
    %17 = vector.load %arg2[%c0_7, %c0_8] : memref<8x512xf32, #tpu.memory_space<vmem>>, vector<1x512xf32>
    %18 = vector.broadcast %17 : vector<1x512xf32> to vector<16x512xf32>
    %19 = arith.mulf %16, %18 : vector<16x512xf32>
    %20 = arith.truncf %19 : vector<16x512xf32> to vector<16x512xbf16>
    %c0_9 = arith.constant 0 : index
    %c0_10 = arith.constant 0 : index
    %c0_11 = arith.constant 0 : index
    %c0_12 = arith.constant 0 : index
    %21 = vector.load %arg7[%c0_9, %c0_10, %c0_11, %c0_12] : memref<2x9x16x16xbf16, #tpu.memory_space<vmem>>, vector<1x1x16x16xbf16>
    %22 = vector.shape_cast %21 : vector<1x1x16x16xbf16> to vector<16x16xbf16>
    %cst_13 = arith.constant dense<0.000000e+00> : vector<16x512xf32>
    %23 = tpu.matmul %22, %20, %cst_13 {dimension_numbers = #tpu.dot_dimension_numbers<[1], [0], [0], [1], [0, 0, 1, 1], [], []>} : vector<16x16xbf16>, vector<16x512xbf16>, vector<16x512xf32> -> vector<16x512xf32>
    %c16_i32 = arith.constant 16 : i32
    %24 = tpu.dynamic_rotate %15 by %c16_i32 dim 1 : vector<16x512xf32>, i32 -> vector<16x512xf32>
    %c1 = arith.constant 1 : index
    %c0_14 = arith.constant 0 : index
    %25 = vector.load %arg2[%c1, %c0_14] : memref<8x512xf32, #tpu.memory_space<vmem>>, vector<1x512xf32>
    %26 = vector.broadcast %25 : vector<1x512xf32> to vector<16x512xf32>
    %27 = arith.mulf %24, %26 : vector<16x512xf32>
    %28 = arith.truncf %27 : vector<16x512xf32> to vector<16x512xbf16>
    %c0_15 = arith.constant 0 : index
    %c1_16 = arith.constant 1 : index
    %c0_17 = arith.constant 0 : index
    %c0_18 = arith.constant 0 : index
    %29 = vector.load %arg7[%c0_15, %c1_16, %c0_17, %c0_18] : memref<2x9x16x16xbf16, #tpu.memory_space<vmem>>, vector<1x1x16x16xbf16>
    %30 = vector.shape_cast %29 : vector<1x1x16x16xbf16> to vector<16x16xbf16>
    %cst_19 = arith.constant dense<0.000000e+00> : vector<16x512xf32>
    %31 = tpu.matmul %30, %28, %cst_19 {dimension_numbers = #tpu.dot_dimension_numbers<[1], [0], [0], [1], [0, 0, 1, 1], [], []>} : vector<16x16xbf16>, vector<16x512xbf16>, vector<16x512xf32> -> vector<16x512xf32>
    %32 = arith.addf %23, %31 : vector<16x512xf32>
    %c15_i32 = arith.constant 15 : i32
    %33 = tpu.dynamic_rotate %15 by %c15_i32 dim 1 : vector<16x512xf32>, i32 -> vector<16x512xf32>
    %c2 = arith.constant 2 : index
    %c0_20 = arith.constant 0 : index
    %34 = vector.load %arg2[%c2, %c0_20] : memref<8x512xf32, #tpu.memory_space<vmem>>, vector<1x512xf32>
    %35 = vector.broadcast %34 : vector<1x512xf32> to vector<16x512xf32>
    %36 = arith.mulf %33, %35 : vector<16x512xf32>
    %37 = arith.truncf %36 : vector<16x512xf32> to vector<16x512xbf16>
    %c0_21 = arith.constant 0 : index
    %c2_22 = arith.constant 2 : index
    %c0_23 = arith.constant 0 : index
    %c0_24 = arith.constant 0 : index
    %38 = vector.load %arg7[%c0_21, %c2_22, %c0_23, %c0_24] : memref<2x9x16x16xbf16, #tpu.memory_space<vmem>>, vector<1x1x16x16xbf16>
    %39 = vector.shape_cast %38 : vector<1x1x16x16xbf16> to vector<16x16xbf16>
    %cst_25 = arith.constant dense<0.000000e+00> : vector<16x512xf32>
    %40 = tpu.matmul %39, %37, %cst_25 {dimension_numbers = #tpu.dot_dimension_numbers<[1], [0], [0], [1], [0, 0, 1, 1], [], []>} : vector<16x16xbf16>, vector<16x512xbf16>, vector<16x512xf32> -> vector<16x512xf32>
    %41 = arith.addf %32, %40 : vector<16x512xf32>
    %c1_i32 = arith.constant 1 : i32
    %42 = tpu.dynamic_rotate %15 by %c1_i32 dim 1 : vector<16x512xf32>, i32 -> vector<16x512xf32>
    %c3 = arith.constant 3 : index
    %c0_26 = arith.constant 0 : index
    %43 = vector.load %arg2[%c3, %c0_26] : memref<8x512xf32, #tpu.memory_space<vmem>>, vector<1x512xf32>
    %44 = vector.broadcast %43 : vector<1x512xf32> to vector<16x512xf32>
    %45 = arith.mulf %42, %44 : vector<16x512xf32>
    %46 = arith.truncf %45 : vector<16x512xf32> to vector<16x512xbf16>
    %c0_27 = arith.constant 0 : index
    %c3_28 = arith.constant 3 : index
    %c0_29 = arith.constant 0 : index
    %c0_30 = arith.constant 0 : index
    %47 = vector.load %arg7[%c0_27, %c3_28, %c0_29, %c0_30] : memref<2x9x16x16xbf16, #tpu.memory_space<vmem>>, vector<1x1x16x16xbf16>
    %48 = vector.shape_cast %47 : vector<1x1x16x16xbf16> to vector<16x16xbf16>
    %cst_31 = arith.constant dense<0.000000e+00> : vector<16x512xf32>
    %49 = tpu.matmul %48, %46, %cst_31 {dimension_numbers = #tpu.dot_dimension_numbers<[1], [0], [0], [1], [0, 0, 1, 1], [], []>} : vector<16x16xbf16>, vector<16x512xbf16>, vector<16x512xf32> -> vector<16x512xf32>
    %50 = arith.addf %41, %49 : vector<16x512xf32>
    %51 = arith.truncf %15 : vector<16x512xf32> to vector<16x512xbf16>
    %c0_32 = arith.constant 0 : index
    %c4 = arith.constant 4 : index
    %c0_33 = arith.constant 0 : index
    %c0_34 = arith.constant 0 : index
    %52 = vector.load %arg7[%c0_32, %c4, %c0_33, %c0_34] : memref<2x9x16x16xbf16, #tpu.memory_space<vmem>>, vector<1x1x16x16xbf16>
    %53 = vector.shape_cast %52 : vector<1x1x16x16xbf16> to vector<16x16xbf16>
    %cst_35 = arith.constant dense<0.000000e+00> : vector<16x512xf32>
    %54 = tpu.matmul %53, %51, %cst_35 {dimension_numbers = #tpu.dot_dimension_numbers<[1], [0], [0], [1], [0, 0, 1, 1], [], []>} : vector<16x16xbf16>, vector<16x512xbf16>, vector<16x512xf32> -> vector<16x512xf32>
    %55 = arith.addf %50, %54 : vector<16x512xf32>
    %c511_i32 = arith.constant 511 : i32
    %56 = tpu.dynamic_rotate %15 by %c511_i32 dim 1 : vector<16x512xf32>, i32 -> vector<16x512xf32>
    %c4_36 = arith.constant 4 : index
    %c0_37 = arith.constant 0 : index
    %57 = vector.load %arg2[%c4_36, %c0_37] : memref<8x512xf32, #tpu.memory_space<vmem>>, vector<1x512xf32>
    %58 = vector.broadcast %57 : vector<1x512xf32> to vector<16x512xf32>
    %59 = arith.mulf %56, %58 : vector<16x512xf32>
    %60 = arith.truncf %59 : vector<16x512xf32> to vector<16x512xbf16>
    %c0_38 = arith.constant 0 : index
    %c5 = arith.constant 5 : index
    %c0_39 = arith.constant 0 : index
    %c0_40 = arith.constant 0 : index
    %61 = vector.load %arg7[%c0_38, %c5, %c0_39, %c0_40] : memref<2x9x16x16xbf16, #tpu.memory_space<vmem>>, vector<1x1x16x16xbf16>
    %62 = vector.shape_cast %61 : vector<1x1x16x16xbf16> to vector<16x16xbf16>
    %cst_41 = arith.constant dense<0.000000e+00> : vector<16x512xf32>
    %63 = tpu.matmul %62, %60, %cst_41 {dimension_numbers = #tpu.dot_dimension_numbers<[1], [0], [0], [1], [0, 0, 1, 1], [], []>} : vector<16x16xbf16>, vector<16x512xbf16>, vector<16x512xf32> -> vector<16x512xf32>
    %64 = arith.addf %55, %63 : vector<16x512xf32>
    %c497_i32 = arith.constant 497 : i32
    %65 = tpu.dynamic_rotate %15 by %c497_i32 dim 1 : vector<16x512xf32>, i32 -> vector<16x512xf32>
    %c5_42 = arith.constant 5 : index
    %c0_43 = arith.constant 0 : index
    %66 = vector.load %arg2[%c5_42, %c0_43] : memref<8x512xf32, #tpu.memory_space<vmem>>, vector<1x512xf32>
    %67 = vector.broadcast %66 : vector<1x512xf32> to vector<16x512xf32>
    %68 = arith.mulf %65, %67 : vector<16x512xf32>
    %69 = arith.truncf %68 : vector<16x512xf32> to vector<16x512xbf16>
    %c0_44 = arith.constant 0 : index
    %c6 = arith.constant 6 : index
    %c0_45 = arith.constant 0 : index
    %c0_46 = arith.constant 0 : index
    %70 = vector.load %arg7[%c0_44, %c6, %c0_45, %c0_46] : memref<2x9x16x16xbf16, #tpu.memory_space<vmem>>, vector<1x1x16x16xbf16>
    %71 = vector.shape_cast %70 : vector<1x1x16x16xbf16> to vector<16x16xbf16>
    %cst_47 = arith.constant dense<0.000000e+00> : vector<16x512xf32>
    %72 = tpu.matmul %71, %69, %cst_47 {dimension_numbers = #tpu.dot_dimension_numbers<[1], [0], [0], [1], [0, 0, 1, 1], [], []>} : vector<16x16xbf16>, vector<16x512xbf16>, vector<16x512xf32> -> vector<16x512xf32>
    %73 = arith.addf %64, %72 : vector<16x512xf32>
    %c496_i32 = arith.constant 496 : i32
    %74 = tpu.dynamic_rotate %15 by %c496_i32 dim 1 : vector<16x512xf32>, i32 -> vector<16x512xf32>
    %c6_48 = arith.constant 6 : index
    %c0_49 = arith.constant 0 : index
    %75 = vector.load %arg2[%c6_48, %c0_49] : memref<8x512xf32, #tpu.memory_space<vmem>>, vector<1x512xf32>
    %76 = vector.broadcast %75 : vector<1x512xf32> to vector<16x512xf32>
    %77 = arith.mulf %74, %76 : vector<16x512xf32>
    %78 = arith.truncf %77 : vector<16x512xf32> to vector<16x512xbf16>
    %c0_50 = arith.constant 0 : index
    %c7 = arith.constant 7 : index
    %c0_51 = arith.constant 0 : index
    %c0_52 = arith.constant 0 : index
    %79 = vector.load %arg7[%c0_50, %c7, %c0_51, %c0_52] : memref<2x9x16x16xbf16, #tpu.memory_space<vmem>>, vector<1x1x16x16xbf16>
    %80 = vector.shape_cast %79 : vector<1x1x16x16xbf16> to vector<16x16xbf16>
    %cst_53 = arith.constant dense<0.000000e+00> : vector<16x512xf32>
    %81 = tpu.matmul %80, %78, %cst_53 {dimension_numbers = #tpu.dot_dimension_numbers<[1], [0], [0], [1], [0, 0, 1, 1], [], []>} : vector<16x16xbf16>, vector<16x512xbf16>, vector<16x512xf32> -> vector<16x512xf32>
    %82 = arith.addf %73, %81 : vector<16x512xf32>
    %c495_i32 = arith.constant 495 : i32
    %83 = tpu.dynamic_rotate %15 by %c495_i32 dim 1 : vector<16x512xf32>, i32 -> vector<16x512xf32>
    %c7_54 = arith.constant 7 : index
    %c0_55 = arith.constant 0 : index
    %84 = vector.load %arg2[%c7_54, %c0_55] : memref<8x512xf32, #tpu.memory_space<vmem>>, vector<1x512xf32>
    %85 = vector.broadcast %84 : vector<1x512xf32> to vector<16x512xf32>
    %86 = arith.mulf %83, %85 : vector<16x512xf32>
    %87 = arith.truncf %86 : vector<16x512xf32> to vector<16x512xbf16>
    %c0_56 = arith.constant 0 : index
    %c8 = arith.constant 8 : index
    %c0_57 = arith.constant 0 : index
    %c0_58 = arith.constant 0 : index
    %88 = vector.load %arg7[%c0_56, %c8, %c0_57, %c0_58] : memref<2x9x16x16xbf16, #tpu.memory_space<vmem>>, vector<1x1x16x16xbf16>
    %89 = vector.shape_cast %88 : vector<1x1x16x16xbf16> to vector<16x16xbf16>
    %cst_59 = arith.constant dense<0.000000e+00> : vector<16x512xf32>
    %90 = tpu.matmul %89, %87, %cst_59 {dimension_numbers = #tpu.dot_dimension_numbers<[1], [0], [0], [1], [0, 0, 1, 1], [], []>} : vector<16x16xbf16>, vector<16x512xbf16>, vector<16x512xf32> -> vector<16x512xf32>
    %91 = arith.addf %82, %90 : vector<16x512xf32>
    %c0_60 = arith.constant 0 : index
    %c0_61 = arith.constant 0 : index
    %c0_62 = arith.constant 0 : index
    %92 = vector.load %arg8[%c0_60, %c0_61, %c0_62] : memref<2x16x1xf32, #tpu.memory_space<vmem>>, vector<1x16x1xf32>
    %93 = vector.shape_cast %92 : vector<1x16x1xf32> to vector<16x1xf32>
    %94 = vector.broadcast %93 : vector<16x1xf32> to vector<16x512xf32>
    %95 = arith.addf %91, %94 : vector<16x512xf32>
    %96 = arith.negf %95 : vector<16x512xf32>
    %97 = math.exp %96 : vector<16x512xf32>
    %cst_63 = arith.constant 1.000000e+00 : f32
    %98 = vector.broadcast %cst_63 : f32 to vector<16x512xf32>
    %99 = arith.addf %98, %97 : vector<16x512xf32>
    %100 = arith.divf %98, %99 : vector<16x512xf32>
    %101 = arith.mulf %95, %100 : vector<16x512xf32>
    %c17_i32_64 = arith.constant 17 : i32
    %102 = tpu.dynamic_rotate %101 by %c17_i32_64 dim 1 : vector<16x512xf32>, i32 -> vector<16x512xf32>
    %c0_65 = arith.constant 0 : index
    %c0_66 = arith.constant 0 : index
    %103 = vector.load %arg2[%c0_65, %c0_66] : memref<8x512xf32, #tpu.memory_space<vmem>>, vector<1x512xf32>
    %104 = vector.broadcast %103 : vector<1x512xf32> to vector<16x512xf32>
    %105 = arith.mulf %102, %104 : vector<16x512xf32>
    %106 = arith.truncf %105 : vector<16x512xf32> to vector<16x512xbf16>
    %c1_67 = arith.constant 1 : index
    %c0_68 = arith.constant 0 : index
    %c0_69 = arith.constant 0 : index
    %c0_70 = arith.constant 0 : index
    %107 = vector.load %arg7[%c1_67, %c0_68, %c0_69, %c0_70] : memref<2x9x16x16xbf16, #tpu.memory_space<vmem>>, vector<1x1x16x16xbf16>
    %108 = vector.shape_cast %107 : vector<1x1x16x16xbf16> to vector<16x16xbf16>
    %cst_71 = arith.constant dense<0.000000e+00> : vector<16x512xf32>
    %109 = tpu.matmul %108, %106, %cst_71 {dimension_numbers = #tpu.dot_dimension_numbers<[1], [0], [0], [1], [0, 0, 1, 1], [], []>} : vector<16x16xbf16>, vector<16x512xbf16>, vector<16x512xf32> -> vector<16x512xf32>
    %c16_i32_72 = arith.constant 16 : i32
    %110 = tpu.dynamic_rotate %101 by %c16_i32_72 dim 1 : vector<16x512xf32>, i32 -> vector<16x512xf32>
    %c1_73 = arith.constant 1 : index
    %c0_74 = arith.constant 0 : index
    %111 = vector.load %arg2[%c1_73, %c0_74] : memref<8x512xf32, #tpu.memory_space<vmem>>, vector<1x512xf32>
    %112 = vector.broadcast %111 : vector<1x512xf32> to vector<16x512xf32>
    %113 = arith.mulf %110, %112 : vector<16x512xf32>
    %114 = arith.truncf %113 : vector<16x512xf32> to vector<16x512xbf16>
    %c1_75 = arith.constant 1 : index
    %c1_76 = arith.constant 1 : index
    %c0_77 = arith.constant 0 : index
    %c0_78 = arith.constant 0 : index
    %115 = vector.load %arg7[%c1_75, %c1_76, %c0_77, %c0_78] : memref<2x9x16x16xbf16, #tpu.memory_space<vmem>>, vector<1x1x16x16xbf16>
    %116 = vector.shape_cast %115 : vector<1x1x16x16xbf16> to vector<16x16xbf16>
    %cst_79 = arith.constant dense<0.000000e+00> : vector<16x512xf32>
    %117 = tpu.matmul %116, %114, %cst_79 {dimension_numbers = #tpu.dot_dimension_numbers<[1], [0], [0], [1], [0, 0, 1, 1], [], []>} : vector<16x16xbf16>, vector<16x512xbf16>, vector<16x512xf32> -> vector<16x512xf32>
    %118 = arith.addf %109, %117 : vector<16x512xf32>
    %c15_i32_80 = arith.constant 15 : i32
    %119 = tpu.dynamic_rotate %101 by %c15_i32_80 dim 1 : vector<16x512xf32>, i32 -> vector<16x512xf32>
    %c2_81 = arith.constant 2 : index
    %c0_82 = arith.constant 0 : index
    %120 = vector.load %arg2[%c2_81, %c0_82] : memref<8x512xf32, #tpu.memory_space<vmem>>, vector<1x512xf32>
    %121 = vector.broadcast %120 : vector<1x512xf32> to vector<16x512xf32>
    %122 = arith.mulf %119, %121 : vector<16x512xf32>
    %123 = arith.truncf %122 : vector<16x512xf32> to vector<16x512xbf16>
    %c1_83 = arith.constant 1 : index
    %c2_84 = arith.constant 2 : index
    %c0_85 = arith.constant 0 : index
    %c0_86 = arith.constant 0 : index
    %124 = vector.load %arg7[%c1_83, %c2_84, %c0_85, %c0_86] : memref<2x9x16x16xbf16, #tpu.memory_space<vmem>>, vector<1x1x16x16xbf16>
    %125 = vector.shape_cast %124 : vector<1x1x16x16xbf16> to vector<16x16xbf16>
    %cst_87 = arith.constant dense<0.000000e+00> : vector<16x512xf32>
    %126 = tpu.matmul %125, %123, %cst_87 {dimension_numbers = #tpu.dot_dimension_numbers<[1], [0], [0], [1], [0, 0, 1, 1], [], []>} : vector<16x16xbf16>, vector<16x512xbf16>, vector<16x512xf32> -> vector<16x512xf32>
    %127 = arith.addf %118, %126 : vector<16x512xf32>
    %c1_i32_88 = arith.constant 1 : i32
    %128 = tpu.dynamic_rotate %101 by %c1_i32_88 dim 1 : vector<16x512xf32>, i32 -> vector<16x512xf32>
    %c3_89 = arith.constant 3 : index
    %c0_90 = arith.constant 0 : index
    %129 = vector.load %arg2[%c3_89, %c0_90] : memref<8x512xf32, #tpu.memory_space<vmem>>, vector<1x512xf32>
    %130 = vector.broadcast %129 : vector<1x512xf32> to vector<16x512xf32>
    %131 = arith.mulf %128, %130 : vector<16x512xf32>
    %132 = arith.truncf %131 : vector<16x512xf32> to vector<16x512xbf16>
    %c1_91 = arith.constant 1 : index
    %c3_92 = arith.constant 3 : index
    %c0_93 = arith.constant 0 : index
    %c0_94 = arith.constant 0 : index
    %133 = vector.load %arg7[%c1_91, %c3_92, %c0_93, %c0_94] : memref<2x9x16x16xbf16, #tpu.memory_space<vmem>>, vector<1x1x16x16xbf16>
    %134 = vector.shape_cast %133 : vector<1x1x16x16xbf16> to vector<16x16xbf16>
    %cst_95 = arith.constant dense<0.000000e+00> : vector<16x512xf32>
    %135 = tpu.matmul %134, %132, %cst_95 {dimension_numbers = #tpu.dot_dimension_numbers<[1], [0], [0], [1], [0, 0, 1, 1], [], []>} : vector<16x16xbf16>, vector<16x512xbf16>, vector<16x512xf32> -> vector<16x512xf32>
    %136 = arith.addf %127, %135 : vector<16x512xf32>
    %137 = arith.truncf %101 : vector<16x512xf32> to vector<16x512xbf16>
    %c1_96 = arith.constant 1 : index
    %c4_97 = arith.constant 4 : index
    %c0_98 = arith.constant 0 : index
    %c0_99 = arith.constant 0 : index
    %138 = vector.load %arg7[%c1_96, %c4_97, %c0_98, %c0_99] : memref<2x9x16x16xbf16, #tpu.memory_space<vmem>>, vector<1x1x16x16xbf16>
    %139 = vector.shape_cast %138 : vector<1x1x16x16xbf16> to vector<16x16xbf16>
    %cst_100 = arith.constant dense<0.000000e+00> : vector<16x512xf32>
    %140 = tpu.matmul %139, %137, %cst_100 {dimension_numbers = #tpu.dot_dimension_numbers<[1], [0], [0], [1], [0, 0, 1, 1], [], []>} : vector<16x16xbf16>, vector<16x512xbf16>, vector<16x512xf32> -> vector<16x512xf32>
    %141 = arith.addf %136, %140 : vector<16x512xf32>
    %c511_i32_101 = arith.constant 511 : i32
    %142 = tpu.dynamic_rotate %101 by %c511_i32_101 dim 1 : vector<16x512xf32>, i32 -> vector<16x512xf32>
    %c4_102 = arith.constant 4 : index
    %c0_103 = arith.constant 0 : index
    %143 = vector.load %arg2[%c4_102, %c0_103] : memref<8x512xf32, #tpu.memory_space<vmem>>, vector<1x512xf32>
    %144 = vector.broadcast %143 : vector<1x512xf32> to vector<16x512xf32>
    %145 = arith.mulf %142, %144 : vector<16x512xf32>
    %146 = arith.truncf %145 : vector<16x512xf32> to vector<16x512xbf16>
    %c1_104 = arith.constant 1 : index
    %c5_105 = arith.constant 5 : index
    %c0_106 = arith.constant 0 : index
    %c0_107 = arith.constant 0 : index
    %147 = vector.load %arg7[%c1_104, %c5_105, %c0_106, %c0_107] : memref<2x9x16x16xbf16, #tpu.memory_space<vmem>>, vector<1x1x16x16xbf16>
    %148 = vector.shape_cast %147 : vector<1x1x16x16xbf16> to vector<16x16xbf16>
    %cst_108 = arith.constant dense<0.000000e+00> : vector<16x512xf32>
    %149 = tpu.matmul %148, %146, %cst_108 {dimension_numbers = #tpu.dot_dimension_numbers<[1], [0], [0], [1], [0, 0, 1, 1], [], []>} : vector<16x16xbf16>, vector<16x512xbf16>, vector<16x512xf32> -> vector<16x512xf32>
    %150 = arith.addf %141, %149 : vector<16x512xf32>
    %c497_i32_109 = arith.constant 497 : i32
    %151 = tpu.dynamic_rotate %101 by %c497_i32_109 dim 1 : vector<16x512xf32>, i32 -> vector<16x512xf32>
    %c5_110 = arith.constant 5 : index
    %c0_111 = arith.constant 0 : index
    %152 = vector.load %arg2[%c5_110, %c0_111] : memref<8x512xf32, #tpu.memory_space<vmem>>, vector<1x512xf32>
    %153 = vector.broadcast %152 : vector<1x512xf32> to vector<16x512xf32>
    %154 = arith.mulf %151, %153 : vector<16x512xf32>
    %155 = arith.truncf %154 : vector<16x512xf32> to vector<16x512xbf16>
    %c1_112 = arith.constant 1 : index
    %c6_113 = arith.constant 6 : index
    %c0_114 = arith.constant 0 : index
    %c0_115 = arith.constant 0 : index
    %156 = vector.load %arg7[%c1_112, %c6_113, %c0_114, %c0_115] : memref<2x9x16x16xbf16, #tpu.memory_space<vmem>>, vector<1x1x16x16xbf16>
    %157 = vector.shape_cast %156 : vector<1x1x16x16xbf16> to vector<16x16xbf16>
    %cst_116 = arith.constant dense<0.000000e+00> : vector<16x512xf32>
    %158 = tpu.matmul %157, %155, %cst_116 {dimension_numbers = #tpu.dot_dimension_numbers<[1], [0], [0], [1], [0, 0, 1, 1], [], []>} : vector<16x16xbf16>, vector<16x512xbf16>, vector<16x512xf32> -> vector<16x512xf32>
    %159 = arith.addf %150, %158 : vector<16x512xf32>
    %c496_i32_117 = arith.constant 496 : i32
    %160 = tpu.dynamic_rotate %101 by %c496_i32_117 dim 1 : vector<16x512xf32>, i32 -> vector<16x512xf32>
    %c6_118 = arith.constant 6 : index
    %c0_119 = arith.constant 0 : index
    %161 = vector.load %arg2[%c6_118, %c0_119] : memref<8x512xf32, #tpu.memory_space<vmem>>, vector<1x512xf32>
    %162 = vector.broadcast %161 : vector<1x512xf32> to vector<16x512xf32>
    %163 = arith.mulf %160, %162 : vector<16x512xf32>
    %164 = arith.truncf %163 : vector<16x512xf32> to vector<16x512xbf16>
    %c1_120 = arith.constant 1 : index
    %c7_121 = arith.constant 7 : index
    %c0_122 = arith.constant 0 : index
    %c0_123 = arith.constant 0 : index
    %165 = vector.load %arg7[%c1_120, %c7_121, %c0_122, %c0_123] : memref<2x9x16x16xbf16, #tpu.memory_space<vmem>>, vector<1x1x16x16xbf16>
    %166 = vector.shape_cast %165 : vector<1x1x16x16xbf16> to vector<16x16xbf16>
    %cst_124 = arith.constant dense<0.000000e+00> : vector<16x512xf32>
    %167 = tpu.matmul %166, %164, %cst_124 {dimension_numbers = #tpu.dot_dimension_numbers<[1], [0], [0], [1], [0, 0, 1, 1], [], []>} : vector<16x16xbf16>, vector<16x512xbf16>, vector<16x512xf32> -> vector<16x512xf32>
    %168 = arith.addf %159, %167 : vector<16x512xf32>
    %c495_i32_125 = arith.constant 495 : i32
    %169 = tpu.dynamic_rotate %101 by %c495_i32_125 dim 1 : vector<16x512xf32>, i32 -> vector<16x512xf32>
    %c7_126 = arith.constant 7 : index
    %c0_127 = arith.constant 0 : index
    %170 = vector.load %arg2[%c7_126, %c0_127] : memref<8x512xf32, #tpu.memory_space<vmem>>, vector<1x512xf32>
    %171 = vector.broadcast %170 : vector<1x512xf32> to vector<16x512xf32>
    %172 = arith.mulf %169, %171 : vector<16x512xf32>
    %173 = arith.truncf %172 : vector<16x512xf32> to vector<16x512xbf16>
    %c1_128 = arith.constant 1 : index
    %c8_129 = arith.constant 8 : index
    %c0_130 = arith.constant 0 : index
    %c0_131 = arith.constant 0 : index
    %174 = vector.load %arg7[%c1_128, %c8_129, %c0_130, %c0_131] : memref<2x9x16x16xbf16, #tpu.memory_space<vmem>>, vector<1x1x16x16xbf16>
    %175 = vector.shape_cast %174 : vector<1x1x16x16xbf16> to vector<16x16xbf16>
    %cst_132 = arith.constant dense<0.000000e+00> : vector<16x512xf32>
    %176 = tpu.matmul %175, %173, %cst_132 {dimension_numbers = #tpu.dot_dimension_numbers<[1], [0], [0], [1], [0, 0, 1, 1], [], []>} : vector<16x16xbf16>, vector<16x512xbf16>, vector<16x512xf32> -> vector<16x512xf32>
    %177 = arith.addf %168, %176 : vector<16x512xf32>
    %c1_133 = arith.constant 1 : index
    %c0_134 = arith.constant 0 : index
    %c0_135 = arith.constant 0 : index
    %178 = vector.load %arg8[%c1_133, %c0_134, %c0_135] : memref<2x16x1xf32, #tpu.memory_space<vmem>>, vector<1x16x1xf32>
    %179 = vector.shape_cast %178 : vector<1x16x1xf32> to vector<16x1xf32>
    %180 = vector.broadcast %179 : vector<16x1xf32> to vector<16x512xf32>
    %181 = arith.addf %177, %180 : vector<16x512xf32>
    %182 = arith.negf %181 : vector<16x512xf32>
    %183 = math.exp %182 : vector<16x512xf32>
    %cst_136 = arith.constant 1.000000e+00 : f32
    %184 = vector.broadcast %cst_136 : f32 to vector<16x512xf32>
    %185 = arith.addf %184, %183 : vector<16x512xf32>
    %186 = arith.divf %184, %185 : vector<16x512xf32>
    %187 = arith.mulf %181, %186 : vector<16x512xf32>
    %188 = tpu.concatenate %14, %15, %187 in 0 : vector<16x512xf32>, vector<16x512xf32>, vector<16x512xf32> -> vector<48x512xf32>
    %189 = arith.truncf %188 : vector<48x512xf32> to vector<48x512xbf16>
    %c0_137 = arith.constant 0 : index
    %c0_138 = arith.constant 0 : index
    %190 = vector.load %arg9[%c0_137, %c0_138] : memref<32x48xbf16, #tpu.memory_space<vmem>>, vector<32x48xbf16>
    %cst_139 = arith.constant dense<0.000000e+00> : vector<32x512xf32>
    %191 = tpu.matmul %190, %189, %cst_139 {dimension_numbers = #tpu.dot_dimension_numbers<[1], [0], [0], [1], [0, 0, 1, 1], [], []>} : vector<32x48xbf16>, vector<48x512xbf16>, vector<32x512xf32> -> vector<32x512xf32>
    %c0_140 = arith.constant 0 : index
    %c0_141 = arith.constant 0 : index
    %192 = vector.load %arg10[%c0_140, %c0_141] : memref<32x1xf32, #tpu.memory_space<vmem>>, vector<32x1xf32>
    %193 = vector.broadcast %192 : vector<32x1xf32> to vector<32x512xf32>
    %194 = arith.addf %191, %193 : vector<32x512xf32>
    %195 = arith.negf %194 : vector<32x512xf32>
    %196 = math.exp %195 : vector<32x512xf32>
    %cst_142 = arith.constant 1.000000e+00 : f32
    %197 = vector.broadcast %cst_142 : f32 to vector<32x512xf32>
    %198 = arith.addf %197, %196 : vector<32x512xf32>
    %199 = arith.divf %197, %198 : vector<32x512xf32>
    %200 = arith.mulf %194, %199 : vector<32x512xf32>
    %c0_143 = arith.constant 0 : index
    %c0_144 = arith.constant 0 : index
    %201 = vector.load %arg11[%c0_143, %c0_144] : memref<8x32xbf16, #tpu.memory_space<vmem>>, vector<8x32xbf16>
    %202 = arith.truncf %200 : vector<32x512xf32> to vector<32x512xbf16>
    %cst_145 = arith.constant dense<0.000000e+00> : vector<8x512xf32>
    %203 = tpu.matmul %201, %202, %cst_145 {dimension_numbers = #tpu.dot_dimension_numbers<[1], [0], [0], [1], [0, 0, 1, 1], [], []>} : vector<8x32xbf16>, vector<32x512xbf16>, vector<8x512xf32> -> vector<8x512xf32>
    %c16_i32_146 = arith.constant 16 : i32
    %204 = tpu.dynamic_rotate %203 by %c16_i32_146 dim 1 : vector<8x512xf32>, i32 -> vector<8x512xf32>
    %c1_147 = arith.constant 1 : index
    %c0_148 = arith.constant 0 : index
    %205 = vector.load %arg2[%c1_147, %c0_148] : memref<8x512xf32, #tpu.memory_space<vmem>>, vector<1x512xf32>
    %206 = vector.broadcast %205 : vector<1x512xf32> to vector<8x512xf32>
    %207 = arith.mulf %204, %206 : vector<8x512xf32>
    %c496_i32_149 = arith.constant 496 : i32
    %208 = tpu.dynamic_rotate %203 by %c496_i32_149 dim 1 : vector<8x512xf32>, i32 -> vector<8x512xf32>
    %c6_150 = arith.constant 6 : index
    %c0_151 = arith.constant 0 : index
    %209 = vector.load %arg2[%c6_150, %c0_151] : memref<8x512xf32, #tpu.memory_space<vmem>>, vector<1x512xf32>
    %210 = vector.broadcast %209 : vector<1x512xf32> to vector<8x512xf32>
    %211 = arith.mulf %208, %210 : vector<8x512xf32>
    %212 = arith.addf %207, %211 : vector<8x512xf32>
    %c1_i32_152 = arith.constant 1 : i32
    %213 = tpu.dynamic_rotate %203 by %c1_i32_152 dim 1 : vector<8x512xf32>, i32 -> vector<8x512xf32>
    %c3_153 = arith.constant 3 : index
    %c0_154 = arith.constant 0 : index
    %214 = vector.load %arg2[%c3_153, %c0_154] : memref<8x512xf32, #tpu.memory_space<vmem>>, vector<1x512xf32>
    %215 = vector.broadcast %214 : vector<1x512xf32> to vector<8x512xf32>
    %216 = arith.mulf %213, %215 : vector<8x512xf32>
    %217 = arith.addf %212, %216 : vector<8x512xf32>
    %c511_i32_155 = arith.constant 511 : i32
    %218 = tpu.dynamic_rotate %203 by %c511_i32_155 dim 1 : vector<8x512xf32>, i32 -> vector<8x512xf32>
    %c4_156 = arith.constant 4 : index
    %c0_157 = arith.constant 0 : index
    %219 = vector.load %arg2[%c4_156, %c0_157] : memref<8x512xf32, #tpu.memory_space<vmem>>, vector<1x512xf32>
    %220 = vector.broadcast %219 : vector<1x512xf32> to vector<8x512xf32>
    %221 = arith.mulf %218, %220 : vector<8x512xf32>
    %222 = arith.addf %217, %221 : vector<8x512xf32>
    %cst_158 = arith.constant 4.000000e+00 : f32
    %223 = vector.broadcast %cst_158 : f32 to vector<8x512xf32>
    %224 = arith.mulf %223, %203 : vector<8x512xf32>
    %225 = arith.subf %222, %224 : vector<8x512xf32>
    %c16_i32_159 = arith.constant 16 : i32
    %226 = tpu.dynamic_rotate %225 by %c16_i32_159 dim 1 : vector<8x512xf32>, i32 -> vector<8x512xf32>
    %c1_160 = arith.constant 1 : index
    %c0_161 = arith.constant 0 : index
    %227 = vector.load %arg2[%c1_160, %c0_161] : memref<8x512xf32, #tpu.memory_space<vmem>>, vector<1x512xf32>
    %228 = vector.broadcast %227 : vector<1x512xf32> to vector<8x512xf32>
    %229 = arith.mulf %226, %228 : vector<8x512xf32>
    %c496_i32_162 = arith.constant 496 : i32
    %230 = tpu.dynamic_rotate %225 by %c496_i32_162 dim 1 : vector<8x512xf32>, i32 -> vector<8x512xf32>
    %c6_163 = arith.constant 6 : index
    %c0_164 = arith.constant 0 : index
    %231 = vector.load %arg2[%c6_163, %c0_164] : memref<8x512xf32, #tpu.memory_space<vmem>>, vector<1x512xf32>
    %232 = vector.broadcast %231 : vector<1x512xf32> to vector<8x512xf32>
    %233 = arith.mulf %230, %232 : vector<8x512xf32>
    %234 = arith.addf %229, %233 : vector<8x512xf32>
    %c1_i32_165 = arith.constant 1 : i32
    %235 = tpu.dynamic_rotate %225 by %c1_i32_165 dim 1 : vector<8x512xf32>, i32 -> vector<8x512xf32>
    %c3_166 = arith.constant 3 : index
    %c0_167 = arith.constant 0 : index
    %236 = vector.load %arg2[%c3_166, %c0_167] : memref<8x512xf32, #tpu.memory_space<vmem>>, vector<1x512xf32>
    %237 = vector.broadcast %236 : vector<1x512xf32> to vector<8x512xf32>
    %238 = arith.mulf %235, %237 : vector<8x512xf32>
    %239 = arith.addf %234, %238 : vector<8x512xf32>
    %c511_i32_168 = arith.constant 511 : i32
    %240 = tpu.dynamic_rotate %225 by %c511_i32_168 dim 1 : vector<8x512xf32>, i32 -> vector<8x512xf32>
    %c4_169 = arith.constant 4 : index
    %c0_170 = arith.constant 0 : index
    %241 = vector.load %arg2[%c4_169, %c0_170] : memref<8x512xf32, #tpu.memory_space<vmem>>, vector<1x512xf32>
    %242 = vector.broadcast %241 : vector<1x512xf32> to vector<8x512xf32>
    %243 = arith.mulf %240, %242 : vector<8x512xf32>
    %244 = arith.addf %239, %243 : vector<8x512xf32>
    %cst_171 = arith.constant 4.000000e+00 : f32
    %245 = vector.broadcast %cst_171 : f32 to vector<8x512xf32>
    %246 = arith.mulf %245, %225 : vector<8x512xf32>
    %247 = arith.subf %244, %246 : vector<8x512xf32>
    %cst_172 = arith.constant dense<0.000000e+00> : vector<512xf32>
    %248 = vector.multi_reduction <add>, %225, %cst_172 [0] : vector<8x512xf32> to vector<512xf32>
    %249 = vector.shape_cast %248 : vector<512xf32> to vector<1x512xf32>
    %cst_173 = arith.constant 8.000000e+00 : f32
    %250 = vector.broadcast %cst_173 : f32 to vector<1x512xf32>
    %251 = arith.divf %249, %250 : vector<1x512xf32>
    %cst_174 = arith.constant dense<0.000000e+00> : vector<512xf32>
    %252 = vector.multi_reduction <add>, %247, %cst_174 [0] : vector<8x512xf32> to vector<512xf32>
    %253 = vector.shape_cast %252 : vector<512xf32> to vector<1x512xf32>
    %cst_175 = arith.constant 8.000000e+00 : f32
    %254 = vector.broadcast %cst_175 : f32 to vector<1x512xf32>
    %255 = arith.divf %253, %254 : vector<1x512xf32>
    %c0_176 = arith.constant 0 : index
    %c0_177 = arith.constant 0 : index
    %256 = vector.load %arg3[%c0_176, %c0_177] : memref<512x2xf32, #tpu.memory_space<vmem>>, vector<512x2xf32>
    %cst_178 = arith.constant dense<0.000000e+00> : vector<8x2xf32>
    %257 = tpu.matmul %203, %256, %cst_178 {dimension_numbers = #tpu.dot_dimension_numbers<[1], [0], [0], [1], [0, 0, 1, 1], [], []>} : vector<8x512xf32>, vector<512x2xf32>, vector<8x2xf32> -> vector<8x2xf32>
    %c0_179 = arith.constant 0 : index
    %c0_180 = arith.constant 0 : index
    %258 = vector.load %arg12[%c0_179, %c0_180] : memref<8x8xf32, #tpu.memory_space<vmem>>, vector<8x8xf32>
    %cst_181 = arith.constant dense<0.000000e+00> : vector<8x2xf32>
    %259 = tpu.matmul %258, %257, %cst_181 {dimension_numbers = #tpu.dot_dimension_numbers<[1], [0], [0], [1], [0, 0, 1, 1], [], []>} : vector<8x8xf32>, vector<8x2xf32>, vector<8x2xf32> -> vector<8x2xf32>
    %cst_182 = arith.constant 0.000000e+00 : f32
    %260 = vector.broadcast %cst_182 : f32 to vector<8x2xf32>
    %261 = arith.maximumf %259, %260 : vector<8x2xf32>
    %c0_183 = arith.constant 0 : index
    %c0_184 = arith.constant 0 : index
    %262 = vector.load %arg13[%c0_183, %c0_184] : memref<3x8xf32, #tpu.memory_space<vmem>>, vector<3x8xf32>
    %cst_185 = arith.constant dense<0.000000e+00> : vector<3x2xf32>
    %263 = tpu.matmul %262, %261, %cst_185 {dimension_numbers = #tpu.dot_dimension_numbers<[1], [0], [0], [1], [0, 0, 1, 1], [], []>} : vector<3x8xf32>, vector<8x2xf32>, vector<3x2xf32> -> vector<3x2xf32>
    %cst_186 = arith.constant dense<0xFF800000> : vector<2xf32>
    %264 = vector.multi_reduction <maximumf>, %263, %cst_186 [0] : vector<3x2xf32> to vector<2xf32>
    %265 = vector.shape_cast %264 : vector<2xf32> to vector<1x2xf32>
    %266 = vector.broadcast %265 : vector<1x2xf32> to vector<3x2xf32>
    %267 = arith.subf %263, %266 : vector<3x2xf32>
    %268 = math.exp %267 : vector<3x2xf32>
    %cst_187 = arith.constant dense<0.000000e+00> : vector<2xf32>
    %269 = vector.multi_reduction <add>, %268, %cst_187 [0] : vector<3x2xf32> to vector<2xf32>
    %270 = vector.shape_cast %269 : vector<2xf32> to vector<1x2xf32>
    %271 = vector.broadcast %270 : vector<1x2xf32> to vector<3x2xf32>
    %272 = arith.divf %268, %271 : vector<3x2xf32>
    %c0_188 = arith.constant 0 : index
    %273 = memref.load %arg14[%c0_188] : memref<5xf32, #tpu.memory_space<smem>>
    %274 = vector.extract_strided_slice %272 {offsets = [0, 0], sizes = [1, 2], strides = [1, 1]} : vector<3x2xf32> to vector<1x2xf32>
    %275 = vector.broadcast %273 : f32 to vector<1x2xf32>
    %276 = arith.mulf %275, %274 : vector<1x2xf32>
    %c2_189 = arith.constant 2 : index
    %277 = memref.load %arg14[%c2_189] : memref<5xf32, #tpu.memory_space<smem>>
    %278 = vector.extract_strided_slice %272 {offsets = [0, 0], sizes = [1, 2], strides = [1, 1]} : vector<3x2xf32> to vector<1x2xf32>
    %279 = vector.broadcast %277 : f32 to vector<1x2xf32>
    %280 = arith.mulf %279, %278 : vector<1x2xf32>
    %c1_190 = arith.constant 1 : index
    %281 = memref.load %arg14[%c1_190] : memref<5xf32, #tpu.memory_space<smem>>
    %282 = vector.extract_strided_slice %272 {offsets = [1, 0], sizes = [1, 2], strides = [1, 1]} : vector<3x2xf32> to vector<1x2xf32>
    %283 = vector.broadcast %281 : f32 to vector<1x2xf32>
    %284 = arith.mulf %283, %282 : vector<1x2xf32>
    %285 = arith.addf %276, %284 : vector<1x2xf32>
    %c3_191 = arith.constant 3 : index
    %286 = memref.load %arg14[%c3_191] : memref<5xf32, #tpu.memory_space<smem>>
    %287 = vector.extract_strided_slice %272 {offsets = [1, 0], sizes = [1, 2], strides = [1, 1]} : vector<3x2xf32> to vector<1x2xf32>
    %288 = vector.broadcast %286 : f32 to vector<1x2xf32>
    %289 = arith.mulf %288, %287 : vector<1x2xf32>
    %290 = arith.addf %280, %289 : vector<1x2xf32>
    %291 = tpu.concatenate %285, %290 in 0 : vector<1x2xf32>, vector<1x2xf32> -> vector<2x2xf32>
    %c0_192 = arith.constant 0 : index
    %c0_193 = arith.constant 0 : index
    %292 = vector.load %arg4[%c0_192, %c0_193] : memref<2x512xf32, #tpu.memory_space<vmem>>, vector<2x512xf32>
    %cst_194 = arith.constant dense<0.000000e+00> : vector<2x512xf32>
    %293 = tpu.matmul %291, %292, %cst_194 {dimension_numbers = #tpu.dot_dimension_numbers<[1], [0], [0], [1], [0, 0, 1, 1], [], []>} : vector<2x2xf32>, vector<2x512xf32>, vector<2x512xf32> -> vector<2x512xf32>
    %c4_195 = arith.constant 4 : index
    %294 = memref.load %arg14[%c4_195] : memref<5xf32, #tpu.memory_space<smem>>
    %295 = vector.extract_strided_slice %293 {offsets = [0, 0], sizes = [1, 512], strides = [1, 1]} : vector<2x512xf32> to vector<1x512xf32>
    %296 = arith.mulf %295, %251 : vector<1x512xf32>
    %297 = vector.extract_strided_slice %293 {offsets = [1, 0], sizes = [1, 512], strides = [1, 1]} : vector<2x512xf32> to vector<1x512xf32>
    %298 = arith.mulf %297, %255 : vector<1x512xf32>
    %299 = arith.addf %296, %298 : vector<1x512xf32>
    %300 = vector.broadcast %294 : f32 to vector<1x512xf32>
    %301 = arith.mulf %300, %299 : vector<1x512xf32>
    %302 = arith.negf %301 : vector<1x512xf32>
    %303 = math.exp %302 : vector<1x512xf32>
    %cst_196 = arith.constant 1.000000e+00 : f32
    %304 = vector.broadcast %cst_196 : f32 to vector<1x512xf32>
    %305 = arith.addf %304, %303 : vector<1x512xf32>
    %306 = arith.divf %304, %305 : vector<1x512xf32>
    %cst_197 = arith.constant 1.000000e+00 : f32
    %307 = vector.broadcast %cst_197 : f32 to vector<1x512xf32>
    %308 = arith.addf %307, %306 : vector<1x512xf32>
    %309 = vector.broadcast %308 : vector<1x512xf32> to vector<32x512xf32>
    %310 = arith.mulf %200, %309 : vector<32x512xf32>
    %c0_198 = arith.constant 0 : index
    %c0_199 = arith.constant 0 : index
    %c0_200 = arith.constant 0 : index
    %311 = vector.load %arg15[%c0_198, %c0_199, %c0_200] : memref<1x32x512xf32, #tpu.memory_space<vmem>>, vector<1x32x512xf32>
    %312 = vector.shape_cast %311 : vector<1x32x512xf32> to vector<32x512xf32>
    %313 = vector.shape_cast %310 : vector<32x512xf32> to vector<1x32x512xf32>
    tpu.vector_store %arg15[%c0_198, %c0_199, %c0_200], %313 {strides = array<i32>} : memref<1x32x512xf32, #tpu.memory_space<vmem>>, vector<1x32x512xf32>,
    return
  }
  func.func @transform_0(%arg0: i32) -> (i32, i32, i32) {
    %c0_i32 = arith.constant 0 : i32
    %c0_i32_0 = arith.constant 0 : i32
    %c0_i32_1 = arith.constant 0 : i32
    return %arg0, %c0_i32, %c0_i32_0 : i32, i32, i32
  }
  func.func @transform_1(%arg0: i32) -> (i32, i32) {
    %c0_i32 = arith.constant 0 : i32
    %c0_i32_0 = arith.constant 0 : i32
    %c0_i32_1 = arith.constant 0 : i32
    return %c0_i32, %c0_i32_0 : i32, i32
  }
  func.func @transform_2(%arg0: i32) -> (i32, i32) {
    %c0_i32 = arith.constant 0 : i32
    %c0_i32_0 = arith.constant 0 : i32
    %c0_i32_1 = arith.constant 0 : i32
    return %c0_i32, %c0_i32_0 : i32, i32
  }
  func.func @transform_3(%arg0: i32) -> (i32, i32) {
    %c0_i32 = arith.constant 0 : i32
    %c0_i32_0 = arith.constant 0 : i32
    %c0_i32_1 = arith.constant 0 : i32
    return %c0_i32, %c0_i32_0 : i32, i32
  }
  func.func @transform_4(%arg0: i32) -> (i32, i32) {
    %c0_i32 = arith.constant 0 : i32
    %c0_i32_0 = arith.constant 0 : i32
    %c0_i32_1 = arith.constant 0 : i32
    return %c0_i32, %c0_i32_0 : i32, i32
  }
  func.func @transform_5(%arg0: i32) -> (i32, i32) {
    %c0_i32 = arith.constant 0 : i32
    %c0_i32_0 = arith.constant 0 : i32
    %c0_i32_1 = arith.constant 0 : i32
    return %c0_i32, %c0_i32_0 : i32, i32
  }
  func.func @transform_6(%arg0: i32) -> (i32, i32, i32, i32) {
    %c0_i32 = arith.constant 0 : i32
    %c0_i32_0 = arith.constant 0 : i32
    %c0_i32_1 = arith.constant 0 : i32
    %c0_i32_2 = arith.constant 0 : i32
    %c0_i32_3 = arith.constant 0 : i32
    return %c0_i32, %c0_i32_0, %c0_i32_1, %c0_i32_2 : i32, i32, i32, i32
  }
  func.func @transform_7(%arg0: i32) -> (i32, i32, i32) {
    %c0_i32 = arith.constant 0 : i32
    %c0_i32_0 = arith.constant 0 : i32
    %c0_i32_1 = arith.constant 0 : i32
    %c0_i32_2 = arith.constant 0 : i32
    return %c0_i32, %c0_i32_0, %c0_i32_1 : i32, i32, i32
  }
  func.func @transform_8(%arg0: i32) -> (i32, i32) {
    %c0_i32 = arith.constant 0 : i32
    %c0_i32_0 = arith.constant 0 : i32
    %c0_i32_1 = arith.constant 0 : i32
    return %c0_i32, %c0_i32_0 : i32, i32
  }
  func.func @transform_9(%arg0: i32) -> (i32, i32) {
    %c0_i32 = arith.constant 0 : i32
    %c0_i32_0 = arith.constant 0 : i32
    %c0_i32_1 = arith.constant 0 : i32
    return %c0_i32, %c0_i32_0 : i32, i32
  }
  func.func @transform_10(%arg0: i32) -> (i32, i32) {
    %c0_i32 = arith.constant 0 : i32
    %c0_i32_0 = arith.constant 0 : i32
    %c0_i32_1 = arith.constant 0 : i32
    return %c0_i32, %c0_i32_0 : i32, i32
  }
  func.func @transform_11(%arg0: i32) -> (i32, i32) {
    %c0_i32 = arith.constant 0 : i32
    %c0_i32_0 = arith.constant 0 : i32
    %c0_i32_1 = arith.constant 0 : i32
    return %c0_i32, %c0_i32_0 : i32, i32
  }
  func.func @transform_12(%arg0: i32) -> (i32, i32) {
    %c0_i32 = arith.constant 0 : i32
    %c0_i32_0 = arith.constant 0 : i32
    %c0_i32_1 = arith.constant 0 : i32
    return %c0_i32, %c0_i32_0 : i32, i32
  }
  func.func @transform_13(%arg0: i32) -> i32 {
    %c0_i32 = arith.constant 0 : i32
    %c0_i32_0 = arith.constant 0 : i32
    return %c0_i32 : i32
  }
  func.func @transform_14(%arg0: i32) -> (i32, i32, i32) {
    %c0_i32 = arith.constant 0 : i32
    %c0_i32_0 = arith.constant 0 : i32
    %c0_i32_1 = arith.constant 0 : i32
    return %arg0, %c0_i32, %c0_i32_0 : i32, i32, i32
  }
}

</mosaic_0001>

<bundles_post_ra>
// kernel: c2f_phde_forward.1
= control target key start
LH: loop header
LB: loop body
LE: loop exit
PB: predicated region body
PF: predicated region fallthrough
CT: control target
= control target key end

     0   :  { %19 = vsyncpa [#allocation3], 0  ;;  %s5290_s29 = smov 0   ;;  %s8347_s0 = inlined_call_operand.vmem [shape: f32[2,16,512], index: 0, kind: input, shape index: {}]   ;;  %s8348_s1 = inlined_call_operand.vmem [shape: f32[8,512], index: 1, kind: input, shape index: {}]   ;;  %s8349_s2 = inlined_call_operand.vmem [shape: f32[512,2], index: 2, kind: input, shape index: {}]   ;;  %s8350_s3 = inlined_call_operand.vmem [shape: f32[2,512], index: 3, kind: input, shape index: {}]   ;;  %s8351_s4 = inlined_call_operand.vmem [shape: bf16[32,16], index: 4, kind: input, shape index: {}]   ;;  %s8352_s5 = inlined_call_operand.vmem [shape: f32[32,1], index: 5, kind: input, shape index: {}]   ;;  %s8353_s6 = inlined_call_operand.vmem [shape: bf16[2,9,16,16], index: 6, kind: input, shape index: {}]   ;;  %s8354_s7 = inlined_call_operand.vmem [shape: f32[2,16,1], index: 7, kind: input, shape index: {}]   ;;  %s8355_s8 = inlined_call_operand.vmem [shape: bf16[32,48], index: 8, kind: input, shape index: {}]   ;;  %s8356_s9 = inlined_call_operand.vmem [shape: f32[32,1], index: 9, kind: input, shape index: {}]   ;;  %s8357_s10 = inlined_call_operand.vmem [shape: bf16[8,32], index: 10, kind: input, shape index: {}]   ;;  %s8358_s11 = inlined_call_operand.vmem [shape: f32[8,8], index: 11, kind: input, shape index: {}]   ;;  %s8359_s12 = inlined_call_operand.vmem [shape: f32[3,8], index: 12, kind: input, shape index: {}]   ;;  %s8360_s13 = inlined_call_operand.vmem [shape: f32[5], index: 13, kind: input, shape index: {}]   ;;  %s8361_s14 = inlined_call_operand.vmem [shape: f32[2,32,512], index: 14, kind: output, shape index: {}]  }
   0x1 LB: > { %s4605_s30 = sadd.s32 4294967295, %s5202_s29   ;;  %p4607_p0 = scmp.ge.s32.totalorder %s5202_s29, 1  ;;  %s5202_s29 = sphi %s5290_s29, %s25_s29  }
   0x2   : > { %p355_p1 = scmp.lt.s32.totalorder %s5202_s29, 3  ;;  %s403_s17 = sshll.u32 %s8360_s13, 4  ;;  %s404_s17 = int_to_ptr.vmem [resolvable:$true] %s403_s17 }
   0x3   : > { %p4939_p3 = scmp.eq.s32.totalorder %s4605_s30, 0  ;;  %s5204_s18 = smov [#allocation2]  }
   0x4   : > { %p356_p2 = pnand %p4607_p0, %p355_p1 }
   0x6   : > { %p4935_p4 = pneg %p356_p2  ;;  %424 = sbr.rel (%p356_p2) target bundleno = 2123 (0x84b), region = 76 }
   0x8   : > { %p4936_p5 = pnand %p4939_p3, %p4935_p4 }
   0xa   : > { %4938 = dma.vmem_to_smem (!%p4936_p5), %s404_s17, 16, %s5204_s18, [#allocation3]  }
   0xb   : > { %5197 = dma.done.wait (%p4939_p3), [#allocation3], 16  }
   0xc   : > { %5199 = vsyncadd (%p4939_p3), [#allocation3], 4294967280 }
   0xd   : > { %431 = sfence }
   0xe   : > { %p472_p6 = scmp.lt.s32.totalorder %s4605_s30, 1  ;;  %v501_v0 = vld [vmem:[%s8352_s5 + $0x10] sm:$0xff]  ;;  %v5205_v1 = vmov 0   ;;  %v4909_v5 = vld [vmem:[%s8351_s4] sm:$0xff]  ;;  %v502_v14 = vld [vmem:[%s8352_s5 + $0x18] sm:$0xff]  ;;  %vm533_vm0 = vcmask 130048  }
   0xf   : > { %4960 = vset.pattern.permute.xlu0 %v5205_v1  ;;  %4961 = vset.pattern.permute.xlu1 %v5205_v1  ;;  %v4910_v16 = vld [vmem:[%s8351_s4 + $0x8] sm:$0xff]  ;;  %s5206_s17 = smov 16   ;;  %s5207_s18 = smov 17  }
  0x10   : > { %s8731_s30 = smov (!%p472_p6, %s4605_s30), 1  ;;  %515 = vperm.xlu0 %4960, %v501_v0   ;;  %4962 = vset.pattern.permute.xlu2 %v5205_v1  ;;  %s5208_s19 = smov 15  }
  0x11   : > { %s4907_s21 = sshll.u32 %s8731_s30, 6  ;;  %s5209_s20 = smov 1  }
  0x12   : > { %s476_s24 = scalar_lea.vmem %s8347_s0, %s4907_s21  ;;  %s5210_s21 = smov 127  }
  0x13   : > { %v483_v2 = vld [vmem:[%s476_s24] sm:$0xff]  ;;  %v484_v4 = vld [vmem:[%s476_s24 + $0x8] sm:$0xff]  ;;  %v485_v8 = vld [vmem:[%s476_s24 + $0x10] sm:$0xff]  ;;  %s5211_s22 = smov 113   ;;  %s5212_s23 = smov 112  }
  0x14   : > { %v487_v3 = vld [vmem:[%s476_s24 + $0x20] sm:$0xff]  ;;  %v488_v7 = vld [vmem:[%s476_s24 + $0x28] sm:$0xff]  ;;  %v489_v9 = vld [vmem:[%s476_s24 + $0x30] sm:$0xff]  ;;  %s5213_s16 = smov 111   ;;  %s4889_s26 = sld [smem:[#allocation2 + $0x2]] }
  0x15   : > { %v495_v6 = vpack.c.bf16 %v487_v3, %v483_v2  ;;  %v496_v10 = vpack.c.bf16 %v488_v7, %v484_v4  ;;  %v497_v11 = vpack.c.bf16 %v489_v9, %v485_v8  ;;  %v486_v12 = vld [vmem:[%s476_s24 + $0x18] sm:$0xff]  ;;  %s4267_s27 = sld [smem:[#allocation2]]  ;;  %s4908_s28 = sshll.u32 %s8731_s30, 7 }
  0x16   : > { %v490_v13 = vld [vmem:[%s476_s24 + $0x38] sm:$0xff]  ;;  %s8307_s15 = scalar_lea.vmem %s8361_s14, %s4908_s28 }
  0x17   : > { %547 = vmatpush.bf16.msra.mxu0 %v495_v6  ;;  %v498_v15 = vpack.c.bf16 %v490_v13, %v486_v12  ;;  %566 = vmatpush.bf16.msra.mxu1 %v496_v10 }
  0x18   : > { %585 = vmatpush.bf16.msra.mxu2 %v497_v11  ;;  %520 = vperm.xlu0 %4960, %v502_v14  }
  0x19   : > { %604 = vmatpush.bf16.msra.mxu3 %v498_v15 }
  0x1a   : > { %4624 = vmatmul.msk.bf16.vlgmr.msra.gmra.mxu0 %vm533_vm0, %v4909_v5  ;;  %4626 = vmatmul.msk.bf16.vlgmr.msra.gmra.mxu1 %vm533_vm0, %v4909_v5 }
  0x1b   : > { %4628 = vmatmul.msk.bf16.vlgmr.msra.gmra.mxu2 %vm533_vm0, %v4909_v5 }
  0x1c   : > { %4630 = vmatmul.msk.bf16.vlgmr.msra.gmra.mxu3 %vm533_vm0, %v4909_v5 }
  0x2a   : > { %4625 = vmatmul.msk.bf16.gmra.mxu0 %vm533_vm0, %v4910_v16  ;;  %4627 = vmatmul.msk.bf16.gmra.mxu1 %vm533_vm0, %v4910_v16 }
  0x2b   : > { %4629 = vmatmul.msk.bf16.gmra.mxu2 %vm533_vm0, %v4910_v16 }
  0x2c   : > { %4631 = vmatmul.msk.bf16.gmra.mxu3 %vm533_vm0, %v4910_v16 }
  0x82   : > { %v516_v23 = vpop.permute.xlu0 %515 }
  0x8a   : > { %v521_v32 = vpop.permute.xlu0 %520 }
  0x97   : > { %v5327_v17 = vpop.f32.mrf.mxu0  ;;  %v5329_v18 = vpop.f32.mrf.mxu1 }
  0x98   : > { %8459 = vst [vmem:[#allocation5_spill] sm:$0xff] %v5327_v17 }
  0x99   : > { %8460 = vst [vmem:[#allocation6_spill] sm:$0xff] %v5329_v18 }
  0x9e   : > { %v5331_v19 = vpop.f32.mrf.mxu2 }
  0x9f   : > { %8461 = vst [vmem:[#allocation7_spill] sm:$0xff] %v5331_v19  ;;  %v5333_v20 = vpop.f32.mrf.mxu3  ;;  %v5335_v21 = vpop.f32.mrf.mxu0 }
  0xa0   : > { %8462 = vst [vmem:[#allocation8_spill] sm:$0xff] %v5333_v20  ;;  %v5337_v22 = vpop.f32.mrf.mxu1 }
  0xa1   : > { %8463 = vst [vmem:[#allocation9_spill] sm:$0xff] %v5335_v21 }
  0xa2   : > { %8464 = vst [vmem:[#allocation10_spill] sm:$0xff] %v5337_v22 }
  0xa6   : > { %v5339_v24 = vpop.f32.mrf.mxu2 }
  0xa7   : > { %8465 = vst [vmem:[#allocation11_spill] sm:$0xff] %v5339_v24  ;;  %v5341_v25 = vpop.f32.mrf.mxu3  ;;  %v554_v26 = vpop.f32.mrf.mxu0 }
  0xa8   : > { %8466 = vst [vmem:[#allocation12_spill] sm:$0xff] %v5341_v25  ;;  %v5343_v27 = vadd.f32 %v554_v26, %v516_v23  ;;  %v573_v28 = vpop.f32.mrf.mxu1 }
  0xa9   : > { %v5345_v29 = vadd.f32 %v573_v28, %v516_v23 }
  0xaa   : > { %v4640_v30 = vmul.f32 -1.442695, %v5343_v27 }
  0xab   : > { %v4641_v31 = vmul.f32 -1.442695, %v5345_v29 }
  0xac   : > { %4963 = vpow2.f32 %v4640_v30 }
  0xad   : > { %4965 = vpow2.f32 %v4641_v31 }
  0xae   : > { %v592_v33 = vpop.f32.mrf.mxu2 }
  0xaf   : > { %v5349_v34 = vadd.f32 %v592_v33, %v516_v23  ;;  %v611_v35 = vpop.f32.mrf.mxu3  ;;  %v556_v36 = vpop.f32.mrf.mxu0 }
  0xb0   : > { %v5351_v37 = vadd.f32 %v611_v35, %v516_v23  ;;  %v5353_v38 = vadd.f32 %v556_v36, %v521_v32  ;;  %v575_v39 = vpop.f32.mrf.mxu1 }
  0xb1   : > { %v4642_v40 = vmul.f32 -1.442695, %v5349_v34  ;;  %v5356_v41 = vadd.f32 %v575_v39, %v521_v32 }
  0xb2   : > { %v4964_v42 = vpop.eup %4963  ;;  %v4643_v43 = vmul.f32 -1.442695, %v5351_v37  ;;  %v4644_v46 = vmul.f32 -1.442695, %v5353_v38 }
  0xb3   : > { %v4966_v44 = vpop.eup %4965  ;;  %v672_v45 = vadd.f32 1.0, %v4964_v42  ;;  %4967 = vpow2.f32 %v4642_v40  ;;  %v4645_v48 = vmul.f32 -1.442695, %v5356_v41 }
  0xb4   : > { %v673_v47 = vadd.f32 1.0, %v4966_v44  ;;  %4969 = vpow2.f32 %v4643_v43 }
  0xb5   : > { %4971 = vrcp.f32 %v672_v45  ;;  %v809_v2 = vand.u32 2147483647, %v672_v45  ;;  %v811_v3 = vand.u32 2147483648, %v672_v45  ;;  %vm805_vm3 = vweird.f32 %v672_v45 }
  0xb6   : > { %4973 = vrcp.f32 %v673_v47  ;;  %v594_v49 = vpop.f32.mrf.mxu2  ;;  %v824_v5 = vand.u32 2147483647, %v673_v47  ;;  %v826_v6 = vand.u32 2147483648, %v673_v47  ;;  %vm820_vm4 = vweird.f32 %v673_v47 }
  0xb7   : > { %4975 = vpow2.f32 %v4644_v46  ;;  %v5361_v50 = vadd.f32 %v594_v49, %v521_v32  ;;  %v613_v51 = vpop.f32.mrf.mxu3  ;;  %vm810_vm6 = vcmp.eq.f32.partialorder %v809_v2, 8.507059e+37  ;;  %v812_v13 = vor.u32 1.1754944e-38, %v811_v3 }
  0xb8   : > { %4977 = vpow2.f32 %v4645_v48  ;;  %v5363_v53 = vadd.f32 %v613_v51, %v521_v32  ;;  %vm825_vm8 = vcmp.eq.f32.partialorder %v824_v5, 8.507059e+37  ;;  %v827_v26 = vor.u32 1.1754944e-38, %v826_v6 }
  0xb9   : > { %v4968_v52 = vpop.eup %4967  ;;  %v4646_v58 = vmul.f32 -1.442695, %v5361_v50 }
  0xba   : > { %v4970_v54 = vpop.eup %4969  ;;  %v5365_v55 = vadd.f32 1.0, %v4968_v52  ;;  %v4647_v63 = vmul.f32 -1.442695, %v5363_v53 }
  0xbb   : > { %v4972_v56 = vpop.eup %4971  ;;  %v5367_v57 = vadd.f32 1.0, %v4970_v54 }
  0xbc   : > { %v4974_v59 = vpop.eup %4973  ;;  %v801_v60 = vmul.f32 %v4972_v56, %v672_v45  ;;  %4979 = vrcp.f32 %v5365_v55  ;;  %vm806_vm1 = vweird.f32 %v4972_v56  ;;  %v839_v39 = vand.u32 2147483647, %v5365_v55 }
  0xbd   : > { %v4976_v61 = vpop.eup %4975  ;;  %v816_v62 = vmul.f32 %v4974_v59, %v673_v47  ;;  %4981 = vrcp.f32 %v5367_v57  ;;  %vm821_vm2 = vweird.f32 %v4974_v59  ;;  %vm807_vm5 = vmor %vm805_vm3, %vm806_vm1  ;;  %v841_v40 = vand.u32 2147483648, %v5365_v55 }
  0xbe   : > { %v4978_v0 = vpop.eup %4977  ;;  %v802_v1 = vsub.f32 1.0, %v801_v60  ;;  %4983 = vpow2.f32 %v4646_v58  ;;  %v5373_v8 = vadd.f32 1.0, %v4976_v61  ;;  %vm822_vm7 = vmor %vm820_vm4, %vm821_vm2  ;;  %vm835_vm10 = vweird.f32 %v5365_v55 }
  0xbf   : > { %v817_v4 = vsub.f32 1.0, %v816_v62  ;;  %v5375_v9 = vadd.f32 1.0, %v4978_v0  ;;  %4985 = vpow2.f32 %v4647_v63  ;;  %v854_v47 = vand.u32 2147483647, %v5367_v57 }
  0xc0   : > { %v803_v7 = vmul.f32 %v4972_v56, %v802_v1  ;;  %4987 = vrcp.f32 %v5373_v8  ;;  %v842_v54 = vor.u32 1.1754944e-38, %v841_v40  ;;  %vm850_vm13 = vweird.f32 %v5367_v57 }
  0xc1   : > { %v818_v10 = vmul.f32 %v4974_v59, %v817_v4  ;;  %4989 = vrcp.f32 %v5375_v9  ;;  %vm840_vm14 = vcmp.eq.f32.partialorder %v839_v39, 8.507059e+37  ;;  %vm855_vm1 = vcmp.eq.f32.partialorder %v854_v47, 8.507059e+37 }
  0xc2   : > { %v4980_v11 = vpop.eup %4979  ;;  %v804_v12 = vadd.f32 %v4972_v56, %v803_v7  ;;  %vm880_vm4 = vweird.f32 %v5375_v9 }
  0xc3   : > { %v819_v14 = vadd.f32 %v4974_v59, %v818_v10  ;;  %v831_v15 = vmul.f32 %v4980_v11, %v5365_v55  ;;  %v4982_v16 = vpop.eup %4981  ;;  %vm836_vm9 = vweird.f32 %v4980_v11 }
  0xc4   : > { %v808_v23 = vsel %vm807_vm5, %v4972_v56, %v804_v12  ;;  %v4984_v28 = vpop.eup %4983  ;;  %v846_v33 = vmul.f32 %v4982_v16, %v5367_v57  ;;  %vm851_vm11 = vweird.f32 %v4982_v16  ;;  %vm837_vm12 = vmor %vm835_vm10, %vm836_vm9  ;;  %vm865_vm5 = vweird.f32 %v5373_v8 }
  0xc5   : > { %v813_v30 = vsel %vm810_vm6, %v812_v13, %v808_v23  ;;  %v823_v31 = vsel %vm822_vm7, %v4974_v59, %v819_v14  ;;  %v832_v32 = vsub.f32 1.0, %v831_v15  ;;  %v4986_v42 = vpop.eup %4985  ;;  %v5394_v48 = vadd.f32 1.0, %v4984_v28  ;;  %vm852_vm15 = vmor %vm850_vm13, %vm851_vm11 }
  0xc6   : > { %v5382_v35 = vmul.f32 %v813_v30, %v5343_v27  ;;  %v828_v36 = vsel %vm825_vm8, %v827_v26, %v823_v31  ;;  %v847_v45 = vsub.f32 1.0, %v846_v33  ;;  %v5389_v46 = vpop.eup %4987  ;;  %v856_v27 = vand.u32 2147483648, %v5367_v57 }
  0xc7   : > { %v5387_v43 = vmul.f32 %v828_v36, %v5345_v29  ;;  %v833_v44 = vmul.f32 %v4980_v11, %v832_v32  ;;  %v861_v51 = vmul.f32 %v5389_v46, %v5373_v8  ;;  %v4990_v52 = vpop.eup %4989  ;;  %4991 = vrcp.f32 %v5394_v48 }
  0xc8   : > { %987 = vrot.lane.b32.xlu2 %v5382_v35, %s5206_s17  ;;  %v848_v29 = vmul.f32 %v4982_v16, %v847_v45  ;;  %v5405_v55 = vadd.f32 1.0, %v4986_v42  ;;  %v876_v59 = vmul.f32 %v4990_v52, %v5375_v9  ;;  %v857_v61 = vor.u32 1.1754944e-38, %v856_v27 }
  0xc9   : > { %v834_v49 = vadd.f32 %v4980_v11, %v833_v44  ;;  %991 = vrot.lane.b32.xlu1 %v5387_v43, %s5206_s17  ;;  %v862_v63 = vsub.f32 1.0, %v861_v51  ;;  %vm881_vm2 = vweird.f32 %v4990_v52  ;;  %vm866_vm3 = vweird.f32 %v5389_v46 }
  0xca   : > { %v849_v58 = vadd.f32 %v4982_v16, %v848_v29  ;;  %v877_v0 = vsub.f32 1.0, %v876_v59  ;;  %4993 = vrcp.f32 %v5405_v55  ;;  %v871_v13 = vand.u32 2147483648, %v5373_v8  ;;  %vm882_vm6 = vmor %vm880_vm4, %vm881_vm2 }
  0xcb   : > { %v838_v56 = vsel %vm837_vm12, %v4980_v11, %v834_v49  ;;  %v863_v5 = vmul.f32 %v5389_v46, %v862_v63  ;;  %v886_v11 = vand.u32 2147483648, %v5375_v9  ;;  %v884_v14 = vand.u32 2147483647, %v5375_v9  ;;  %vm867_vm7 = vmor %vm865_vm5, %vm866_vm3 }
  0xcc   : > { %v843_v60 = vsel %vm840_vm14, %v842_v54, %v838_v56  ;;  %v853_v62 = vsel %vm852_vm15, %v4982_v16, %v849_v58  ;;  %v878_v4 = vmul.f32 %v4990_v52, %v877_v0  ;;  %v869_v15 = vand.u32 2147483647, %v5373_v8 }
  0xcd   : > { %v5409_v1 = vmul.f32 %v843_v60, %v5349_v34  ;;  %v858_v57 = vsel %vm855_vm1, %v857_v61, %v853_v62  ;;  %v4992_v3 = vpop.eup %4991  ;;  %v864_v10 = vadd.f32 %v5389_v46, %v863_v5  ;;  %v887_v30 = vor.u32 1.1754944e-38, %v886_v11 }
  0xce   : > { %v5413_v2 = vmul.f32 %v858_v57, %v5351_v37  ;;  %v891_v6 = vmul.f32 %v4992_v3, %v5394_v48  ;;  %v879_v7 = vadd.f32 %v4990_v52, %v878_v4  ;;  %v872_v9 = vor.u32 1.1754944e-38, %v871_v13  ;;  %v4648_v57 = vld [vmem:[%s8348_s1 + $0x1] ss:$8 sm:$0xf] }
  0xcf   : > { %v868_v28 = vsel %vm867_vm7, %v5389_v46, %v864_v10  ;;  %vm885_vm8 = vcmp.eq.f32.partialorder %v884_v14, 8.507059e+37  ;;  %vm870_vm9 = vcmp.eq.f32.partialorder %v869_v15, 8.507059e+37  ;;  %vm896_vm10 = vweird.f32 %v4992_v3 }
  0xd0   : > { %995 = vrot.lane.b32.xlu2 %v5409_v1, %s5206_s17  ;;  %999 = vrot.lane.b32.xlu0 %v5413_v2, %s5206_s17  ;;  %v4994_v34 = vpop.eup %4993  ;;  %v892_v37 = vsub.f32 1.0, %v891_v6  ;;  %v883_v23 = vsel %vm882_vm6, %v4990_v52, %v879_v7  ;;  %v873_v32 = vsel %vm870_vm9, %v872_v9, %v868_v28  ;;  %v901_v36 = vand.u32 2147483648, %v5394_v48 }
  0xd1   : > { %940 = vrot.lane.b32.xlu1 %v5387_v43, %s5207_s18  ;;  %v906_v12 = vmul.f32 %v4994_v34, %v5405_v55  ;;  %v888_v8 = vsel %vm885_vm8, %v887_v30, %v883_v23  ;;  %vm911_vm11 = vweird.f32 %v4994_v34  ;;  %vm895_vm12 = vweird.f32 %v5394_v48 }
  0xd2   : > { %v893_v26 = vmul.f32 %v4992_v3, %v892_v37  ;;  %v5441_v40 = vmul.f32 %v888_v8, %v5356_v41  ;;  %v899_v42 = vand.u32 2147483647, %v5394_v48  ;;  %v916_v44 = vand.u32 2147483648, %v5405_v55  ;;  %vm897_vm13 = vmor %vm895_vm12, %vm896_vm10 }
  0xd3   : > { %v907_v16 = vsub.f32 1.0, %v906_v12  ;;  %v5447_v45 = vmul.f32 %v873_v32, %v5353_v38  ;;  %vm910_vm14 = vweird.f32 %v5405_v55  ;;  %v914_v46 = vand.u32 2147483647, %v5405_v55 }
  0xd4   : > { %v894_v33 = vadd.f32 %v4992_v3, %v893_v26  ;;  %vm912_vm15 = vmor %vm910_vm14, %vm911_vm11  ;;  %v902_v41 = vor.u32 1.1754944e-38, %v901_v36  ;;  %vm900_vm1 = vcmp.eq.f32.partialorder %v899_v42, 8.507059e+37  ;;  %v917_v38 = vor.u32 1.1754944e-38, %v916_v44 }
  0xd5   : > { %v908_v31 = vmul.f32 %v4994_v34, %v907_v16  ;;  %vm915_vm2 = vcmp.eq.f32.partialorder %v914_v46, 8.507059e+37  ;;  %v952_v60 = vlaneseq  ;;  %v5566_v4 = vperm.slane %v4648_v57, 1 }
  0xd6   : > { %v898_v47 = vsel %vm897_vm13, %v4992_v3, %v894_v33  ;;  %v5562_v3 = vld [vmem:[%s8348_s1] ss:$8 sm:$0xf]  ;;  %v5568_v5 = vperm.slane %v4648_v57, 2  ;;  %v5604_v32 = vperm.slane %v4648_v57, 0  ;;  %v5615_v42 = vperm.slane %v4648_v57, 3 }
  0xd7   : > { %v909_v39 = vadd.f32 %v4994_v34, %v908_v31  ;;  %v903_v48 = vsel %vm900_vm1, %v902_v41, %v898_v47  ;;  %v5547_v61 = vand.u32 127, %v952_v60  ;;  %8468 = vst [vmem:[#allocation14_spill] sm:$0xff] %v5566_v4  ;;  %v5576_v7 = vperm.slane %v5562_v3, 1 }
  0xd8   : > { %948 = vrot.lane.b32.xlu2 %v5413_v2, %s5207_s18  ;;  %944 = vrot.lane.b32.xlu0 %v5409_v1, %s5207_s18  ;;  %v5458_v29 = vmul.f32 %v903_v48, %v5361_v50  ;;  %8469 = vst [vmem:[#allocation15_spill] sm:$0xff] %v5568_v5 }
  0xd9   : > { %936 = vrot.lane.b32.xlu1 %v5382_v35, %s5207_s18  ;;  %v913_v27 = vsel %vm912_vm15, %v4994_v34, %v909_v39  ;;  %8467 = vst [vmem:[#allocation13_spill] sm:$0xff] %v5547_v61  ;;  %vm8458_vm3 = vcmp.lt.s32.totalorder %v5547_v61, 16  ;;  %vm954_vm4 = vcmp.lt.s32.totalorder %v5547_v61, 17  ;;  %v4912_v39 = vld [vmem:[%s8353_s6 + $0x8] sm:$0xff]  ;;  %vm1182_vm5 = vcmp.lt.s32.totalorder %v5547_v61, 15 }
  0xda   : > { %v918_v49 = vsel %vm915_vm2, %v917_v38, %v913_v27  ;;  %8470 = vst [vmem:[#allocation16_spill] sm:$0xff] %v5576_v7  ;;  %vm8457_vm6 = vcmp.lt.s32.totalorder %v5547_v61, 1  ;;  %vm8456_vm7 = vcmp.lt.s32.totalorder %v5547_v61, 127  ;;  %vm8434_vm8 = vcmp.lt.s32.totalorder %v5547_v61, 113 }
  0xdb   : > { %v5461_v51 = vmul.f32 %v918_v49, %v5363_v53  ;;  %8471 = vst [vmem:[#allocation17_spill] sm:$0xff] %v5604_v32  ;;  %vm8433_vm9 = vcmp.lt.s32.totalorder %v5547_v61, 112  ;;  %vm8432_vm10 = vcmp.lt.s32.totalorder %v5547_v61, 111 }
  0xdc   : > { %8472 = vst [vmem:[#allocation18_spill] sm:$0xff] %v5615_v42 }
  0xe0   : > { %942 = vrot.lane.b32.xlu2 %v5441_v40, %s5207_s18  ;;  %989 = vrot.lane.b32.xlu0 %v5447_v45, %s5206_s17 }
  0xe1   : > { %993 = vrot.lane.b32.xlu1 %v5441_v40, %s5206_s17 }
  0xe8   : > { %997 = vrot.lane.b32.xlu2 %v5458_v29, %s5206_s17  ;;  %1170 = vrot.lane.b32.xlu0 %v5387_v43, %s5208_s19 }
  0xe9   : > { %1001 = vrot.lane.b32.xlu1 %v5461_v51, %s5206_s17 }
  0xf0   : > { %938 = vrot.lane.b32.xlu2 %v5447_v45, %s5207_s18  ;;  %1166 = vrot.lane.b32.xlu0 %v5382_v35, %s5208_s19 }
  0xf1   : > { %1172 = vrot.lane.b32.xlu1 %v5441_v40, %s5208_s19 }
  0xf8   : > { %1174 = vrot.lane.b32.xlu2 %v5409_v1, %s5208_s19  ;;  %950 = vrot.lane.b32.xlu0 %v5461_v51, %s5207_s18 }
  0xf9   : > { %946 = vrot.lane.b32.xlu1 %v5458_v29, %s5207_s18 }
 0x100   : > { %1293 = vrot.lane.b32.xlu2 %v5387_v43, %s5209_s20  ;;  %1176 = vrot.lane.b32.xlu0 %v5458_v29, %s5208_s19 }
 0x101   : > { %1178 = vrot.lane.b32.xlu1 %v5413_v2, %s5208_s19 }
 0x108   : > { %1180 = vrot.lane.b32.xlu2 %v5461_v51, %s5208_s19  ;;  %1295 = vrot.lane.b32.xlu0 %v5441_v40, %s5209_s20 }
 0x109   : > { %1168 = vrot.lane.b32.xlu1 %v5447_v45, %s5208_s19 }
 0x110   : > { %1289 = vrot.lane.b32.xlu2 %v5382_v35, %s5209_s20  ;;  %1301 = vrot.lane.b32.xlu0 %v5413_v2, %s5209_s20 }
 0x111   : > { %1297 = vrot.lane.b32.xlu1 %v5409_v1, %s5209_s20 }
 0x118   : > { %1299 = vrot.lane.b32.xlu2 %v5458_v29, %s5209_s20  ;;  %1291 = vrot.lane.b32.xlu0 %v5447_v45, %s5209_s20 }
 0x119   : > { %1303 = vrot.lane.b32.xlu1 %v5461_v51, %s5209_s20 }
 0x120   : > { %1491 = vrot.lane.b32.xlu2 %v5382_v35, %s5210_s21  ;;  %1503 = vrot.lane.b32.xlu0 %v5413_v2, %s5210_s21 }
 0x121   : > { %1499 = vrot.lane.b32.xlu1 %v5409_v1, %s5210_s21 }
 0x122   : > { %v988_v50 = vpop.permute.xlu2 %987 }
 0x128   : > { %1497 = vrot.lane.b32.xlu2 %v5441_v40, %s5210_s21  ;;  %1493 = vrot.lane.b32.xlu0 %v5447_v45, %s5210_s21 }
 0x129   : > { %1495 = vrot.lane.b32.xlu1 %v5387_v43, %s5210_s21 }
 0x12a   : > { %v996_v53 = vpop.permute.xlu2 %995 }
 0x130   : > { %1626 = vrot.lane.b32.xlu2 %v5413_v2, %s5211_s22  ;;  %1622 = vrot.lane.b32.xlu0 %v5409_v1, %s5211_s22 }
 0x131   : > { %1614 = vrot.lane.b32.xlu1 %v5382_v35, %s5211_s22 }
 0x132   : > { %v5523_v52 = vpop.permute.xlu2 %948 }
 0x138   : > { %1501 = vrot.lane.b32.xlu2 %v5458_v29, %s5210_s21  ;;  %1618 = vrot.lane.b32.xlu0 %v5387_v43, %s5211_s22 }
 0x139   : > { %1505 = vrot.lane.b32.xlu1 %v5461_v51, %s5210_s21 }
 0x13a   : > { %v5531_v54 = vpop.permute.xlu2 %942 }
 0x13b   : > { %v992_v55 = vpop.permute.xlu1 %991 }
 0x13c   : > { %v1006_v6 = vsel %vm8458_vm3, %v992_v55, %v996_v53  ;;  %v1008_v34 = vsel %vm8458_vm3, %v988_v50, %v992_v55 }
 0x13d   : > { %v1024_v16 = vmul.f32 %v5566_v4, %v1008_v34  ;;  %v1025_v23 = vmul.f32 %v5568_v5, %v1006_v6  ;;  %v5648_v6 = vperm.slane %v5562_v3, 2  ;;  %v5651_v34 = vperm.slane %v5562_v3, 3 }
 0x13f   : > { %8473 = vst [vmem:[#allocation19_spill] sm:$0xff] %v5648_v6 }
 0x140   : > { %1616 = vrot.lane.b32.xlu2 %v5447_v45, %s5211_s22  ;;  %1628 = vrot.lane.b32.xlu0 %v5461_v51, %s5211_s22  ;;  %8474 = vst [vmem:[#allocation20_spill] sm:$0xff] %v5651_v34 }
 0x141   : > { %1620 = vrot.lane.b32.xlu1 %v5441_v40, %s5211_s22 }
 0x142   : > { %v998_v56 = vpop.permute.xlu2 %997  ;;  %v1000_v58 = vpop.permute.xlu0 %999 }
 0x143   : > { %v5539_v59 = vpop.permute.xlu1 %940  ;;  %v1010_v33 = vsel %vm8458_vm3, %v1000_v58, %v988_v50  ;;  %v1004_v44 = vsel %vm8458_vm3, %v996_v53, %v1000_v58 }
 0x144   : > { %v1023_v48 = vmul.f32 %v5604_v32, %v1010_v33  ;;  %v1026_v50 = vmul.f32 %v5615_v42, %v1004_v44 }
 0x148   : > { %1745 = vrot.lane.b32.xlu2 %v5409_v1, %s5212_s23  ;;  %1737 = vrot.lane.b32.xlu0 %v5382_v35, %s5212_s23 }
 0x149   : > { %1624 = vrot.lane.b32.xlu1 %v5458_v29, %s5211_s22 }
 0x14a   : > { %v5549_v62 = vpop.permute.xlu2 %938  ;;  %v5551_v63 = vpop.permute.xlu0 %944 }
 0x14b   : > { %v5553_v0 = vpop.permute.xlu1 %936  ;;  %v960_v10 = vsel %vm954_vm4, %v5549_v62, %v5531_v54 }
 0x14c   : > { %v959_v37 = vsel %vm954_vm4, %v5553_v0, %v5539_v59  ;;  %v978_v28 = vmul.f32 %v5576_v7, %v960_v10  ;;  %v955_v10 = vsel %vm954_vm4, %v5551_v63, %v5523_v52 }
 0x14d   : > { %v974_v26 = vmul.f32 %v5576_v7, %v959_v37  ;;  %v957_v37 = vsel %vm954_vm4, %v5539_v59, %v5551_v63  ;;  %v4911_v59 = vld [vmem:[%s8353_s6] sm:$0xff] }
 0x14e   : > { %v975_v63 = vmul.f32 %v5648_v6, %v957_v37 }
 0x14f   : > { %v982_v36 = vpack.c.bf16 %v978_v28, %v974_v26 }
 0x150   : > { %1741 = vrot.lane.b32.xlu2 %v5387_v43, %s5212_s23  ;;  %1747 = vrot.lane.b32.xlu0 %v5458_v29, %s5212_s23 }
 0x151   : > { %1749 = vrot.lane.b32.xlu1 %v5413_v2, %s5212_s23 }
 0x152   : > { %v5590_v11 = vpop.permute.xlu2 %1174  ;;  %v990_v12 = vpop.permute.xlu0 %989 }
 0x153   : > { %v994_v13 = vpop.permute.xlu1 %993 }
 0x154   : > { %v1007_v14 = vsel %vm8458_vm3, %v994_v13, %v998_v56  ;;  %v1009_v15 = vsel %vm8458_vm3, %v990_v12, %v994_v13  ;;  %v961_v13 = vsel %vm954_vm4, %v5523_v52, %v5553_v0 }
 0x155   : > { %v1028_v30 = vmul.f32 %v5566_v4, %v1009_v15  ;;  %v1029_v31 = vmul.f32 %v5568_v5, %v1007_v14 }
 0x157   : > { %v1032_v9 = vpack.c.bf16 %v1028_v30, %v1024_v16  ;;  %v1033_v8 = vpack.c.bf16 %v1029_v31, %v1025_v23  ;;  %v976_v16 = vmul.f32 %v5651_v34, %v955_v10 }
 0x158   : > { %1751 = vrot.lane.b32.xlu2 %v5461_v51, %s5212_s23  ;;  %1743 = vrot.lane.b32.xlu0 %v5441_v40, %s5212_s23 }
 0x159   : > { %1739 = vrot.lane.b32.xlu1 %v5447_v45, %s5212_s23  ;;  %1067 = vmatpush.bf16.msrb.mxu1 %v1032_v9  ;;  %v1983_v9 = vld [vmem:[%s8354_s7] sm:$0xff] }
 0x15a   : > { %1081 = vmatpush.bf16.msrb.mxu2 %v1033_v8  ;;  %v5619_v46 = vpop.permute.xlu2 %1293  ;;  %v5621_v47 = vpop.permute.xlu0 %1170 }
 0x15b   : > { %v1002_v41 = vpop.permute.xlu1 %1001  ;;  %v1185_v44 = vsel %vm1182_vm5, %v5621_v47, %v5590_v11 }
 0x15c   : > { %v1005_v27 = vsel %vm8458_vm3, %v998_v56, %v1002_v41  ;;  %v1011_v38 = vsel %vm8458_vm3, %v1002_v41, %v990_v12  ;;  %4656 = vmatmul.msk.bf16.vlgmr.msrb.gmra.mxu1 %vm533_vm0, %v4912_v39  ;;  %v5664_v12 = vperm.slane %v5562_v3, 0 }
 0x15d   : > { %1131 = vmatpush.bf16.msra.mxu1 %v982_v36  ;;  %v1027_v49 = vmul.f32 %v5604_v32, %v1011_v38  ;;  %v1030_v53 = vmul.f32 %v5615_v42, %v1005_v27  ;;  %4657 = vmatmul.msk.bf16.vlgmr.msrb.gmra.mxu2 %vm533_vm0, %v4912_v39 }
 0x15e   : > { %8475 = vst [vmem:[#allocation21_spill] sm:$0xff] %v5664_v12  ;;  %v973_v52 = vmul.f32 %v5664_v12, %v961_v13 }
 0x15f   : > { %v1031_v55 = vpack.c.bf16 %v1027_v49, %v1023_v48  ;;  %v1034_v58 = vpack.c.bf16 %v1030_v53, %v1026_v50 }
 0x160   : > { %1860 = vrot.lane.b32.xlu2 %v5382_v35, %s5213_s16  ;;  %1872 = vrot.lane.b32.xlu0 %v5413_v2, %s5213_s16 }
 0x161   : > { %1868 = vrot.lane.b32.xlu1 %v5409_v1, %s5213_s16  ;;  %1053 = vmatpush.bf16.msrb.mxu0 %v1031_v55 }
 0x162   : > { %1095 = vmatpush.bf16.msrb.mxu3 %v1034_v58  ;;  %v5639_v56 = vpop.permute.xlu2 %1180  ;;  %v5641_v60 = vpop.permute.xlu0 %1166 }
 0x163   : > { %v5643_v57 = vpop.permute.xlu1 %1172 }
 0x164   : > { %4655 = vmatmul.msk.bf16.vlgmr.msrb.gmra.mxu0 %vm533_vm0, %v4912_v39 }
 0x165   : > { %4658 = vmatmul.msk.bf16.vlgmr.msrb.gmra.mxu3 %vm533_vm0, %v4912_v39 }
 0x168   : > { %1870 = vrot.lane.b32.xlu2 %v5458_v29, %s5213_s16  ;;  %1862 = vrot.lane.b32.xlu0 %v5447_v45, %s5213_s16 }
 0x169   : > { %1874 = vrot.lane.b32.xlu1 %v5461_v51, %s5213_s16 }
 0x16a   : > { %v5677_v14 = vpop.permute.xlu2 %1289  ;;  %v951_v3 = vpop.permute.xlu0 %950 }
 0x16b   : > { %v947_v15 = vpop.permute.xlu1 %946  ;;  %v962_v23 = vsel %vm954_vm4, %v951_v3, %v5549_v62  ;;  %v4667_v62 = vld [vmem:[%s8348_s1 + $0x2] ss:$8 sm:$0xf] }
 0x16c   : > { %v956_v26 = vsel %vm954_vm4, %v947_v15, %v951_v3  ;;  %v958_v28 = vsel %vm954_vm4, %v5531_v54, %v947_v15  ;;  %v977_v0 = vmul.f32 %v5664_v12, %v962_v23  ;;  %4664 = vmatmul.msk.bf16.vlgmr.msra.gmra.mxu1 %vm533_vm0, %v4911_v59  ;;  %v5703_v36 = vperm.slane %v4667_v62, 2 }
 0x16d   : > { %v979_v30 = vmul.f32 %v5648_v6, %v958_v28  ;;  %v980_v31 = vmul.f32 %v5651_v34, %v956_v26  ;;  %v5705_v39 = vperm.slane %v4667_v62, 3  ;;  %v5733_v3 = vperm.slane %v4667_v62, 0 }
 0x16e   : > { %v981_v54 = vpack.c.bf16 %v977_v0, %v973_v52  ;;  %8476 = vst [vmem:[#allocation22_spill] sm:$0xff] %v5703_v36  ;;  %v1204_v53 = vmul.f32 %v5703_v36, %v1185_v44 }
 0x16f   : > { %v983_v8 = vpack.c.bf16 %v979_v30, %v975_v63  ;;  %v984_v33 = vpack.c.bf16 %v980_v31, %v976_v16  ;;  %8477 = vst [vmem:[#allocation23_spill] sm:$0xff] %v5705_v39  ;;  %v5731_v63 = vperm.slane %v4667_v62, 1  ;;  %v4678_v62 = vld [vmem:[%s8348_s1 + $0x3] ss:$8 sm:$0xf] }
 0x170   : > { %1866 = vrot.lane.b32.xlu2 %v5441_v40, %s5213_s16  ;;  %1987 = vperm.xlu0 %4960, %v1983_v9   ;;  %8479 = vst [vmem:[#allocation25_spill] sm:$0xff] %v5733_v3 }
 0x171   : > { %1117 = vmatpush.bf16.msra.mxu0 %v981_v54  ;;  %1864 = vrot.lane.b32.xlu1 %v5387_v43, %s5213_s16  ;;  %8478 = vst [vmem:[#allocation24_spill] sm:$0xff] %v5731_v63 }
 0x172   : > { %1145 = vmatpush.bf16.msra.mxu2 %v983_v8  ;;  %v5713_v41 = vpop.permute.xlu2 %1299  ;;  %v1177_v27 = vpop.permute.xlu0 %1176  ;;  %1159 = vmatpush.bf16.msra.mxu3 %v984_v33 }
 0x173   : > { %v1179_v38 = vpop.permute.xlu1 %1178  ;;  %v1184_v48 = vsel %vm1182_vm5, %v1177_v27, %v5639_v56  ;;  %v1186_v49 = vsel %vm1182_vm5, %v5643_v57, %v1177_v27 }
 0x174   : > { %v1183_v50 = vsel %vm1182_vm5, %v5590_v11, %v1179_v38  ;;  %v1208_v55 = vmul.f32 %v5703_v36, %v1186_v49  ;;  %v1209_v58 = vmul.f32 %v5705_v39, %v1184_v48  ;;  %4663 = vmatmul.msk.bf16.vlgmr.msra.gmra.mxu0 %vm533_vm0, %v4911_v59  ;;  %v1187_v11 = vsel %vm1182_vm5, %v5641_v60, %v5621_v47 }
 0x175   : > { %v1205_v37 = vmul.f32 %v5705_v39, %v1183_v50  ;;  %4665 = vmatmul.msk.bf16.vlgmr.msra.gmra.mxu2 %vm533_vm0, %v4911_v59  ;;  %4666 = vmatmul.msk.bf16.vlgmr.msra.gmra.mxu3 %vm533_vm0, %v4911_v59  ;;  %v1189_v15 = vsel %vm1182_vm5, %v1179_v38, %v5641_v60  ;;  %v1203_v52 = vmul.f32 %v5731_v63, %v1187_v11  ;;  %v5775_v48 = vperm.slane %v4678_v62, 1 }
 0x176   : > { %v1212_v10 = vpack.c.bf16 %v1208_v55, %v1204_v53  ;;  %v1202_v47 = vmul.f32 %v5733_v3, %v1189_v15  ;;  %v1310_v50 = vsel %vm8457_vm6, %v5677_v14, %v5619_v46  ;;  %v5781_v53 = vperm.slane %v4678_v62, 0 }
 0x177   : > { %v1213_v13 = vpack.c.bf16 %v1209_v58, %v1205_v37  ;;  %8481 = vst [vmem:[#allocation27_spill] sm:$0xff] %v5775_v48  ;;  %v5785_v55 = vpack.c.bf16 %v5458_v29, %v5409_v1  ;;  %v5790_v37 = vperm.slane %v4678_v62, 3 }
 0x178   : > { %1260 = vmatpush.bf16.msrb.mxu2 %v1212_v10  ;;  %8482 = vst [vmem:[#allocation28_spill] sm:$0xff] %v5781_v53 }
 0x179   : > { %1274 = vmatpush.bf16.msrb.mxu3 %v1213_v13  ;;  %8483 = vst [vmem:[#allocation29_spill] sm:$0xff] %v5785_v55 }
 0x17a   : > { %v5742_v16 = vpop.permute.xlu2 %1491  ;;  %v1296_v59 = vpop.permute.xlu0 %1295  ;;  %8484 = vst [vmem:[#allocation30_spill] sm:$0xff] %v5790_v37 }
 0x17b   : > { %v1169_v23 = vpop.permute.xlu1 %1168  ;;  %v1309_v9 = vsel %vm8457_vm6, %v1296_v59, %v5713_v41 }
 0x17c   : > { %v1188_v26 = vsel %vm1182_vm5, %v1169_v23, %v5643_v57  ;;  %v1190_v28 = vsel %vm1182_vm5, %v5639_v56, %v1169_v23  ;;  %v4913_v57 = vld [vmem:[%s8353_s6 + $0x10] sm:$0xff]  ;;  %v5761_v56 = vperm.slane %v4678_v62, 2  ;;  %v5823_v62 = vpack.c.bf16 %v5461_v51, %v5413_v2 }
 0x17d   : > { %v1206_v0 = vmul.f32 %v5733_v3, %v1190_v28  ;;  %v1207_v60 = vmul.f32 %v5731_v63, %v1188_v26  ;;  %v4699_v2 = vld [vmem:[%s8348_s1 + $0x4] ss:$8 sm:$0xf] }
 0x17e   : > { %8480 = vst [vmem:[#allocation26_spill] sm:$0xff] %v5761_v56  ;;  %v1331_v27 = vmul.f32 %v5761_v56, %v1309_v9 }
 0x17f   : > { %v1210_v30 = vpack.c.bf16 %v1206_v0, %v1202_v47  ;;  %v1211_v31 = vpack.c.bf16 %v1207_v60, %v1203_v52  ;;  %8487 = vst [vmem:[#allocation33_spill] sm:$0xff] %v5823_v62 }
 0x181   : > { %1232 = vmatpush.bf16.msrb.mxu0 %v1210_v30  ;;  %1246 = vmatpush.bf16.msrb.mxu1 %v1211_v31  ;;  %v5812_v30 = vpack.c.bf16 %v5441_v40, %v5387_v43  ;;  %v5819_v31 = vpack.c.bf16 %v5447_v45, %v5382_v35  ;;  %v5836_v40 = vperm.slane %v4699_v2, 1  ;;  %v5838_v45 = vperm.slane %v4699_v2, 0 }
 0x182   : > { %v1498_v54 = vpop.permute.xlu2 %1497  ;;  %v1302_v8 = vpop.permute.xlu0 %1301 }
 0x183   : > { %v1298_v33 = vpop.permute.xlu1 %1297  ;;  %v1312_v58 = vsel %vm8457_vm6, %v1302_v8, %v5677_v14  ;;  %8485 = vst [vmem:[#allocation31_spill] sm:$0xff] %v5812_v30 }
 0x184   : > { %v1308_v44 = vsel %vm8457_vm6, %v5619_v46, %v1298_v33  ;;  %4675 = vmatmul.msk.bf16.vlgmr.msrb.gmra.mxu1 %vm533_vm0, %v4913_v57  ;;  %4674 = vmatmul.msk.bf16.vlgmr.msrb.gmra.mxu0 %vm533_vm0, %v4913_v57  ;;  %v1306_v10 = vsel %vm8457_vm6, %v1298_v33, %v1302_v8  ;;  %v1326_v46 = vmul.f32 %v5775_v48, %v1310_v50 }
 0x185   : > { %v1327_v38 = vmul.f32 %v5761_v56, %v1308_v44  ;;  %4676 = vmatmul.msk.bf16.vlgmr.msrb.gmra.mxu2 %vm533_vm0, %v4913_v57  ;;  %4677 = vmatmul.msk.bf16.vlgmr.msrb.gmra.mxu3 %vm533_vm0, %v4913_v57  ;;  %v1325_v15 = vmul.f32 %v5781_v53, %v1312_v58  ;;  %v1328_v23 = vmul.f32 %v5790_v37, %v1306_v10 }
 0x186   : > { %8486 = vst [vmem:[#allocation32_spill] sm:$0xff] %v5819_v31 }
 0x187   : > { %v1335_v49 = vpack.c.bf16 %v1331_v27, %v1327_v38  ;;  %8488 = vst [vmem:[#allocation34_spill] sm:$0xff] %v5836_v40 }
 0x188   : > { %8489 = vst [vmem:[#allocation35_spill] sm:$0xff] %v5838_v45 }
 0x189   : > { %1383 = vmatpush.bf16.msra.mxu2 %v1335_v49 }
 0x18a   : > { %v1292_v13 = vpop.permute.xlu0 %1291  ;;  %v5808_v47 = vpop.permute.xlu2 %1626 }
 0x18b   : > { %v1304_v11 = vpop.permute.xlu1 %1303  ;;  %v1311_v1 = vsel %vm8457_vm6, %v1292_v13, %v1296_v59 }
 0x18c   : > { %v1307_v29 = vsel %vm8457_vm6, %v5713_v41, %v1304_v11  ;;  %v1313_v14 = vsel %vm8457_vm6, %v1304_v11, %v1292_v13  ;;  %v1330_v26 = vmul.f32 %v5775_v48, %v1311_v1  ;;  %v4914_v41 = vld [vmem:[%s8353_s6 + $0x18] sm:$0xff]  ;;  %v5860_v1 = vperm.slane %v4699_v2, 3 }
 0x18d   : > { %1462 = vmatpush.bf16.msrb.mxu2 %v5785_v55  ;;  %v1329_v28 = vmul.f32 %v5781_v53, %v1313_v14  ;;  %v1332_v52 = vmul.f32 %v5790_v37, %v1307_v29  ;;  %v5862_v29 = vperm.slane %v4699_v2, 2 }
 0x18e   : > { %v1334_v0 = vpack.c.bf16 %v1330_v26, %v1326_v46  ;;  %8490 = vst [vmem:[#allocation36_spill] sm:$0xff] %v5860_v1 }
 0x18f   : > { %v1333_v60 = vpack.c.bf16 %v1329_v28, %v1325_v15  ;;  %v1336_v59 = vpack.c.bf16 %v1332_v52, %v1328_v23  ;;  %8491 = vst [vmem:[#allocation37_spill] sm:$0xff] %v5862_v29 }
 0x190   : > { %1369 = vmatpush.bf16.msra.mxu1 %v1334_v0 }
 0x191   : > { %1355 = vmatpush.bf16.msra.mxu0 %v1333_v60  ;;  %1397 = vmatpush.bf16.msra.mxu3 %v1336_v59 }
 0x192   : > { %v1504_v57 = vpop.permute.xlu0 %1503  ;;  %v1502_v35 = vpop.permute.xlu2 %1501 }
 0x193   : > { %v1500_v43 = vpop.permute.xlu1 %1499  ;;  %v1511_v51 = vsel %vm8456_vm7, %v1498_v54, %v1502_v35  ;;  %v1514_v14 = vsel %vm8456_vm7, %v1504_v57, %v5742_v16 }
 0x194   : > { %1448 = vmatpush.bf16.msrb.mxu1 %v5812_v30  ;;  %4685 = vmatmul.msk.bf16.vlgmr.msra.gmra.mxu0 %vm533_vm0, %v4914_v41  ;;  %v1532_v38 = vmul.f32 %v5836_v40, %v1511_v51  ;;  %v1508_v23 = vsel %vm8456_vm7, %v1500_v43, %v1504_v57  ;;  %v1530_v59 = vmul.f32 %v5860_v1, %v1514_v14 }
 0x195   : > { %1434 = vmatpush.bf16.msrb.mxu0 %v5819_v31  ;;  %1476 = vmatpush.bf16.msrb.mxu3 %v5823_v62 }
 0x196   : > { %4686 = vmatmul.msk.bf16.vlgmr.msra.gmra.mxu1 %vm533_vm0, %v4914_v41  ;;  %4687 = vmatmul.msk.bf16.vlgmr.msra.gmra.mxu2 %vm533_vm0, %v4914_v41 }
 0x197   : > { %4688 = vmatmul.msk.bf16.vlgmr.msra.gmra.mxu3 %vm533_vm0, %v4914_v41  ;;  %v1529_v41 = vmul.f32 %v5862_v29, %v1508_v23 }
 0x19a   : > { %v1494_v9 = vpop.permute.xlu0 %1493  ;;  %v1617_v13 = vpop.permute.xlu2 %1616 }
 0x19b   : > { %v1496_v8 = vpop.permute.xlu1 %1495  ;;  %v1513_v33 = vsel %vm8456_vm7, %v1494_v9, %v1498_v54  ;;  %v4915_v54 = vld [vmem:[%s8353_s6 + $0x20] sm:$0xff] }
 0x19c   : > { %v1510_v44 = vsel %vm8456_vm7, %v1496_v8, %v1500_v43  ;;  %v1512_v27 = vsel %vm8456_vm7, %v5742_v16, %v1496_v8  ;;  %v1531_v49 = vmul.f32 %v5838_v45, %v1513_v33  ;;  %v4710_v43 = vld [vmem:[%s8348_s1 + $0x5] ss:$8 sm:$0xf] }
 0x19d   : > { %v1527_v50 = vmul.f32 %v5838_v45, %v1512_v27  ;;  %v1528_v58 = vmul.f32 %v5836_v40, %v1510_v44  ;;  %v5888_v8 = vperm.slane %v4710_v43, 0 }
 0x19f   : > { %v1535_v10 = vpack.c.bf16 %v1531_v49, %v1527_v50  ;;  %v1536_v46 = vpack.c.bf16 %v1532_v38, %v1528_v58  ;;  %8493 = vst [vmem:[#allocation39_spill] sm:$0xff] %v5888_v8 }
 0x1a1   : > { %1557 = vmatpush.bf16.msra.mxu0 %v1535_v10  ;;  %1571 = vmatpush.bf16.msra.mxu1 %v1536_v46 }
 0x1a2   : > { %v1623_v11 = vpop.permute.xlu0 %1622  ;;  %v5869_v52 = vpop.permute.xlu2 %1745 }
 0x1a3   : > { %v1615_v15 = vpop.permute.xlu1 %1614 }
 0x1a4   : > { %4695 = vmatmul.msk.bf16.vlgmr.msrb.gmra.mxu0 %vm533_vm0, %v4915_v54  ;;  %v1637_v33 = vsel %vm8434_vm8, %v5808_v47, %v1615_v15 }
 0x1a6   : > { %4696 = vmatmul.msk.bf16.vlgmr.msrb.gmra.mxu1 %vm533_vm0, %v4915_v54  ;;  %4697 = vmatmul.msk.bf16.vlgmr.msrb.gmra.mxu2 %vm533_vm0, %v4915_v54 }
 0x1a7   : > { %4698 = vmatmul.msk.bf16.vlgmr.msrb.gmra.mxu3 %vm533_vm0, %v4915_v54 }
 0x1aa   : > { %v1619_v26 = vpop.permute.xlu0 %1618 }
 0x1ab   : > { %v1506_v28 = vpop.permute.xlu1 %1505  ;;  %v1635_v44 = vsel %vm8434_vm8, %v1615_v15, %v1619_v26  ;;  %v1742_v15 = vpop.permute.xlu2 %1741 }
 0x1ac   : > { %v1509_v0 = vsel %vm8456_vm7, %v1502_v35, %v1506_v28  ;;  %v1515_v60 = vsel %vm8456_vm7, %v1506_v28, %v1494_v9  ;;  %v4916_v35 = vld [vmem:[%s8353_s6 + $0x28] sm:$0xff]  ;;  %v5886_v9 = vperm.slane %v4710_v43, 3  ;;  %v1650_v10 = vmul.f32 %v5888_v8, %v1635_v44  ;;  %v4917_v44 = vld [vmem:[%s8353_s6 + $0x30] sm:$0xff] }
 0x1ad   : > { %v1533_v2 = vmul.f32 %v5862_v29, %v1509_v0  ;;  %v1534_v16 = vmul.f32 %v5860_v1, %v1515_v60  ;;  %v5909_v28 = vperm.slane %v4710_v43, 1  ;;  %v1631_v0 = vsel %vm8434_vm8, %v1623_v11, %v5808_v47 }
 0x1ae   : > { %8492 = vst [vmem:[#allocation38_spill] sm:$0xff] %v5886_v9  ;;  %v1653_v58 = vmul.f32 %v5886_v9, %v1637_v33  ;;  %v1633_v60 = vsel %vm8434_vm8, %v1619_v26, %v1623_v11  ;;  %v4721_v11 = vld [vmem:[%s8348_s1 + $0x6] ss:$8 sm:$0xf] }
 0x1af   : > { %v1537_v51 = vpack.c.bf16 %v1533_v2, %v1529_v41  ;;  %v1538_v57 = vpack.c.bf16 %v1534_v16, %v1530_v59  ;;  %8495 = vst [vmem:[#allocation41_spill] sm:$0xff] %v5909_v28 }
 0x1b1   : > { %1585 = vmatpush.bf16.msra.mxu2 %v1537_v51  ;;  %1599 = vmatpush.bf16.msra.mxu3 %v1538_v57  ;;  %v1651_v57 = vmul.f32 %v5909_v28, %v1633_v60 }
 0x1b2   : > { %v1629_v27 = vpop.permute.xlu0 %1628 }
 0x1b3   : > { %v1621_v38 = vpop.permute.xlu1 %1620  ;;  %v1638_v49 = vsel %vm8434_vm8, %v1629_v27, %v1617_v13  ;;  %v1752_v26 = vpop.permute.xlu2 %1751 }
 0x1b4   : > { %v1636_v50 = vsel %vm8434_vm8, %v1617_v13, %v1621_v38  ;;  %v1657_v46 = vmul.f32 %v5886_v9, %v1638_v49  ;;  %4706 = vmatmul.msk.bf16.vlgmr.msra.gmra.mxu0 %vm533_vm0, %v4916_v35  ;;  %v5907_v13 = vperm.slane %v4710_v43, 2 }
 0x1b5   : > { %v1654_v54 = vmul.f32 %v5888_v8, %v1636_v50 }
 0x1b6   : > { %4707 = vmatmul.msk.bf16.vlgmr.msra.gmra.mxu1 %vm533_vm0, %v4916_v35  ;;  %4708 = vmatmul.msk.bf16.vlgmr.msra.gmra.mxu2 %vm533_vm0, %v4916_v35  ;;  %v1661_v14 = vpack.c.bf16 %v1657_v46, %v1653_v58  ;;  %8494 = vst [vmem:[#allocation40_spill] sm:$0xff] %v5907_v13  ;;  %v1652_v51 = vmul.f32 %v5907_v13, %v1631_v0  ;;  %v5949_v0 = vperm.slane %v4721_v11, 0 }
 0x1b7   : > { %4709 = vmatmul.msk.bf16.vlgmr.msra.gmra.mxu3 %vm533_vm0, %v4916_v35  ;;  %v1658_v23 = vpack.c.bf16 %v1654_v54, %v1650_v10  ;;  %v5944_v54 = vperm.slane %v4721_v11, 1 }
 0x1b8   : > { %1722 = vmatpush.bf16.msrb.mxu3 %v1661_v14  ;;  %8498 = vst [vmem:[#allocation44_spill] sm:$0xff] %v5949_v0 }
 0x1b9   : > { %1680 = vmatpush.bf16.msrb.mxu0 %v1658_v23  ;;  %8497 = vst [vmem:[#allocation43_spill] sm:$0xff] %v5944_v54  ;;  %v1756_v23 = vsel %vm8433_vm9, %v1742_v15, %v5869_v52 }
 0x1ba   : > { %v1738_v59 = vpop.permute.xlu0 %1737 }
 0x1bb   : > { %v1625_v41 = vpop.permute.xlu1 %1624  ;;  %v1758_v60 = vsel %vm8433_vm9, %v1738_v59, %v1742_v15 }
 0x1bc   : > { %v1632_v2 = vsel %vm8434_vm8, %v1625_v41, %v1629_v27  ;;  %v1634_v16 = vsel %vm8434_vm8, %v1621_v38, %v1625_v41  ;;  %v5930_v27 = vperm.slane %v4721_v11, 2  ;;  %v5953_v41 = vperm.slane %v4721_v11, 3 }
 0x1bd   : > { %v1655_v43 = vmul.f32 %v5909_v28, %v1634_v16  ;;  %v1656_v35 = vmul.f32 %v5907_v13, %v1632_v2  ;;  %v1861_v2 = vpop.permute.xlu2 %1860 }
 0x1be   : > { %8496 = vst [vmem:[#allocation42_spill] sm:$0xff] %v5930_v27 }
 0x1bf   : > { %v1659_v47 = vpack.c.bf16 %v1655_v43, %v1651_v57  ;;  %v1660_v33 = vpack.c.bf16 %v1656_v35, %v1652_v51  ;;  %8499 = vst [vmem:[#allocation45_spill] sm:$0xff] %v5953_v41  ;;  %v1774_v51 = vmul.f32 %v5944_v54, %v1756_v23  ;;  %v1773_v35 = vmul.f32 %v5949_v0, %v1758_v60 }
 0x1c1   : > { %1694 = vmatpush.bf16.msrb.mxu1 %v1659_v47  ;;  %1708 = vmatpush.bf16.msrb.mxu2 %v1660_v33 }
 0x1c2   : > { %v1748_v38 = vpop.permute.xlu0 %1747 }
 0x1c3   : > { %v1750_v49 = vpop.permute.xlu1 %1749  ;;  %v1755_v50 = vsel %vm8433_vm9, %v1748_v38, %v1752_v26 }
 0x1c4   : > { %v1754_v58 = vsel %vm8433_vm9, %v5869_v52, %v1750_v49  ;;  %v1779_v10 = vmul.f32 %v5930_v27, %v1755_v50  ;;  %4717 = vmatmul.msk.bf16.vlgmr.msrb.gmra.mxu0 %vm533_vm0, %v4917_v44  ;;  %v1760_v16 = vsel %vm8433_vm9, %v1750_v49, %v1738_v59 }
 0x1c5   : > { %v1775_v46 = vmul.f32 %v5930_v27, %v1754_v58  ;;  %v1776_v33 = vmul.f32 %v5953_v41, %v1760_v16 }
 0x1c6   : > { %4718 = vmatmul.msk.bf16.vlgmr.msrb.gmra.mxu1 %vm533_vm0, %v4917_v44  ;;  %4719 = vmatmul.msk.bf16.vlgmr.msrb.gmra.mxu2 %vm533_vm0, %v4917_v44 }
 0x1c7   : > { %4720 = vmatmul.msk.bf16.vlgmr.msrb.gmra.mxu3 %vm533_vm0, %v4917_v44  ;;  %v1783_v14 = vpack.c.bf16 %v1779_v10, %v1775_v46  ;;  %v1871_v46 = vpop.permute.xlu2 %1870 }
 0x1c9   : > { %1831 = vmatpush.bf16.msra.mxu2 %v1783_v14  ;;  %v4732_v14 = vld [vmem:[%s8348_s1 + $0x7] ss:$8 sm:$0xf] }
 0x1ca   : > { %v1744_v57 = vpop.permute.xlu0 %1743  ;;  %v5980_v23 = vperm.slane %v4732_v14, 3  ;;  %v5982_v60 = vperm.slane %v4732_v14, 2 }
 0x1cb   : > { %v1740_v43 = vpop.permute.xlu1 %1739  ;;  %v1757_v52 = vsel %vm8433_vm9, %v1744_v57, %v1748_v38  ;;  %v4918_v38 = vld [vmem:[%s8353_s6 + $0x38] sm:$0xff] }
 0x1cc   : > { %v1759_v47 = vsel %vm8433_vm9, %v1740_v43, %v1744_v57  ;;  %v1761_v15 = vsel %vm8433_vm9, %v1752_v26, %v1740_v43  ;;  %v1778_v11 = vmul.f32 %v5944_v54, %v1757_v52  ;;  %8500 = vst [vmem:[#allocation46_spill] sm:$0xff] %v5980_v23  ;;  %v1984_v52 = vld [vmem:[%s8354_s7 + $0x8] sm:$0xff] }
 0x1cd   : > { %v1777_v59 = vmul.f32 %v5949_v0, %v1759_v47  ;;  %v1780_v44 = vmul.f32 %v5953_v41, %v1761_v15  ;;  %8501 = vst [vmem:[#allocation47_spill] sm:$0xff] %v5982_v60  ;;  %1992 = vperm.xlu1 %4961, %v1984_v52  }
 0x1ce   : > { %v1782_v49 = vpack.c.bf16 %v1778_v11, %v1774_v51 }
 0x1cf   : > { %v1781_v50 = vpack.c.bf16 %v1777_v59, %v1773_v35  ;;  %v1784_v58 = vpack.c.bf16 %v1780_v44, %v1776_v33 }
 0x1d0   : > { %1817 = vmatpush.bf16.msra.mxu1 %v1782_v49  ;;  %v1867_v49 = vpop.permute.xlu2 %1866 }
 0x1d1   : > { %1803 = vmatpush.bf16.msra.mxu0 %v1781_v50  ;;  %1845 = vmatpush.bf16.msra.mxu3 %v1784_v58 }
 0x1d2   : > { %v1873_v10 = vpop.permute.xlu0 %1872 }
 0x1d3   : > { %v1869_v26 = vpop.permute.xlu1 %1868  ;;  %v1883_v16 = vsel %vm8432_vm10, %v1873_v10, %v1861_v2 }
 0x1d4   : > { %4728 = vmatmul.msk.bf16.vlgmr.msra.gmra.mxu0 %vm533_vm0, %v4918_v38  ;;  %v1877_v51 = vsel %vm8432_vm10, %v1869_v26, %v1873_v10  ;;  %v1899_v33 = vmul.f32 %v5980_v23, %v1883_v16  ;;  %v1880_v10 = vsel %vm8432_vm10, %v1867_v49, %v1871_v46 }
 0x1d5   : > { %v1898_v11 = vmul.f32 %v5982_v60, %v1877_v51  ;;  %v4919_v51 = vld [vmem:[%s8353_s6 + $0x40] sm:$0xff] }
 0x1d6   : > { %4729 = vmatmul.msk.bf16.vlgmr.msra.gmra.mxu1 %vm533_vm0, %v4918_v38  ;;  %4730 = vmatmul.msk.bf16.vlgmr.msra.gmra.mxu2 %vm533_vm0, %v4918_v38 }
 0x1d7   : > { %4731 = vmatmul.msk.bf16.vlgmr.msra.gmra.mxu3 %vm533_vm0, %v4918_v38  ;;  %v5999_v38 = vperm.slane %v4732_v14, 1 }
 0x1d9   : > { %v1069_v57 = vpop.f32.mrf.mxu1  ;;  %8502 = vst [vmem:[#allocation48_spill] sm:$0xff] %v5999_v38 }
 0x1da   : > { %v1863_v43 = vpop.permute.xlu0 %1862 }
 0x1db   : > { %v1875_v35 = vpop.permute.xlu1 %1874 }
 0x1dc   : > { %v1878_v47 = vsel %vm8432_vm10, %v1871_v46, %v1875_v35  ;;  %v1884_v15 = vsel %vm8432_vm10, %v1875_v35, %v1863_v43  ;;  %v6003_v35 = vperm.slane %v4732_v14, 0 }
 0x1dd   : > { %v1902_v59 = vmul.f32 %v5982_v60, %v1878_v47  ;;  %v1903_v44 = vmul.f32 %v5980_v23, %v1884_v15  ;;  %v1882_v47 = vsel %vm8432_vm10, %v1863_v43, %v1867_v49 }
 0x1de   : > { %8503 = vst [vmem:[#allocation49_spill] sm:$0xff] %v6003_v35 }
 0x1df   : > { %v1906_v50 = vpack.c.bf16 %v1902_v59, %v1898_v11  ;;  %v1907_v58 = vpack.c.bf16 %v1903_v44, %v1899_v33  ;;  %v1901_v33 = vmul.f32 %v5999_v38, %v1880_v10  ;;  %v1900_v59 = vmul.f32 %v6003_v35, %v1882_v47 }
 0x1e0   : > { %v1083_v14 = vpop.f32.mrf.mxu2 }
 0x1e1   : > { %1954 = vmatpush.bf16.msrb.mxu2 %v1906_v50  ;;  %1968 = vmatpush.bf16.msrb.mxu3 %v1907_v58  ;;  %v1055_v52 = vpop.f32.mrf.mxu0  ;;  %v6005_v16 = vpop.f32.mrf.mxu1 }
 0x1e3   : > { %v1865_v15 = vpop.permute.xlu1 %1864 }
 0x1e4   : > { %v1879_v11 = vsel %vm8432_vm10, %v1865_v15, %v1869_v26  ;;  %v1881_v46 = vsel %vm8432_vm10, %v1861_v2, %v1865_v15 }
 0x1e5   : > { %v1896_v44 = vmul.f32 %v6003_v35, %v1881_v46  ;;  %v1897_v50 = vmul.f32 %v5999_v38, %v1879_v11 }
 0x1e6   : > { %4741 = vmatmul.msk.bf16.vlgmr.msrb.gmra.mxu2 %vm533_vm0, %v4919_v51 }
 0x1e7   : > { %4742 = vmatmul.msk.bf16.vlgmr.msrb.gmra.mxu3 %vm533_vm0, %v4919_v51  ;;  %v1904_v43 = vpack.c.bf16 %v1900_v59, %v1896_v44  ;;  %v1905_v49 = vpack.c.bf16 %v1901_v33, %v1897_v50 }
 0x1e8   : > { %v1097_v58 = vpop.f32.mrf.mxu3  ;;  %v6026_v47 = vpop.f32.mrf.mxu2 }
 0x1e9   : > { %v6022_v10 = vpop.f32.mrf.mxu0  ;;  %v1133_v26 = vpop.f32.mrf.mxu1  ;;  %1926 = vmatpush.bf16.msrb.mxu0 %v1904_v43  ;;  %1940 = vmatpush.bf16.msrb.mxu1 %v1905_v49 }
 0x1ea   : > { %v1134_v2 = vadd.f32 %v1133_v26, %v1069_v57 }
 0x1ec   : > { %4739 = vmatmul.msk.bf16.vlgmr.msrb.gmra.mxu0 %vm533_vm0, %v4919_v51  ;;  %4740 = vmatmul.msk.bf16.vlgmr.msrb.gmra.mxu1 %vm533_vm0, %v4919_v51 }
 0x1f0   : > { %v6028_v15 = vpop.f32.mrf.mxu3 }
 0x1f1   : > { %v1119_v11 = vpop.f32.mrf.mxu0  ;;  %v6030_v33 = vpop.f32.mrf.mxu1 }
 0x1f2   : > { %v1120_v46 = vadd.f32 %v1119_v11, %v1055_v52 }
 0x1f8   : > { %v1147_v30 = vpop.f32.mrf.mxu2  ;;  %v1161_v59 = vpop.f32.mrf.mxu3 }
 0x1f9   : > { %v1148_v44 = vadd.f32 %v1147_v30, %v1083_v14  ;;  %v1162_v50 = vadd.f32 %v1161_v59, %v1097_v58  ;;  %v6032_v31 = vpop.f32.mrf.mxu0 }
 0x200   : > { %v1149_v43 = vpop.f32.mrf.mxu2  ;;  %v1163_v57 = vpop.f32.mrf.mxu3 }
 0x201   : > { %v1234_v49 = vpop.f32.mrf.mxu0  ;;  %v1248_v26 = vpop.f32.mrf.mxu1  ;;  %v1150_v36 = vadd.f32 %v1149_v43, %v6026_v47  ;;  %v1164_v32 = vadd.f32 %v1163_v57, %v6028_v15 }
 0x202   : > { %v1281_v62 = vadd.f32 %v1234_v49, %v1120_v46  ;;  %v1282_v51 = vadd.f32 %v1248_v26, %v1134_v2 }
 0x208   : > { %v1262_v55 = vpop.f32.mrf.mxu2  ;;  %v1276_v22 = vpop.f32.mrf.mxu3 }
 0x209   : > { %v1283_v21 = vadd.f32 %v1262_v55, %v1148_v44  ;;  %v1284_v25 = vadd.f32 %v1276_v22, %v1162_v50  ;;  %v6034_v24 = vpop.f32.mrf.mxu0  ;;  %v6036_v52 = vpop.f32.mrf.mxu1 }
 0x210   : > { %v1264_v11 = vpop.f32.mrf.mxu2  ;;  %v1278_v18 = vpop.f32.mrf.mxu3 }
 0x211   : > { %v1357_v30 = vpop.f32.mrf.mxu0  ;;  %v1287_v34 = vadd.f32 %v1264_v11, %v1150_v36  ;;  %v1288_v42 = vadd.f32 %v1278_v18, %v1164_v32  ;;  %v1988_v36 = vpop.permute.xlu0 %1987 }
 0x212   : > { %v1404_v58 = vadd.f32 %v1357_v30, %v1281_v62 }
 0x213   : > { %v1371_v14 = vpop.f32.mrf.mxu1 }
 0x214   : > { %v1405_v59 = vadd.f32 %v1371_v14, %v1282_v51 }
 0x219   : > { %v1385_v17 = vpop.f32.mrf.mxu2  ;;  %v6038_v46 = vpop.f32.mrf.mxu0 }
 0x21a   : > { %v1399_v20 = vpop.f32.mrf.mxu3  ;;  %v1406_v19 = vadd.f32 %v1385_v17, %v1283_v21 }
 0x21b   : > { %v1407_v54 = vadd.f32 %v1399_v20, %v1284_v25  ;;  %v6040_v2 = vpop.f32.mrf.mxu1 }
 0x221   : > { %v1387_v55 = vpop.f32.mrf.mxu2  ;;  %v1436_v44 = vpop.f32.mrf.mxu0 }
 0x222   : > { %v1401_v22 = vpop.f32.mrf.mxu3  ;;  %v1483_v3 = vadd.f32 %v1436_v44, %v1404_v58 }
 0x223   : > { %v1450_v50 = vpop.f32.mrf.mxu1 }
 0x224   : > { %v1484_v39 = vadd.f32 %v1450_v50, %v1405_v59 }
 0x229   : > { %v1464_v49 = vpop.f32.mrf.mxu2  ;;  %v6044_v38 = vpop.f32.mrf.mxu0 }
 0x22a   : > { %v1478_v26 = vpop.f32.mrf.mxu3  ;;  %v1485_v37 = vadd.f32 %v1464_v49, %v1406_v19  ;;  %v1136_v49 = vadd.f32 %v6030_v33, %v6005_v16 }
 0x22b   : > { %v6042_v0 = vadd.f32 %v1478_v26, %v1407_v54  ;;  %v6046_v62 = vpop.f32.mrf.mxu1 }
 0x22c   : > { %v1286_v18 = vadd.f32 %v6036_v52, %v1136_v49 }
 0x231   : > { %v1466_v51 = vpop.f32.mrf.mxu2  ;;  %v1559_v17 = vpop.f32.mrf.mxu0 }
 0x232   : > { %v1480_v30 = vpop.f32.mrf.mxu3  ;;  %v1606_v4 = vadd.f32 %v1559_v17, %v1483_v3 }
 0x233   : > { %v1573_v20 = vpop.f32.mrf.mxu1 }
 0x234   : > { %v1607_v12 = vadd.f32 %v1573_v20, %v1484_v39 }
 0x239   : > { %v1587_v21 = vpop.f32.mrf.mxu2  ;;  %v6050_v14 = vpop.f32.mrf.mxu0 }
 0x23a   : > { %v6048_v25 = vpop.f32.mrf.mxu3  ;;  %8504 = vst [vmem:[#allocation50_spill] sm:$0xff] %v6050_v14  ;;  %v1608_v7 = vadd.f32 %v1587_v21, %v1485_v37  ;;  %v1411_v14 = vadd.f32 %v1401_v22, %v1288_v42 }
 0x23b   : > { %v6052_v35 = vpop.f32.mrf.mxu1 }
 0x23c   : > { %v1490_v15 = vadd.f32 %v1480_v30, %v1411_v14 }
 0x23f   : > { %v6080_v33 = vpop.permute.xlu1 %1992 }
 0x241   : > { %v1589_v60 = vpop.f32.mrf.mxu2  ;;  %v1682_v27 = vpop.f32.mrf.mxu0 }
 0x242   : > { %v1603_v23 = vpop.f32.mrf.mxu3  ;;  %v1729_v5 = vadd.f32 %v1682_v27, %v1606_v4 }
 0x243   : > { %v1696_v54 = vpop.f32.mrf.mxu1  ;;  %v1613_v42 = vadd.f32 %v1603_v23, %v1490_v15  ;;  %v1609_v23 = vadd.f32 %v6048_v25, %v6042_v0 }
 0x244   : > { %v1730_v61 = vadd.f32 %v1696_v54, %v1607_v12 }
 0x249   : > { %v1710_v26 = vpop.f32.mrf.mxu2  ;;  %v6056_v28 = vpop.f32.mrf.mxu0 }
 0x24a   : > { %v6054_v41 = vpop.f32.mrf.mxu3  ;;  %8505 = vst [vmem:[#allocation51_spill] sm:$0xff] %v6056_v28  ;;  %v1731_v6 = vadd.f32 %v1710_v26, %v1608_v7  ;;  %v1410_v28 = vadd.f32 %v1387_v55, %v1287_v34  ;;  %v1409_v34 = vadd.f32 %v6040_v2, %v1286_v18 }
 0x24b   : > { %v6058_v8 = vpop.f32.mrf.mxu1  ;;  %v1732_v52 = vadd.f32 %v6054_v41, %v1609_v23  ;;  %v1122_v41 = vadd.f32 %v6032_v31, %v6022_v10 }
 0x24c   : > { %v1489_v43 = vadd.f32 %v1466_v51, %v1410_v28 }
 0x24e   : > { %v1612_v32 = vadd.f32 %v1589_v60, %v1489_v43 }
 0x251   : > { %v1712_v9 = vpop.f32.mrf.mxu2  ;;  %v1805_v1 = vpop.f32.mrf.mxu0 }
 0x252   : > { %v1726_v13 = vpop.f32.mrf.mxu3  ;;  %v1852_v58 = vadd.f32 %v1805_v1, %v1729_v5  ;;  %v1735_v12 = vadd.f32 %v1712_v9, %v1612_v32 }
 0x253   : > { %v1819_v45 = vpop.f32.mrf.mxu1 }
 0x254   : > { %v1853_v59 = vadd.f32 %v1819_v45, %v1730_v61  ;;  %v1736_v45 = vadd.f32 %v1726_v13, %v1613_v42 }
 0x259   : > { %v1833_v29 = vpop.f32.mrf.mxu2  ;;  %v6060_v56 = vpop.f32.mrf.mxu0 }
 0x25a   : > { %v1847_v40 = vpop.f32.mrf.mxu3  ;;  %v1854_v19 = vadd.f32 %v1833_v29, %v1731_v6  ;;  %v1488_v29 = vadd.f32 %v6046_v62, %v1409_v34 }
 0x25b   : > { %v1821_v63 = vpop.f32.mrf.mxu1  ;;  %v1855_v22 = vadd.f32 %v1847_v40, %v1732_v52 }
 0x25c   : > { %v1611_v57 = vadd.f32 %v6052_v35, %v1488_v29 }
 0x25e   : > { %v1734_v55 = vadd.f32 %v6058_v8, %v1611_v57 }
 0x260   : > { %v1857_v50 = vadd.f32 %v1821_v63, %v1734_v55  ;;  %v1285_v63 = vadd.f32 %v6034_v24, %v1122_v41 }
 0x261   : > { %v1835_v53 = vpop.f32.mrf.mxu2 }
 0x262   : > { %v1849_v48 = vpop.f32.mrf.mxu3  ;;  %v1858_v60 = vadd.f32 %v1835_v53, %v1735_v12  ;;  %v1408_v31 = vadd.f32 %v6038_v46, %v1285_v63  ;;  %v8507_v46 = vld [vmem:[#allocation51_spill] sm:$0xff] }
 0x263   : > { %v1859_v16 = vadd.f32 %v1849_v48, %v1736_v45 }
 0x269   : > { %v1956_v44 = vpop.f32.mrf.mxu2  ;;  %v1928_v3 = vpop.f32.mrf.mxu0 }
 0x26a   : > { %v1970_v47 = vpop.f32.mrf.mxu3  ;;  %v1977_v37 = vadd.f32 %v1956_v44, %v1854_v19  ;;  %v1942_v39 = vpop.f32.mrf.mxu1  ;;  %v1975_v4 = vadd.f32 %v1928_v3, %v1852_v58  ;;  %v1487_v19 = vadd.f32 %v6044_v38, %v1408_v31 }
 0x26b   : > { %v1976_v7 = vadd.f32 %v1942_v39, %v1853_v59  ;;  %v1978_v62 = vadd.f32 %v1970_v47, %v1855_v22  ;;  %v8506_v59 = vld [vmem:[#allocation50_spill] sm:$0xff] }
 0x26c   : > { %v6067_v6 = vadd.f32 %v1988_v36, %v1977_v37  ;;  %v6070_v5 = vadd.f32 %v1988_v36, %v1975_v4  ;;  %v1610_v44 = vadd.f32 %v8506_v59, %v1487_v19  ;;  %v8516_v19 = vld [vmem:[#allocation13_spill] sm:$0xff] }
 0x26d   : > { %v6072_v61 = vadd.f32 %v1988_v36, %v1976_v7  ;;  %v6098_v21 = vadd.f32 %v1988_v36, %v1978_v62 }
 0x26e   : > { %v4745_v1 = vmul.f32 -1.442695, %v6067_v6  ;;  %v4743_v28 = vmul.f32 -1.442695, %v6070_v5  ;;  %v1733_v43 = vadd.f32 %v8507_v46, %v1610_v44 }
 0x26f   : > { %v4744_v27 = vmul.f32 -1.442695, %v6072_v61  ;;  %v4746_v10 = vmul.f32 -1.442695, %v6098_v21 }
 0x270   : > { %4995 = vpow2.f32 %v4745_v1  ;;  %v1856_v36 = vadd.f32 %v6060_v56, %v1733_v43 }
 0x271   : > { %v1958_v9 = vpop.f32.mrf.mxu2  ;;  %4997 = vpow2.f32 %v4743_v28  ;;  %v1930_v39 = vpop.f32.mrf.mxu0 }
 0x272   : > { %v1972_v13 = vpop.f32.mrf.mxu3  ;;  %v1981_v11 = vadd.f32 %v1958_v9, %v1858_v60  ;;  %4999 = vpow2.f32 %v4744_v27  ;;  %v1944_v53 = vpop.f32.mrf.mxu1  ;;  %v1979_v32 = vadd.f32 %v1930_v39, %v1856_v36 }
 0x273   : > { %v1982_v2 = vadd.f32 %v1972_v13, %v1859_v16  ;;  %v1980_v8 = vadd.f32 %v1944_v53, %v1857_v50 }
 0x274   : > { %v6086_v0 = vadd.f32 %v6080_v33, %v1981_v11  ;;  %v6132_v23 = vadd.f32 %v6080_v33, %v1979_v32 }
 0x275   : > { %v6089_v48 = vadd.f32 %v6080_v33, %v1982_v2  ;;  %v6102_v14 = vadd.f32 %v6080_v33, %v1980_v8 }
 0x276   : > { %v4996_v35 = vpop.eup %4995  ;;  %v4749_v51 = vmul.f32 -1.442695, %v6086_v0  ;;  %v4747_v50 = vmul.f32 -1.442695, %v6132_v23 }
 0x277   : > { %v6094_v30 = vadd.f32 1.0, %v4996_v35  ;;  %v4998_v17 = vpop.eup %4997  ;;  %v4750_v40 = vmul.f32 -1.442695, %v6089_v48  ;;  %v4748_v49 = vmul.f32 -1.442695, %v6102_v14 }
 0x278   : > { %v5000_v20 = vpop.eup %4999  ;;  %v6104_v54 = vadd.f32 1.0, %v4998_v17 }
 0x279   : > { %5001 = vrcp.f32 %v6094_v30  ;;  %v2028_v25 = vadd.f32 1.0, %v5000_v20  ;;  %vm2070_vm1 = vweird.f32 %v6094_v30  ;;  %v2076_v33 = vand.u32 2147483648, %v6094_v30 }
 0x27a   : > { %5003 = vpow2.f32 %v4749_v51  ;;  %v2074_v55 = vand.u32 2147483647, %v6094_v30 }
 0x27b   : > { %5005 = vpow2.f32 %v4750_v40  ;;  %v2061_v12 = vand.u32 2147483648, %v2028_v25  ;;  %v2059_v56 = vand.u32 2147483647, %v2028_v25  ;;  %vm2055_vm12 = vweird.f32 %v2028_v25 }
 0x27c   : > { %5007 = vrcp.f32 %v2028_v25 }
 0x27d   : > { %5009 = vrcp.f32 %v6104_v54  ;;  %v2062_v16 = vor.u32 1.1754944e-38, %v2061_v12  ;;  %vm2060_vm15 = vcmp.eq.f32.partialorder %v2059_v56, 8.507059e+37 }
 0x27e   : > { %5011 = vpow2.f32 %v4746_v10 }
 0x27f   : > { %v6108_v26 = vpop.eup %5001  ;;  %5013 = vpow2.f32 %v4748_v49 }
 0x280   : > { %v5004_v58 = vpop.eup %5003  ;;  %v2066_v24 = vmul.f32 %v6108_v26, %v6094_v30  ;;  %vm2071_vm13 = vweird.f32 %v6108_v26  ;;  %v2044_v30 = vand.u32 2147483647, %v6104_v54 }
 0x281   : > { %v5006_v47 = vpop.eup %5005  ;;  %v6117_v15 = vadd.f32 1.0, %v5004_v58  ;;  %vm2072_vm2 = vmor %vm2070_vm1, %vm2071_vm13  ;;  %vm2040_vm13 = vweird.f32 %v6104_v54 }
 0x282   : > { %v5008_v37 = vpop.eup %5007  ;;  %v2067_v3 = vsub.f32 1.0, %v2066_v24  ;;  %v6119_v38 = vadd.f32 1.0, %v5006_v47 }
 0x283   : > { %v2051_v18 = vmul.f32 %v5008_v37, %v2028_v25  ;;  %v6122_v4 = vpop.eup %5009  ;;  %5015 = vrcp.f32 %v6117_v15  ;;  %vm2056_vm11 = vweird.f32 %v5008_v37  ;;  %v2046_v25 = vand.u32 2147483648, %v6104_v54 }
 0x284   : > { %v5012_v42 = vpop.eup %5011  ;;  %v2068_v34 = vmul.f32 %v6108_v26, %v2067_v3  ;;  %5017 = vrcp.f32 %v6119_v38  ;;  %v2036_v1 = vmul.f32 %v6122_v4, %v6104_v54  ;;  %vm2057_vm14 = vmor %vm2055_vm12, %vm2056_vm11  ;;  %vm2075_vm11 = vcmp.eq.f32.partialorder %v2074_v55, 8.507059e+37 }
 0x285   : > { %v2052_v7 = vsub.f32 1.0, %v2051_v18  ;;  %v5014_v45 = vpop.eup %5013  ;;  %v6129_v28 = vadd.f32 1.0, %v5012_v42  ;;  %vm2041_vm12 = vweird.f32 %v6122_v4  ;;  %v2047_v44 = vor.u32 1.1754944e-38, %v2046_v25 }
 0x286   : > { %v2069_v60 = vadd.f32 %v6108_v26, %v2068_v34  ;;  %v6136_v57 = vadd.f32 1.0, %v5014_v45  ;;  %v2037_v13 = vsub.f32 1.0, %v2036_v1  ;;  %vm2130_vm1 = vweird.f32 %v6117_v15 }
 0x287   : > { %v2053_v29 = vmul.f32 %v5008_v37, %v2052_v7  ;;  %5019 = vrcp.f32 %v6129_v28  ;;  %v2134_v47 = vand.u32 2147483647, %v6117_v15  ;;  %v2136_v43 = vand.u32 2147483648, %v6117_v15 }
 0x288   : > { %v2073_v53 = vsel %vm2072_vm2, %v6108_v26, %v2069_v60  ;;  %5021 = vrcp.f32 %v6136_v57  ;;  %v2038_v35 = vmul.f32 %v6122_v4, %v2037_v13  ;;  %v2121_v46 = vand.u32 2147483648, %v6136_v57 }
 0x289   : > { %v2054_v27 = vadd.f32 %v5008_v37, %v2053_v29  ;;  %v6138_v9 = vpop.eup %5015  ;;  %5023 = vpow2.f32 %v4747_v50  ;;  %v2119_v3 = vand.u32 2147483647, %v6136_v57  ;;  %v2151_v32 = vand.u32 2147483648, %v6119_v38 }
 0x28a   : > { %v6140_v11 = vpop.eup %5017  ;;  %v2126_v62 = vmul.f32 %v6138_v9, %v6117_v15  ;;  %v2039_v17 = vadd.f32 %v6122_v4, %v2038_v35  ;;  %v2122_v34 = vor.u32 1.1754944e-38, %v2121_v46  ;;  %v2149_v1 = vand.u32 2147483647, %v6119_v38 }
 0x28b   : > { %v2058_v52 = vsel %vm2057_vm14, %v5008_v37, %v2054_v27  ;;  %v2141_v51 = vmul.f32 %v6140_v11, %v6119_v38  ;;  %vm6174_vm14 = vmor %vm2040_vm13, %vm2041_vm12  ;;  %vm2146_vm12 = vweird.f32 %v6140_v11  ;;  %vm2115_vm13 = vweird.f32 %v6136_v57 }
 0x28c   : > { %v2063_v2 = vsel %vm2060_vm15, %v2062_v16, %v2058_v52  ;;  %v2127_v40 = vsub.f32 1.0, %v2126_v62  ;;  %vm6178_vm15 = vcmp.eq.f32.partialorder %v2044_v30, 8.507059e+37  ;;  %vm2120_vm9 = vcmp.eq.f32.partialorder %v2119_v3, 8.507059e+37 }
 0x28d   : > { %v6147_v22 = vmul.f32 %v2063_v2, %v6072_v61  ;;  %v2077_v61 = vor.u32 1.1754944e-38, %v2076_v33  ;;  %v6162_v8 = vpop.eup %5019  ;;  %v2142_v20 = vsub.f32 1.0, %v2141_v51  ;;  %v2152_v16 = vor.u32 1.1754944e-38, %v2151_v32 }
 0x28e   : > { %v5022_v63 = vpop.eup %5021  ;;  %v2081_v26 = vmul.f32 %v6162_v8, %v6129_v28  ;;  %v2128_v58 = vmul.f32 %v6138_v9, %v2127_v40  ;;  %v2091_v2 = vand.u32 2147483648, %v6129_v28  ;;  %v2089_v55 = vand.u32 2147483647, %v6129_v28 }
 0x28f   : > { %2373 = vrot.lane.b32.xlu1 %v6147_v22, %s5208_s19  ;;  %2206 = vrot.lane.b32.xlu2 %v6147_v22, %s5206_s17  ;;  %v2078_v41 = vsel %vm2075_vm11, %v2077_v61, %v2073_v53  ;;  %v2111_v10 = vmul.f32 %v5022_v63, %v6136_v57  ;;  %v2143_v54 = vmul.f32 %v6140_v11, %v2142_v20  ;;  %v5024_v59 = vpop.eup %5023  ;;  %vm2116_vm2 = vweird.f32 %v5022_v63 }
 0x290   : > { %v6168_v31 = vmul.f32 %v2078_v41, %v6067_v6  ;;  %v2043_v6 = vsel %vm6174_vm14, %v6122_v4, %v2039_v17  ;;  %v2082_v39 = vsub.f32 1.0, %v2081_v26  ;;  %vm2131_vm11 = vweird.f32 %v6138_v9  ;;  %vm2117_vm10 = vmor %vm2115_vm13, %vm2116_vm2 }
 0x291   : > { %v2112_v24 = vsub.f32 1.0, %v2111_v10  ;;  %v2048_v36 = vsel %vm6178_vm15, %v2047_v44, %v2043_v6  ;;  %v2129_v18 = vadd.f32 %v6138_v9, %v2128_v58  ;;  %v2144_v4 = vadd.f32 %v6140_v11, %v2143_v54  ;;  %vm6210_vm15 = vmor %vm2130_vm1, %vm2131_vm11  ;;  %v8517_v54 = vld [vmem:[#allocation15_spill] sm:$0xff] }
 0x292   : > { %vm2145_vm14 = vweird.f32 %v6119_v38  ;;  %v2031_v42 = vadd.f32 1.0, %v5024_v59  ;;  %v6206_v12 = vmul.f32 %v2048_v36, %v6070_v5  ;;  %v2137_v38 = vor.u32 1.1754944e-38, %v2136_v43  ;;  %v8518_v36 = vld [vmem:[#allocation19_spill] sm:$0xff] }
 0x293   : > { %v2113_v37 = vmul.f32 %v5022_v63, %v2112_v24  ;;  %vm6217_vm8 = vmor %vm2145_vm14, %vm2146_vm12  ;;  %v2133_v5 = vsel %vm6210_vm15, %v6138_v9, %v2129_v18  ;;  %v2083_v57 = vmul.f32 %v6162_v8, %v2082_v39  ;;  %vm2085_vm1 = vweird.f32 %v6129_v28 }
 0x294   : > { %v2148_v15 = vsel %vm6217_vm8, %v6140_v11, %v2144_v4  ;;  %5025 = vrcp.f32 %v2031_v42  ;;  %vm2086_vm8 = vweird.f32 %v6162_v8  ;;  %vm2090_vm11 = vcmp.eq.f32.partialorder %v2089_v55, 8.507059e+37 }
 0x295   : > { %v2114_v7 = vadd.f32 %v5022_v63, %v2113_v37  ;;  %vm2087_vm2 = vmor %vm2085_vm1, %vm2086_vm8  ;;  %v2106_v61 = vand.u32 2147483648, %v2031_v42  ;;  %vm2100_vm13 = vweird.f32 %v2031_v42  ;;  %v2104_v41 = vand.u32 2147483647, %v2031_v42  ;;  %v6369_v37 = vld [vmem:[%s8353_s6 + $0x50] sm:$0xff] }
 0x297   : > { %2210 = vrot.lane.b32.xlu1 %v6168_v31, %s5206_s17  ;;  %2167 = vrot.lane.b32.xlu2 %v6147_v22, %s5207_s18  ;;  %v2118_v29 = vsel %vm2117_vm10, %v5022_v63, %v2114_v7  ;;  %vm2150_vm10 = vcmp.eq.f32.partialorder %v2149_v1, 8.507059e+37  ;;  %v2107_v30 = vor.u32 1.1754944e-38, %v2106_v61  ;;  %vm2105_vm15 = vcmp.eq.f32.partialorder %v2104_v41, 8.507059e+37 }
 0x298   : > { %v2123_v27 = vsel %vm2120_vm9, %v2122_v34, %v2118_v29  ;;  %vm2135_vm9 = vcmp.eq.f32.partialorder %v2134_v47, 8.507059e+37  ;;  %v2153_v13 = vsel %vm2150_vm10, %v2152_v16, %v2148_v15  ;;  %v8519_v29 = vld [vmem:[#allocation18_spill] sm:$0xff]  ;;  %v6400_v16 = vld [vmem:[%s8353_s6 + $0x48] sm:$0xff] }
 0x299   : > { %v6228_v60 = vmul.f32 %v2123_v27, %v6102_v14  ;;  %v2138_v9 = vsel %vm2135_vm9, %v2137_v38, %v2133_v5  ;;  %v2084_v14 = vadd.f32 %v6162_v8, %v2083_v57  ;;  %v6243_v11 = vmul.f32 %v2153_v13, %v6089_v48 }
 0x29a   : > { %v6240_v52 = vmul.f32 %v2138_v9, %v6086_v0  ;;  %v5026_v33 = vpop.eup %5025  ;;  %v2092_v48 = vor.u32 1.1754944e-38, %v2091_v2 }
 0x29b   : > { %2208 = vrot.lane.b32.xlu0 %v6228_v60, %s5206_s17  ;;  %v2088_v0 = vsel %vm2087_vm2, %v6162_v8, %v2084_v14  ;;  %v2096_v53 = vmul.f32 %v5026_v33, %v2031_v42  ;;  %vm2101_vm12 = vweird.f32 %v5026_v33 }
 0x29c   : > { %v2093_v50 = vsel %vm2090_vm11, %v2092_v48, %v2088_v0  ;;  %vm2102_vm14 = vmor %vm2100_vm13, %vm2101_vm12  ;;  %vm8549_vm12 = vcmp.lt.s32.totalorder %v8516_v19, 112 }
 0x29d   : > { %v2097_v35 = vsub.f32 1.0, %v2096_v53  ;;  %v6256_v62 = vmul.f32 %v2093_v50, %v6098_v21  ;;  %vm8550_vm13 = vmmov %vm8549_vm12 }
 0x29f   : > { %2171 = vrot.lane.b32.xlu1 %v6168_v31, %s5207_s18  ;;  %2202 = vrot.lane.b32.xlu2 %v6206_v12, %s5206_s17  ;;  %v2098_v28 = vmul.f32 %v5026_v33, %v2097_v35 }
 0x2a1   : > { %v2099_v51 = vadd.f32 %v5026_v33, %v2098_v28 }
 0x2a3   : > { %2169 = vrot.lane.b32.xlu0 %v6228_v60, %s5207_s18  ;;  %v2103_v21 = vsel %vm2102_vm14, %v5026_v33, %v2099_v51  ;;  %v8520_v33 = vld [vmem:[#allocation20_spill] sm:$0xff]  ;;  %vm8551_vm14 = vmmov %vm8549_vm12 }
 0x2a4   : > { %v2108_v8 = vsel %vm2105_vm15, %v2107_v30, %v2103_v21  ;;  %v8521_v21 = vld [vmem:[#allocation21_spill] sm:$0xff]  ;;  %vm8552_vm15 = vmmov %vm8549_vm12 }
 0x2a5   : > { %v6271_v17 = vmul.f32 %v2108_v8, %v6132_v23  ;;  %v8522_v8 = vld [vmem:[#allocation14_spill] sm:$0xff] }
 0x2a7   : > { %2216 = vrot.lane.b32.xlu1 %v6243_v11, %s5206_s17  ;;  %2212 = vrot.lane.b32.xlu2 %v6240_v52, %s5206_s17 }
 0x2ab   : > { %2214 = vrot.lane.b32.xlu0 %v6256_v62, %s5206_s17 }
 0x2af   : > { %2163 = vrot.lane.b32.xlu1 %v6206_v12, %s5207_s18  ;;  %2375 = vrot.lane.b32.xlu2 %v6228_v60, %s5208_s19 }
 0x2b3   : > { %2175 = vrot.lane.b32.xlu0 %v6256_v62, %s5207_s18 }
 0x2b7   : > { %2177 = vrot.lane.b32.xlu1 %v6243_v11, %s5207_s18  ;;  %2173 = vrot.lane.b32.xlu2 %v6240_v52, %s5207_s18 }
 0x2bb   : > { %2204 = vrot.lane.b32.xlu0 %v6271_v17, %s5206_s17 }
 0x2bf   : > { %2379 = vrot.lane.b32.xlu1 %v6240_v52, %s5208_s19  ;;  %2381 = vrot.lane.b32.xlu2 %v6256_v62, %s5208_s19 }
 0x2c3   : > { %2377 = vrot.lane.b32.xlu0 %v6168_v31, %s5208_s19 }
 0x2c7   : > { %2486 = vrot.lane.b32.xlu1 %v6228_v60, %s5209_s20  ;;  %2165 = vrot.lane.b32.xlu2 %v6271_v17, %s5207_s18  ;;  %s4890_s18 = sld [smem:[#allocation2 + $0x1]] }
 0x2cb   : > { %2484 = vrot.lane.b32.xlu0 %v6147_v22, %s5209_s20 }
 0x2cf   : > { %2492 = vrot.lane.b32.xlu1 %v6256_v62, %s5209_s20  ;;  %2488 = vrot.lane.b32.xlu2 %v6168_v31, %s5209_s20 }
 0x2d3   : > { %2383 = vrot.lane.b32.xlu0 %v6243_v11, %s5208_s19 }
 0x2d7   : > { %2371 = vrot.lane.b32.xlu1 %v6271_v17, %s5208_s19  ;;  %2494 = vrot.lane.b32.xlu2 %v6243_v11, %s5209_s20 }
 0x2db   : > { %2369 = vrot.lane.b32.xlu0 %v6206_v12, %s5208_s19  ;;  %s4891_s19 = sld [smem:[#allocation2 + $0x3]] }
 0x2df   : > { %2678 = vrot.lane.b32.xlu1 %v6168_v31, %s5210_s21  ;;  %2480 = vrot.lane.b32.xlu2 %v6206_v12, %s5209_s20 }
 0x2e3   : > { %2490 = vrot.lane.b32.xlu0 %v6240_v52, %s5209_s20 }
 0x2e7   : > { %2789 = vrot.lane.b32.xlu1 %v6168_v31, %s5211_s22  ;;  %2670 = vrot.lane.b32.xlu2 %v6206_v12, %s5210_s21 }
 0x2e9   : > { %v6309_v23 = vpop.permute.xlu2 %2206 }
 0x2eb   : > { %2482 = vrot.lane.b32.xlu0 %v6271_v17, %s5209_s20 }
 0x2ef   : > { %2684 = vrot.lane.b32.xlu1 %v6243_v11, %s5210_s21  ;;  %2781 = vrot.lane.b32.xlu2 %v6206_v12, %s5211_s22 }
 0x2f1   : > { %v6317_v40 = vpop.permute.xlu2 %2167 }
 0x2f3   : > { %2682 = vrot.lane.b32.xlu0 %v6256_v62, %s5210_s21 }
 0x2f7   : > { %2674 = vrot.lane.b32.xlu1 %v6147_v22, %s5210_s21  ;;  %2680 = vrot.lane.b32.xlu2 %v6240_v52, %s5210_s21 }
 0x2f9   : > { %v6325_v20 = vpop.permute.xlu2 %2202 }
 0x2fa   : > { %v2222_v50 = vsel %vm8458_vm3, %v6325_v20, %v6309_v23 }
 0x2fb   : > { %2672 = vrot.lane.b32.xlu0 %v6271_v17, %s5210_s21 }
 0x2ff   : > { %2795 = vrot.lane.b32.xlu1 %v6243_v11, %s5211_s22  ;;  %2676 = vrot.lane.b32.xlu2 %v6228_v60, %s5210_s21 }
 0x301   : > { %v6333_v63 = vpop.permute.xlu1 %2373  ;;  %v2213_v25 = vpop.permute.xlu2 %2212 }
 0x303   : > { %2793 = vrot.lane.b32.xlu0 %v6256_v62, %s5211_s22 }
 0x307   : > { %2892 = vrot.lane.b32.xlu1 %v6206_v12, %s5212_s23  ;;  %2791 = vrot.lane.b32.xlu2 %v6240_v52, %s5211_s22 }
 0x309   : > { %v2211_v10 = vpop.permute.xlu1 %2210  ;;  %v6341_v26 = vpop.permute.xlu2 %2375 }
 0x30a   : > { %v2220_v49 = vsel %vm8458_vm3, %v6309_v23, %v2211_v10  ;;  %v2227_v23 = vmul.f32 %v2222_v50, %v8522_v8  ;;  %v8526_v50 = vld [vmem:[#allocation23_spill] sm:$0xff] }
 0x30b   : > { %2783 = vrot.lane.b32.xlu0 %v6271_v17, %s5211_s22  ;;  %v2228_v24 = vmul.f32 %v2220_v49, %v8517_v54  ;;  %v8523_v49 = vld [vmem:[#allocation16_spill] sm:$0xff] }
 0x30d   : > { %v6353_v59 = vpop.permute.xlu0 %2208 }
 0x30e   : > { %v2221_v44 = vsel %vm8458_vm3, %v6353_v59, %v2213_v25 }
 0x30f   : > { %2902 = vrot.lane.b32.xlu1 %v6240_v52, %s5212_s23  ;;  %2904 = vrot.lane.b32.xlu2 %v6256_v62, %s5212_s23  ;;  %v2232_v47 = vmul.f32 %v2221_v44, %v8517_v54  ;;  %v8524_v44 = vld [vmem:[#allocation17_spill] sm:$0xff] }
 0x311   : > { %v2172_v6 = vpop.permute.xlu1 %2171  ;;  %v2174_v58 = vpop.permute.xlu2 %2173  ;;  %v2236_v46 = vpack.c.bf16 %v2232_v47, %v2228_v24  ;;  %v4842_v24 = vld [vmem:[%s8354_s7 + $0x18] sm:$0xff] }
 0x312   : > { %v2181_v43 = vsel %vm954_vm4, %v6317_v40, %v2172_v6 }
 0x313   : > { %2284 = vmatpush.bf16.msra.mxu2 %v2236_v46  ;;  %2900 = vrot.lane.b32.xlu0 %v6168_v31, %s5212_s23  ;;  %v2189_v18 = vmul.f32 %v2181_v43, %v8518_v36 }
 0x315   : > { %v2170_v4 = vpop.permute.xlu0 %2169 }
 0x316   : > { %v2182_v7 = vsel %vm954_vm4, %v2170_v4, %v2174_v58  ;;  %4761 = vmatmul.msk.bf16.vlgmr.msra.gmra.mxu2 %vm533_vm0, %v6369_v37 }
 0x317   : > { %2787 = vrot.lane.b32.xlu1 %v6228_v60, %s5211_s22  ;;  %2894 = vrot.lane.b32.xlu2 %v6271_v17, %s5212_s23  ;;  %v2193_v32 = vmul.f32 %v2182_v7, %v8518_v36 }
 0x319   : > { %v2217_v3 = vpop.permute.xlu1 %2216  ;;  %v6373_v39 = vpop.permute.xlu2 %2381  ;;  %v2197_v42 = vpack.c.bf16 %v2193_v32, %v2189_v18 }
 0x31a   : > { %v2219_v34 = vsel %vm8458_vm3, %v2213_v25, %v2217_v3 }
 0x31b   : > { %2348 = vmatpush.bf16.msrb.mxu2 %v2197_v42  ;;  %2785 = vrot.lane.b32.xlu0 %v6147_v22, %s5211_s22  ;;  %v2233_v56 = vmul.f32 %v2219_v34, %v8519_v29  ;;  %v8525_v42 = vld [vmem:[#allocation22_spill] sm:$0xff]  ;;  %s4900_s22 = sld [smem:[#allocation2 + $0x4]] }
 0x31d   : > { %v2215_v27 = vpop.permute.xlu0 %2214 }
 0x31e   : > { %v2218_v5 = vsel %vm8458_vm3, %v2211_v10, %v2215_v27  ;;  %v2224_v61 = vsel %vm8458_vm3, %v2215_v27, %v6325_v20  ;;  %v499_v27 = vld [vmem:[%s8352_s5] sm:$0xff] }
 0x31f   : > { %3015 = vrot.lane.b32.xlu1 %v6256_v62, %s5213_s16  ;;  %3011 = vrot.lane.b32.xlu2 %v6168_v31, %s5213_s16  ;;  %v2229_v15 = vmul.f32 %v2218_v5, %v8519_v29  ;;  %v2226_v47 = vmul.f32 %v2224_v61, %v8524_v44  ;;  %v500_v61 = vld [vmem:[%s8352_s5 + $0x8] sm:$0xff] }
 0x321   : > { %v2164_v45 = vpop.permute.xlu1 %2163  ;;  %v2166_v1 = vpop.permute.xlu2 %2165  ;;  %v2237_v38 = vpack.c.bf16 %v2233_v56, %v2229_v15  ;;  %v3309_v56 = vld [vmem:[%s8356_s9 + $0x10] sm:$0xff] }
 0x322   : > { %v2183_v35 = vsel %vm954_vm4, %v2164_v45, %v6317_v40  ;;  %v2184_v41 = vsel %vm954_vm4, %v2166_v1, %v2170_v4 }
 0x323   : > { %2298 = vmatpush.bf16.msra.mxu3 %v2237_v38  ;;  %2906 = vrot.lane.b32.xlu0 %v6243_v11, %s5212_s23  ;;  %v2192_v46 = vmul.f32 %v2184_v41, %v8523_v49 }
 0x325   : > { %v2176_v14 = vpop.permute.xlu0 %2175 }
 0x326   : > { %v2179_v55 = vsel %vm954_vm4, %v2172_v6, %v2176_v14  ;;  %4762 = vmatmul.msk.bf16.vlgmr.msra.gmra.mxu3 %vm533_vm0, %v6369_v37  ;;  %4769 = vmatmul.msk.bf16.vlgmr.msrb.gmra.mxu2 %vm533_vm0, %v6400_v16  ;;  %v2185_v28 = vsel %vm954_vm4, %v2176_v14, %v2164_v45  ;;  %v2188_v6 = vmul.f32 %v2183_v35, %v8523_v49 }
 0x327   : > { %3005 = vrot.lane.b32.xlu1 %v6271_v17, %s5213_s16  ;;  %3017 = vrot.lane.b32.xlu2 %v6243_v11, %s5213_s16  ;;  %v2190_v0 = vmul.f32 %v2179_v55, %v8520_v33  ;;  %v2187_v10 = vmul.f32 %v2185_v28, %v8521_v21 }
 0x329   : > { %v2178_v57 = vpop.permute.xlu1 %2177  ;;  %v6404_v9 = vpop.permute.xlu2 %2488 }
 0x32a   : > { %v2180_v13 = vsel %vm954_vm4, %v2174_v58, %v2178_v57  ;;  %v2186_v53 = vsel %vm954_vm4, %v2178_v57, %v2166_v1  ;;  %v4922_v57 = vld [vmem:[%s8353_s6 + $0x58] sm:$0xff]  ;;  %vm8537_vm4 = vcmp.lt.s32.totalorder %v8516_v19, 113 }
 0x32b   : > { %v2194_v2 = vmul.f32 %v2180_v13, %v8520_v33  ;;  %3003 = vrot.lane.b32.xlu0 %v6206_v12, %s5213_s16  ;;  %v2191_v30 = vmul.f32 %v2186_v53, %v8521_v21  ;;  %v4841_v33 = vld [vmem:[%s8354_s7 + $0x10] sm:$0xff]  ;;  %vm8540_vm9 = vmmov %vm8537_vm4 }
 0x32c   : > { %vm8541_vm10 = vmmov %vm8537_vm4 }
 0x32d   : > { %v2198_v48 = vpack.c.bf16 %v2194_v2, %v2190_v0  ;;  %v2205_v40 = vpop.permute.xlu0 %2204  ;;  %v2195_v18 = vpack.c.bf16 %v2191_v30, %v2187_v10  ;;  %v8528_v10 = vld [vmem:[#allocation24_spill] sm:$0xff]  ;;  %vm8543_vm8 = vmmov %vm8537_vm4 }
 0x32e   : > { %v2223_v58 = vsel %vm8458_vm3, %v2205_v40, %v6353_v59  ;;  %v2225_v20 = vsel %vm8458_vm3, %v2217_v3, %v2205_v40  ;;  %v2196_v3 = vpack.c.bf16 %v2192_v46, %v2188_v6  ;;  %v8527_v40 = vld [vmem:[#allocation25_spill] sm:$0xff]  ;;  %vm8544_vm1 = vmmov %vm8537_vm4 }
 0x32f   : > { %3007 = vrot.lane.b32.xlu1 %v6147_v22, %s5213_s16  ;;  %2896 = vrot.lane.b32.xlu2 %v6147_v22, %s5212_s23  ;;  %v2230_v43 = vmul.f32 %v2225_v20, %v8524_v44  ;;  %v2231_v36 = vmul.f32 %v2223_v58, %v8522_v8  ;;  %vm8547_vm2 = vmmov %vm8544_vm1 }
 0x330   : > { %2362 = vmatpush.bf16.msrb.mxu3 %v2198_v48  ;;  %vm8548_vm11 = vmmov %vm8544_vm1 }
 0x331   : > { %v2380_v51 = vpop.permute.xlu1 %2379  ;;  %v6440_v25 = vpop.permute.xlu2 %2494  ;;  %v2234_v4 = vpack.c.bf16 %v2230_v43, %v2226_v47  ;;  %v2235_v7 = vpack.c.bf16 %v2231_v36, %v2227_v23  ;;  %v3307_v47 = vld [vmem:[%s8356_s9] sm:$0xff] }
 0x332   : > { %v2388_v59 = vsel %vm1182_vm5, %v6341_v26, %v2380_v51 }
 0x333   : > { %3013 = vrot.lane.b32.xlu0 %v6240_v52, %s5213_s16  ;;  %2256 = vmatpush.bf16.msra.mxu0 %v2234_v4  ;;  %v2399_v34 = vmul.f32 %v2388_v59, %v8525_v42 }
 0x334   : > { %2270 = vmatpush.bf16.msra.mxu1 %v2235_v7 }
 0x335   : > { %v2378_v45 = vpop.permute.xlu0 %2377 }
 0x336   : > { %v2387_v1 = vsel %vm1182_vm5, %v6333_v63, %v2378_v45  ;;  %4759 = vmatmul.msk.bf16.vlgmr.msra.gmra.mxu0 %vm533_vm0, %v6369_v37  ;;  %4770 = vmatmul.msk.bf16.vlgmr.msrb.gmra.mxu3 %vm533_vm0, %v6400_v16  ;;  %v2385_v0 = vsel %vm1182_vm5, %v2378_v45, %v6373_v39 }
 0x337   : > { %3124 = vperm.xlu1 %4961, %v4842_v24   ;;  %3009 = vrot.lane.b32.xlu2 %v6228_v60, %s5213_s16  ;;  %v2395_v5 = vmul.f32 %v2387_v1, %v8525_v42  ;;  %v2396_v35 = vmul.f32 %v2385_v0, %v8526_v50  ;;  %v8532_v0 = vld [vmem:[#allocation28_spill] sm:$0xff] }
 0x338   : > { %2320 = vmatpush.bf16.msrb.mxu0 %v2195_v18  ;;  %2334 = vmatpush.bf16.msrb.mxu1 %v2196_v3  ;;  %v8529_v3 = vld [vmem:[#allocation26_spill] sm:$0xff] }
 0x339   : > { %v6463_v32 = vpop.permute.xlu1 %2486  ;;  %4760 = vmatmul.msk.bf16.vlgmr.msra.gmra.mxu1 %vm533_vm0, %v6369_v37  ;;  %v6482_v15 = vpop.permute.xlu2 %2480  ;;  %v2403_v38 = vpack.c.bf16 %v2399_v34, %v2395_v5  ;;  %v3308_v37 = vld [vmem:[%s8356_s9 + $0x8] sm:$0xff]  ;;  %v8530_v34 = vld [vmem:[#allocation30_spill] sm:$0xff]  ;;  %v2593_v5 = vpack.c.bf16 %v6240_v52, %v6168_v31 }
 0x33b   : > { %2898 = vrot.lane.b32.xlu0 %v6228_v60, %s5212_s23  ;;  %2451 = vmatpush.bf16.msra.mxu2 %v2403_v38  ;;  %v2594_v38 = vpack.c.bf16 %v6243_v11, %v6256_v62  ;;  %v8531_v62 = vld [vmem:[#allocation27_spill] sm:$0xff] }
 0x33d   : > { %v2485_v14 = vpop.permute.xlu0 %2484 }
 0x33e   : > { %4779 = vmatmul.msk.bf16.vlgmr.msra.gmra.mxu2 %vm533_vm0, %v4922_v57 }
 0x33f   : > { %3323 = vperm.xlu1 %4961, %v3309_v56   ;;  %505 = vperm.xlu2 %4962, %v499_v27  }
 0x341   : > { %v2493_v13 = vpop.permute.xlu1 %2492  ;;  %v6496_v2 = vpop.permute.xlu2 %2670 }
 0x343   : > { %3119 = vperm.xlu0 %4960, %v4841_v33  }
 0x345   : > { %v2384_v53 = vpop.permute.xlu0 %2383 }
 0x346   : > { %v2386_v48 = vsel %vm1182_vm5, %v2380_v51, %v2384_v53  ;;  %4767 = vmatmul.msk.bf16.vlgmr.msrb.gmra.mxu0 %vm533_vm0, %v6400_v16 }
 0x347   : > { %3318 = vperm.xlu1 %4961, %v3308_v37   ;;  %v2400_v28 = vmul.f32 %v2386_v48, %v8526_v50  ;;  %v4923_v37 = vld [vmem:[%s8353_s6 + $0x60] sm:$0xff] }
 0x349   : > { %v2372_v55 = vpop.permute.xlu1 %2371  ;;  %4768 = vmatmul.msk.bf16.vlgmr.msrb.gmra.mxu1 %vm533_vm0, %v6400_v16  ;;  %v2404_v41 = vpack.c.bf16 %v2400_v28, %v2396_v35  ;;  %v6517_v30 = vpop.permute.xlu2 %2781  ;;  %v2592_v28 = vpack.c.bf16 %v6228_v60, %v6147_v22 }
 0x34a   : > { %v2390_v21 = vsel %vm1182_vm5, %v2372_v55, %v6341_v26  ;;  %v2392_v51 = vsel %vm1182_vm5, %v2384_v53, %v2372_v55  ;;  %v2500_v55 = vsel %vm8457_vm6, %v6482_v15, %v2485_v14 }
 0x34b   : > { %510 = vperm.xlu0 %4960, %v500_v61   ;;  %2465 = vmatpush.bf16.msra.mxu3 %v2404_v41  ;;  %v2397_v16 = vmul.f32 %v2392_v51, %v8527_v40  ;;  %v2398_v49 = vmul.f32 %v2390_v21, %v8528_v10  ;;  %v8533_v51 = vld [vmem:[#allocation34_spill] sm:$0xff] }
 0x34d   : > { %v2370_v6 = vpop.permute.xlu0 %2369 }
 0x34e   : > { %v2389_v58 = vsel %vm1182_vm5, %v2370_v6, %v6333_v63  ;;  %v2391_v26 = vsel %vm1182_vm5, %v6373_v39, %v2370_v6  ;;  %4780 = vmatmul.msk.bf16.vlgmr.msra.gmra.mxu3 %vm533_vm0, %v4922_v57  ;;  %v2498_v63 = vsel %vm8457_vm6, %v2485_v14, %v6404_v9  ;;  %v2496_v39 = vsel %vm8457_vm6, %v6404_v9, %v2493_v13  ;;  %vm8539_vm5 = vmmov %vm8537_vm4 }
 0x34f   : > { %v2393_v20 = vmul.f32 %v2391_v26, %v8527_v40  ;;  %v2394_v24 = vmul.f32 %v2389_v58, %v8528_v10  ;;  %v2506_v42 = vmul.f32 %v2498_v63, %v8529_v3  ;;  %v2507_v45 = vmul.f32 %v2496_v39, %v8530_v34  ;;  %v4924_v26 = vld [vmem:[%s8353_s6 + $0x68] sm:$0xff] }
 0x350   : > { %v2505_v14 = vmul.f32 %v2500_v55, %v8531_v62  ;;  %v4925_v55 = vld [vmem:[%s8353_s6 + $0x70] sm:$0xff] }
 0x351   : > { %v6519_v23 = vpop.permute.xlu1 %2678  ;;  %v2401_v46 = vpack.c.bf16 %v2397_v16, %v2393_v20  ;;  %v2402_v43 = vpack.c.bf16 %v2398_v49, %v2394_v24  ;;  %v2681_v18 = vpop.permute.xlu2 %2680  ;;  %v8534_v16 = vld [vmem:[#allocation37_spill] sm:$0xff]  ;;  %v8535_v24 = vld [vmem:[#allocation35_spill] sm:$0xff] }
 0x353   : > { %3313 = vperm.xlu0 %4960, %v3307_v47   ;;  %2423 = vmatpush.bf16.msra.mxu0 %v2401_v46 }
 0x354   : > { %2437 = vmatpush.bf16.msra.mxu1 %v2402_v43 }
 0x355   : > { %v2491_v4 = vpop.permute.xlu0 %2490 }
 0x356   : > { %v2497_v7 = vsel %vm8457_vm6, %v2491_v4, %v6440_v25  ;;  %v2499_v59 = vsel %vm8457_vm6, %v6463_v32, %v2491_v4  ;;  %4777 = vmatmul.msk.bf16.vlgmr.msra.gmra.mxu0 %vm533_vm0, %v4922_v57 }
 0x357   : > { %v2510_v1 = vmul.f32 %v2499_v59, %v8529_v3  ;;  %v2511_v9 = vmul.f32 %v2497_v7, %v8530_v34 }
 0x359   : > { %v6535_v36 = vpop.permute.xlu1 %2789  ;;  %4778 = vmatmul.msk.bf16.vlgmr.msra.gmra.mxu1 %vm533_vm0, %v4922_v57  ;;  %v2514_v56 = vpack.c.bf16 %v2510_v1, %v2506_v42  ;;  %v2515_v27 = vpack.c.bf16 %v2511_v9, %v2507_v45  ;;  %v2502_v57 = vsel %vm8457_vm6, %v2493_v13, %v6482_v15  ;;  %v2677_v15 = vpop.permute.xlu2 %2676  ;;  %v8538_v9 = vld [vmem:[#allocation40_spill] sm:$0xff] }
 0x35a   : > { %v2504_v53 = vmul.f32 %v2502_v57, %v8532_v0 }
 0x35b   : > { %2562 = vmatpush.bf16.msrb.mxu2 %v2514_v56  ;;  %2576 = vmatpush.bf16.msrb.mxu3 %v2515_v27 }
 0x35d   : > { %v2483_v31 = vpop.permute.xlu0 %2482 }
 0x35e   : > { %v2501_v52 = vsel %vm8457_vm6, %v2483_v31, %v6463_v32  ;;  %v2503_v11 = vsel %vm8457_vm6, %v6440_v25, %v2483_v31  ;;  %4789 = vmatmul.msk.bf16.vlgmr.msrb.gmra.mxu2 %vm533_vm0, %v4923_v37  ;;  %4790 = vmatmul.msk.bf16.vlgmr.msrb.gmra.mxu3 %vm533_vm0, %v4923_v37  ;;  %v2689_v32 = vsel %vm8456_vm7, %v2677_v15, %v2681_v18 }
 0x35f   : > { %2641 = vmatpush.bf16.msra.mxu2 %v2593_v5  ;;  %2655 = vmatpush.bf16.msra.mxu3 %v2594_v38  ;;  %v2508_v13 = vmul.f32 %v2503_v11, %v8532_v0  ;;  %v2509_v48 = vmul.f32 %v2501_v52, %v8531_v62  ;;  %v2591_v25 = vpack.c.bf16 %v6271_v17, %v6206_v12 }
 0x360   : > { %v2699_v40 = vmul.f32 %v2689_v32, %v8533_v51 }
 0x361   : > { %v2685_v33 = vpop.permute.xlu1 %2684  ;;  %v2512_v50 = vpack.c.bf16 %v2508_v13, %v2504_v53  ;;  %v2513_v35 = vpack.c.bf16 %v2509_v48, %v2505_v14  ;;  %v2792_v43 = vpop.permute.xlu2 %2791  ;;  %v8542_v14 = vld [vmem:[#allocation38_spill] sm:$0xff] }
 0x362   : > { %v2687_v61 = vsel %vm8456_vm7, %v2681_v18, %v2685_v33  ;;  %v8536_v18 = vld [vmem:[#allocation36_spill] sm:$0xff] }
 0x363   : > { %2534 = vmatpush.bf16.msrb.mxu0 %v2512_v50  ;;  %2548 = vmatpush.bf16.msrb.mxu1 %v2513_v35  ;;  %v2700_v10 = vmul.f32 %v2687_v61, %v8534_v16 }
 0x365   : > { %v2683_v12 = vpop.permute.xlu0 %2682 }
 0x366   : > { %v2686_v22 = vsel %vm8456_vm7, %v6519_v23, %v2683_v12  ;;  %4787 = vmatmul.msk.bf16.vlgmr.msrb.gmra.mxu0 %vm533_vm0, %v4923_v37 }
 0x367   : > { %2613 = vmatpush.bf16.msra.mxu0 %v2591_v25  ;;  %2627 = vmatpush.bf16.msra.mxu1 %v2592_v28  ;;  %v2696_v60 = vmul.f32 %v2686_v22, %v8534_v16  ;;  %v4926_v28 = vld [vmem:[%s8353_s6 + $0x78] sm:$0xff] }
 0x369   : > { %v2675_v41 = vpop.permute.xlu1 %2674  ;;  %4788 = vmatmul.msk.bf16.vlgmr.msrb.gmra.mxu1 %vm533_vm0, %v4923_v37  ;;  %v2704_v6 = vpack.c.bf16 %v2700_v10, %v2696_v60  ;;  %v2905_v37 = vpop.permute.xlu2 %2904 }
 0x36a   : > { %v2688_v21 = vsel %vm8456_vm7, %v2675_v41, %v6519_v23  ;;  %v2690_v58 = vsel %vm8456_vm7, %v6496_v2, %v2675_v41  ;;  %v2692_v23 = vsel %vm8456_vm7, %v2683_v12, %v6496_v2  ;;  %v8545_v41 = vld [vmem:[#allocation39_spill] sm:$0xff] }
 0x36b   : > { %v2695_v17 = vmul.f32 %v2688_v21, %v8533_v51  ;;  %2752 = vmatpush.bf16.msrb.mxu2 %v2704_v6  ;;  %v2694_v47 = vmul.f32 %v2690_v58, %v8535_v24  ;;  %v2697_v4 = vmul.f32 %v2692_v23, %v8536_v18 }
 0x36d   : > { %v2703_v49 = vpack.c.bf16 %v2699_v40, %v2695_v17  ;;  %v2673_v46 = vpop.permute.xlu0 %2672  ;;  %v8546_v40 = vld [vmem:[#allocation41_spill] sm:$0xff] }
 0x36e   : > { %v2691_v63 = vsel %vm8456_vm7, %v2673_v46, %v2677_v15  ;;  %v2693_v39 = vsel %vm8456_vm7, %v2685_v33, %v2673_v46  ;;  %4799 = vmatmul.msk.bf16.vlgmr.msra.gmra.mxu2 %vm533_vm0, %v4924_v26  ;;  %4800 = vmatmul.msk.bf16.vlgmr.msra.gmra.mxu3 %vm533_vm0, %v4924_v26 }
 0x36f   : > { %2738 = vmatpush.bf16.msrb.mxu1 %v2703_v49  ;;  %v2698_v7 = vmul.f32 %v2691_v63, %v8535_v24  ;;  %v2701_v2 = vmul.f32 %v2693_v39, %v8536_v18  ;;  %v8554_v39 = vld [vmem:[#allocation42_spill] sm:$0xff] }
 0x371   : > { %v2796_v20 = vpop.permute.xlu1 %2795  ;;  %v2702_v59 = vpack.c.bf16 %v2698_v7, %v2694_v47  ;;  %v2705_v42 = vpack.c.bf16 %v2701_v2, %v2697_v4  ;;  %v6644_v48 = vpop.permute.xlu2 %2894 }
 0x372   : > { %v2798_v45 = vsel %vm8537_vm4, %v2792_v43, %v2796_v20  ;;  %vm8555_vm4 = vcmp.lt.s32.totalorder %v8516_v19, 111 }
 0x373   : > { %2724 = vmatpush.bf16.msrb.mxu0 %v2702_v59  ;;  %2766 = vmatpush.bf16.msrb.mxu3 %v2705_v42  ;;  %v2811_v56 = vmul.f32 %v2798_v45, %v8538_v9 }
 0x375   : > { %v2794_v27 = vpop.permute.xlu0 %2793 }
 0x376   : > { %v2797_v5 = vsel %vm8539_vm5, %v6535_v36, %v2794_v27  ;;  %4797 = vmatmul.msk.bf16.vlgmr.msra.gmra.mxu0 %vm533_vm0, %v4924_v26  ;;  %v2803_v31 = vsel %vm8540_vm9, %v2794_v27, %v6517_v30  ;;  %vm8557_vm5 = vmmov %vm8555_vm4 }
 0x377   : > { %v2807_v38 = vmul.f32 %v2797_v5, %v8538_v9  ;;  %v2808_v53 = vmul.f32 %v2803_v31, %v8542_v14  ;;  %v8556_v5 = vld [vmem:[#allocation46_spill] sm:$0xff]  ;;  %vm8558_vm9 = vmmov %vm8555_vm4 }
 0x379   : > { %v6621_v1 = vpop.permute.xlu1 %2892  ;;  %4798 = vmatmul.msk.bf16.vlgmr.msra.gmra.mxu1 %vm533_vm0, %v4924_v26  ;;  %v2815_v33 = vpack.c.bf16 %v2811_v56, %v2807_v38  ;;  %v3012_v61 = vpop.permute.xlu2 %3011  ;;  %v4927_v56 = vld [vmem:[%s8353_s6 + $0x80] sm:$0xff] }
 0x37b   : > { %2863 = vmatpush.bf16.msra.mxu2 %v2815_v33 }
 0x37d   : > { %v2784_v52 = vpop.permute.xlu0 %2783 }
 0x37e   : > { %v2804_v11 = vsel %vm8541_vm10, %v2796_v20, %v2784_v52  ;;  %4809 = vmatmul.msk.bf16.vlgmr.msrb.gmra.mxu2 %vm533_vm0, %v4925_v55  ;;  %4810 = vmatmul.msk.bf16.vlgmr.msrb.gmra.mxu3 %vm533_vm0, %v4925_v55  ;;  %vm8559_vm10 = vmmov %vm8555_vm4 }
 0x37f   : > { %v2812_v15 = vmul.f32 %v2804_v11, %v8542_v14 }
 0x381   : > { %v6633_v57 = vpop.permute.xlu1 %2902  ;;  %v2816_v13 = vpack.c.bf16 %v2812_v15, %v2808_v53  ;;  %v3018_v23 = vpop.permute.xlu2 %3017 }
 0x383   : > { %2877 = vmatpush.bf16.msra.mxu3 %v2816_v13  ;;  %v8560_v13 = vld [vmem:[#allocation47_spill] sm:$0xff] }
 0x385   : > { %v6646_v35 = vpop.permute.xlu0 %2900 }
 0x386   : > { %4807 = vmatmul.msk.bf16.vlgmr.msrb.gmra.mxu0 %vm533_vm0, %v4925_v55 }
 0x389   : > { %v2788_v50 = vpop.permute.xlu1 %2787  ;;  %4808 = vmatmul.msk.bf16.vlgmr.msrb.gmra.mxu1 %vm533_vm0, %v4925_v55  ;;  %v2897_v31 = vpop.permute.xlu2 %2896 }
 0x38a   : > { %v2800_v32 = vsel %vm8543_vm8, %v2788_v50, %v2792_v43  ;;  %v2802_v25 = vsel %vm8544_vm1, %v2784_v52, %v2788_v50  ;;  %v8553_v43 = vld [vmem:[#allocation45_spill] sm:$0xff]  ;;  %vm8561_vm8 = vmmov %vm8555_vm4 }
 0x38b   : > { %v2809_v21 = vmul.f32 %v2802_v25, %v8545_v41  ;;  %v2810_v10 = vmul.f32 %v2800_v32, %v8546_v40  ;;  %vm8562_vm1 = vmmov %vm8555_vm4 }
 0x38d   : > { %v2786_v12 = vpop.permute.xlu0 %2785 }
 0x38e   : > { %v2799_v22 = vsel %vm8547_vm2, %v2786_v12, %v6535_v36  ;;  %v2801_v60 = vsel %vm8548_vm11, %v6517_v30, %v2786_v12  ;;  %4819 = vmatmul.msk.bf16.vlgmr.msra.gmra.mxu2 %vm533_vm0, %v4926_v28  ;;  %4820 = vmatmul.msk.bf16.vlgmr.msra.gmra.mxu3 %vm533_vm0, %v4926_v28  ;;  %v2914_v36 = vsel %vm8549_vm12, %v2905_v37, %v6621_v1  ;;  %vm8563_vm2 = vmmov %vm8562_vm1 }
 0x38f   : > { %v2805_v49 = vmul.f32 %v2801_v60, %v8545_v41  ;;  %v2806_v6 = vmul.f32 %v2799_v22, %v8546_v40  ;;  %v2908_v30 = vsel %vm8550_vm13, %v6646_v35, %v2905_v37  ;;  %v2919_v63 = vmul.f32 %v2914_v36, %v8553_v43  ;;  %vm8564_vm11 = vmmov %vm8549_vm12 }
 0x390   : > { %v2918_v4 = vmul.f32 %v2908_v30, %v8554_v39  ;;  %v2910_v22 = vsel %vm8564_vm11, %v2897_v31, %v6646_v35  ;;  %vm8565_vm12 = vmmov %vm8564_vm11 }
 0x391   : > { %v3016_v17 = vpop.permute.xlu1 %3015  ;;  %v2813_v58 = vpack.c.bf16 %v2809_v21, %v2805_v49  ;;  %v2814_v26 = vpack.c.bf16 %v2810_v10, %v2806_v6  ;;  %v3010_v41 = vpop.permute.xlu2 %3009  ;;  %v4928_v10 = vld [vmem:[%s8353_s6 + $0x88] sm:$0xff]  ;;  %vm8566_vm13 = vmmov %vm8562_vm1 }
 0x392   : > { %v3019_v11 = vsel %vm8558_vm9, %v3012_v61, %v3016_v17  ;;  %v8567_v49 = vld [vmem:[#allocation49_spill] sm:$0xff] }
 0x393   : > { %2835 = vmatpush.bf16.msra.mxu0 %v2813_v58  ;;  %2849 = vmatpush.bf16.msra.mxu1 %v2814_v26  ;;  %v3029_v50 = vmul.f32 %v3019_v11, %v8560_v13  ;;  %v8568_v58 = vld [vmem:[#allocation48_spill] sm:$0xff] }
 0x395   : > { %v2907_v20 = vpop.permute.xlu0 %2906 }
 0x396   : > { %v2909_v47 = vsel %vm8551_vm14, %v6633_v57, %v2907_v20  ;;  %v2915_v46 = vsel %vm8552_vm15, %v2907_v20, %v6644_v48  ;;  %4817 = vmatmul.msk.bf16.vlgmr.msra.gmra.mxu0 %vm533_vm0, %v4926_v28  ;;  %vm8569_vm14 = vmmov %vm8564_vm11 }
 0x397   : > { %v2922_v7 = vmul.f32 %v2909_v47, %v8554_v39  ;;  %v2923_v2 = vmul.f32 %v2915_v46, %v8553_v43  ;;  %vm8570_vm15 = vmmov %vm8564_vm11  ;;  %v8572_v47 = vld [vmem:[#allocation43_spill] sm:$0xff] }
 0x398   : > { %v2917_v46 = vmul.f32 %v2910_v22, %v8572_v47 }
 0x399   : > { %4818 = vmatmul.msk.bf16.vlgmr.msra.gmra.mxu1 %vm533_vm0, %v4926_v28  ;;  %v3006_v59 = vpop.permute.xlu1 %3005  ;;  %v2926_v42 = vpack.c.bf16 %v2922_v7, %v2918_v4  ;;  %v2927_v45 = vpack.c.bf16 %v2923_v2, %v2919_v63  ;;  %v2286_v27 = vpop.f32.mrf.mxu2 }
 0x39a   : > { %v3026_v9 = vsel %vm8555_vm4, %v3018_v23, %v3006_v59  ;;  %v3024_v60 = vsel %vm8566_vm13, %v3006_v59, %v3010_v41 }
 0x39b   : > { %2974 = vmatpush.bf16.msrb.mxu2 %v2926_v42  ;;  %2988 = vmatpush.bf16.msrb.mxu3 %v2927_v45  ;;  %v3034_v38 = vmul.f32 %v3026_v9, %v8556_v5  ;;  %v3031_v2 = vmul.f32 %v3024_v60, %v8567_v49 }
 0x39d   : > { %v3004_v37 = vpop.permute.xlu0 %3003 }
 0x39e   : > { %v3025_v33 = vsel %vm8557_vm5, %v3016_v17, %v3004_v37  ;;  %4829 = vmatmul.msk.bf16.vlgmr.msrb.gmra.mxu2 %vm533_vm0, %v4927_v56  ;;  %4830 = vmatmul.msk.bf16.vlgmr.msrb.gmra.mxu3 %vm533_vm0, %v4927_v56 }
 0x39f   : > { %v3030_v55 = vmul.f32 %v3025_v33, %v8556_v5 }
 0x3a1   : > { %v3038_v52 = vpack.c.bf16 %v3034_v38, %v3030_v55  ;;  %v2288_v14 = vpop.f32.mrf.mxu2  ;;  %v3008_v32 = vpop.permute.xlu1 %3007 }
 0x3a2   : > { %v3021_v21 = vsel %vm8561_vm8, %v3008_v32, %v3012_v61  ;;  %v3023_v40 = vsel %vm8562_vm1, %v3004_v37, %v3008_v32  ;;  %v2912_v61 = vsel %vm8565_vm12, %v6621_v1, %v2897_v31  ;;  %v8571_v1 = vld [vmem:[#allocation44_spill] sm:$0xff] }
 0x3a3   : > { %3099 = vmatpush.bf16.msra.mxu3 %v3038_v52  ;;  %v3027_v6 = vmul.f32 %v3023_v40, %v8567_v49  ;;  %v3028_v26 = vmul.f32 %v3021_v21, %v8568_v58 }
 0x3a5   : > { %v3014_v53 = vpop.permute.xlu0 %3013  ;;  %v3035_v42 = vpack.c.bf16 %v3031_v2, %v3027_v6 }
 0x3a6   : > { %v3020_v15 = vsel %vm8559_vm10, %v3014_v53, %v3018_v23  ;;  %v3022_v12 = vsel %vm8563_vm2, %v3010_v41, %v3014_v53  ;;  %v2916_v23 = vmul.f32 %v2912_v61, %v8571_v1 }
 0x3a7   : > { %v3033_v25 = vmul.f32 %v3020_v15, %v8560_v13  ;;  %v3032_v30 = vmul.f32 %v3022_v12, %v8568_v58 }
 0x3a9   : > { %v3037_v28 = vpack.c.bf16 %v3033_v25, %v3029_v50  ;;  %v2300_v17 = vpop.f32.mrf.mxu3  ;;  %v2350_v63 = vpop.f32.mrf.mxu2  ;;  %v3036_v45 = vpack.c.bf16 %v3032_v30, %v3028_v26 }
 0x3aa   : > { %v2351_v31 = vadd.f32 %v2350_v63, %v2286_v27 }
 0x3ab   : > { %3085 = vmatpush.bf16.msra.mxu2 %v3037_v28 }
 0x3ad   : > { %v2899_v36 = vpop.permute.xlu0 %2898 }
 0x3ae   : > { %v2911_v20 = vsel %vm8569_vm14, %v2899_v36, %v6633_v57  ;;  %v2913_v35 = vsel %vm8570_vm15, %v6644_v48, %v2899_v36  ;;  %4839 = vmatmul.msk.bf16.vlgmr.msra.gmra.mxu2 %vm533_vm0, %v4928_v10  ;;  %4840 = vmatmul.msk.bf16.vlgmr.msra.gmra.mxu3 %vm533_vm0, %v4928_v10 }
 0x3af   : > { %v2920_v4 = vmul.f32 %v2913_v35, %v8571_v1  ;;  %v2921_v7 = vmul.f32 %v2911_v20, %v8572_v47 }
 0x3b1   : > { %v2924_v57 = vpack.c.bf16 %v2920_v4, %v2916_v23  ;;  %v2925_v59 = vpack.c.bf16 %v2921_v7, %v2917_v46  ;;  %v2302_v5 = vpop.f32.mrf.mxu3  ;;  %v2352_v38 = vpop.f32.mrf.mxu2 }
 0x3b2   : > { %v2353_v13 = vadd.f32 %v2352_v38, %v2288_v14 }
 0x3b3   : > { %v2258_v48 = vpop.f32.mrf.mxu0  ;;  %2946 = vmatpush.bf16.msrb.mxu0 %v2924_v57  ;;  %2960 = vmatpush.bf16.msrb.mxu1 %v2925_v59 }
 0x3b6   : > { %v2272_v9 = vpop.f32.mrf.mxu1  ;;  %4827 = vmatmul.msk.bf16.vlgmr.msrb.gmra.mxu0 %vm533_vm0, %v4927_v56  ;;  %4828 = vmatmul.msk.bf16.vlgmr.msrb.gmra.mxu1 %vm533_vm0, %v4927_v56  ;;  %v3310_v56 = vld [vmem:[%s8356_s9 + $0x18] sm:$0xff] }
 0x3b7   : > { %3057 = vmatpush.bf16.msra.mxu0 %v3035_v42  ;;  %3071 = vmatpush.bf16.msra.mxu1 %v3036_v45 }
 0x3b8   : > { %3328 = vperm.xlu2 %4962, %v3310_v56  }
 0x3b9   : > { %v2364_v55 = vpop.f32.mrf.mxu3 }
 0x3ba   : > { %v2365_v27 = vadd.f32 %v2364_v55, %v2300_v17 }
 0x3bb   : > { %v2260_v37 = vpop.f32.mrf.mxu0 }
 0x3be   : > { %v2274_v33 = vpop.f32.mrf.mxu1 }
 0x3c1   : > { %v2453_v52 = vpop.f32.mrf.mxu2  ;;  %v2366_v50 = vpop.f32.mrf.mxu3 }
 0x3c2   : > { %v2474_v11 = vadd.f32 %v2453_v52, %v2351_v31  ;;  %v2367_v61 = vadd.f32 %v2366_v50, %v2302_v5 }
 0x3c3   : > { %v2322_v53 = vpop.f32.mrf.mxu0 }
 0x3c4   : > { %v2323_v30 = vadd.f32 %v2322_v53, %v2258_v48 }
 0x3c6   : > { %v2336_v15 = vpop.f32.mrf.mxu1  ;;  %4837 = vmatmul.msk.bf16.vlgmr.msra.gmra.mxu0 %vm533_vm0, %v4928_v10  ;;  %4838 = vmatmul.msk.bf16.vlgmr.msra.gmra.mxu1 %vm533_vm0, %v4928_v10 }
 0x3c7   : > { %v2337_v20 = vadd.f32 %v2336_v15, %v2272_v9 }
 0x3c9   : > { %v2455_v32 = vpop.f32.mrf.mxu2 }
 0x3ca   : > { %v2478_v25 = vadd.f32 %v2455_v32, %v2353_v13 }
 0x3cb   : > { %v2324_v28 = vpop.f32.mrf.mxu0 }
 0x3cc   : > { %v2325_v49 = vadd.f32 %v2324_v28, %v2260_v37 }
 0x3ce   : > { %v2338_v41 = vpop.f32.mrf.mxu1 }
 0x3cf   : > { %v2339_v14 = vadd.f32 %v2338_v41, %v2274_v33 }
 0x3d1   : > { %v2467_v21 = vpop.f32.mrf.mxu3 }
 0x3d2   : > { %v2475_v40 = vadd.f32 %v2467_v21, %v2365_v27 }
 0x3d3   : > { %v2425_v12 = vpop.f32.mrf.mxu0 }
 0x3d4   : > { %v2472_v46 = vadd.f32 %v2425_v12, %v2323_v30  ;;  %v506_v12 = vpop.permute.xlu2 %505 }
 0x3d6   : > { %v2439_v22 = vpop.f32.mrf.mxu1 }
 0x3d7   : > { %v2473_v4 = vadd.f32 %v2439_v22, %v2337_v20 }
 0x3d9   : > { %v2469_v60 = vpop.f32.mrf.mxu3 }
 0x3da   : > { %v2479_v10 = vadd.f32 %v2469_v60, %v2367_v61  ;;  %v8573_v60 = vld [vmem:[#allocation7_spill] sm:$0xff] }
 0x3db   : > { %v2427_v6 = vpop.f32.mrf.mxu0 }
 0x3dc   : > { %v2476_v58 = vadd.f32 %v2427_v6, %v2325_v49  ;;  %v6777_v49 = vadd.f32 %v8573_v60, %v506_v12 }
 0x3de   : > { %v2441_v26 = vpop.f32.mrf.mxu1 }
 0x3df   : > { %v2477_v36 = vadd.f32 %v2441_v26, %v2339_v14 }
 0x3e1   : > { %v2564_v35 = vpop.f32.mrf.mxu2  ;;  %v2578_v23 = vpop.f32.mrf.mxu3 }
 0x3e2   : > { %v2585_v63 = vadd.f32 %v2564_v35, %v2474_v11  ;;  %v2586_v17 = vadd.f32 %v2578_v23, %v2475_v40  ;;  %v8575_v23 = vld [vmem:[#allocation5_spill] sm:$0xff] }
 0x3e3   : > { %v2536_v7 = vpop.f32.mrf.mxu0 }
 0x3e4   : > { %v2583_v2 = vadd.f32 %v2536_v7, %v2472_v46  ;;  %v6791_v46 = vadd.f32 %v8575_v23, %v506_v12 }
 0x3e6   : > { %v2550_v57 = vpop.f32.mrf.mxu1  ;;  %8576 = vst [vmem:[#allocation50_spill] sm:$0xff] %v6791_v46 }
 0x3e7   : > { %v2584_v59 = vadd.f32 %v2550_v57, %v2473_v4 }
 0x3e9   : > { %v2566_v42 = vpop.f32.mrf.mxu2  ;;  %v2580_v45 = vpop.f32.mrf.mxu3 }
 0x3ea   : > { %v6744_v5 = vadd.f32 %v2566_v42, %v2478_v25  ;;  %v6746_v38 = vadd.f32 %v2580_v45, %v2479_v10  ;;  %v6779_v10 = vpop.permute.xlu0 %3119  ;;  %v8579_v45 = vld [vmem:[#allocation11_spill] sm:$0xff] }
 0x3eb   : > { %v2538_v37 = vpop.f32.mrf.mxu0 }
 0x3ec   : > { %v6748_v33 = vadd.f32 %v2538_v37, %v2476_v58  ;;  %v8574_v58 = vld [vmem:[#allocation8_spill] sm:$0xff] }
 0x3ed   : > { %v6782_v26 = vadd.f32 %v8574_v58, %v506_v12 }
 0x3ee   : > { %v2552_v48 = vpop.f32.mrf.mxu1 }
 0x3ef   : > { %v6750_v9 = vadd.f32 %v2552_v48, %v2477_v36  ;;  %v4634_v36 = vmul.f32 -1.442695, %v6777_v49  ;;  %v4635_v30 = vmul.f32 -1.442695, %v6782_v26 }
 0x3f1   : > { %v2643_v55 = vpop.f32.mrf.mxu2  ;;  %v2657_v31 = vpop.f32.mrf.mxu3  ;;  %5027 = vpow2.f32 %v4634_v36 }
 0x3f2   : > { %v6752_v52 = vadd.f32 %v2643_v55, %v2585_v63  ;;  %v6754_v11 = vadd.f32 %v2657_v31, %v2586_v17  ;;  %v8577_v63 = vld [vmem:[#allocation6_spill] sm:$0xff]  ;;  %5029 = vpow2.f32 %v4635_v30  ;;  %v511_v57 = vpop.permute.xlu0 %510  ;;  %v8580_v31 = vld [vmem:[#allocation12_spill] sm:$0xff] }
 0x3f3   : > { %v2615_v53 = vpop.f32.mrf.mxu0  ;;  %v6794_v17 = vadd.f32 %v8577_v63, %v506_v12  ;;  %v6803_v37 = vadd.f32 %v8579_v45, %v511_v57  ;;  %v8581_v45 = vld [vmem:[#allocation9_spill] sm:$0xff] }
 0x3f4   : > { %v6756_v15 = vadd.f32 %v2615_v53, %v2583_v2  ;;  %v4632_v2 = vmul.f32 -1.442695, %v6791_v46  ;;  %v6808_v53 = vadd.f32 %v8580_v31, %v511_v57  ;;  %v6823_v31 = vadd.f32 %v8581_v45, %v511_v57 }
 0x3f5   : > { %8578 = vst [vmem:[#allocation51_spill] sm:$0xff] %v6794_v17  ;;  %v4633_v42 = vmul.f32 -1.442695, %v6794_v17  ;;  %v4638_v36 = vmul.f32 -1.442695, %v6803_v37 }
 0x3f6   : > { %v2629_v13 = vpop.f32.mrf.mxu1  ;;  %5031 = vpow2.f32 %v4632_v2  ;;  %v4639_v23 = vmul.f32 -1.442695, %v6808_v53  ;;  %8582 = vst [vmem:[#allocation19_spill] sm:$0xff] %v6823_v31 }
 0x3f7   : > { %v6758_v50 = vadd.f32 %v2629_v13, %v2584_v59  ;;  %v5028_v59 = vpop.eup %5027  ;;  %5033 = vpow2.f32 %v4633_v42  ;;  %v8583_v42 = vld [vmem:[#allocation10_spill] sm:$0xff] }
 0x3f8   : > { %v5030_v48 = vpop.eup %5029  ;;  %v6805_v55 = vadd.f32 1.0, %v5028_v59  ;;  %v6826_v18 = vadd.f32 %v8583_v42, %v511_v57 }
 0x3f9   : > { %v6760_v32 = vpop.f32.mrf.mxu2  ;;  %v6762_v25 = vpop.f32.mrf.mxu3  ;;  %v6815_v30 = vadd.f32 1.0, %v5030_v48 }
 0x3fa   : > { %5035 = vrcp.f32 %v6805_v55  ;;  %8584 = vst [vmem:[#allocation20_spill] sm:$0xff] %v6826_v18  ;;  %v4637_v42 = vmul.f32 -1.442695, %v6826_v18  ;;  %vm715_vm0 = vweird.f32 %v6805_v55 }
 0x3fb   : > { %v6764_v41 = vpop.f32.mrf.mxu0  ;;  %5037 = vpow2.f32 %v4638_v36  ;;  %vm730_vm5 = vweird.f32 %v6815_v30 }
 0x3fc   : > { %v5032_v63 = vpop.eup %5031  ;;  %5039 = vrcp.f32 %v6815_v30 }
 0x3fd   : > { %v5034_v2 = vpop.eup %5033  ;;  %v6820_v59 = vadd.f32 1.0, %v5032_v63  ;;  %5041 = vpow2.f32 %v4639_v23  ;;  %v4636_v63 = vmul.f32 -1.442695, %v6823_v31 }
 0x3fe   : > { %v6766_v27 = vpop.f32.mrf.mxu1  ;;  %v6830_v34 = vadd.f32 1.0, %v5034_v2 }
 0x3ff   : > { %5043 = vrcp.f32 %v6820_v59  ;;  %vm685_vm7 = vweird.f32 %v6820_v59 }
 0x400   : > { %v6828_v24 = vpop.eup %5035  ;;  %5045 = vrcp.f32 %v6830_v34 }
 0x401   : > { %v2754_v56 = vpop.f32.mrf.mxu2  ;;  %v2768_v28 = vpop.f32.mrf.mxu3  ;;  %v711_v2 = vmul.f32 %v6828_v24, %v6805_v55  ;;  %5047 = vpow2.f32 %v4636_v63  ;;  %vm716_vm4 = vweird.f32 %v6828_v24 }
 0x402   : > { %v5038_v43 = vpop.eup %5037  ;;  %v2775_v23 = vadd.f32 %v2754_v56, %v6752_v52  ;;  %v2776_v57 = vadd.f32 %v2768_v28, %v6754_v11  ;;  %5049 = vpow2.f32 %v4637_v42  ;;  %vm6922_vm10 = vmor %vm715_vm0, %vm716_vm4 }
 0x403   : > { %v6772_v22 = vpop.f32.mrf.mxu0  ;;  %v6840_v45 = vpop.eup %5039  ;;  %v6846_v3 = vadd.f32 1.0, %v5038_v43  ;;  %v712_v28 = vsub.f32 1.0, %v711_v2  ;;  %v2669_v43 = vadd.f32 %v6762_v25, %v6746_v38 }
 0x404   : > { %v5042_v29 = vpop.eup %5041  ;;  %v726_v54 = vmul.f32 %v6840_v45, %v6815_v30  ;;  %vm731_vm8 = vweird.f32 %v6840_v45 }
 0x405   : > { %v6848_v52 = vadd.f32 1.0, %v5042_v29  ;;  %v6852_v1 = vpop.eup %5043  ;;  %5051 = vrcp.f32 %v6846_v3  ;;  %vm6971_vm1 = vmor %vm730_vm5, %vm731_vm8  ;;  %vm775_vm2 = vweird.f32 %v6846_v3  ;;  %v8597_v31 = vand.u32 2147483647, %v6846_v3 }
 0x406   : > { %v6774_v61 = vpop.f32.mrf.mxu1  ;;  %v6865_v63 = vpop.eup %5045  ;;  %v681_v25 = vmul.f32 %v6852_v1, %v6820_v59 }
 0x407   : > { %5053 = vrcp.f32 %v6848_v52  ;;  %vm7090_vm8 = vcmp.eq.f32.partialorder %v8597_v31, 8.507059e+37 }
 0x409   : > { %v6768_v21 = vpop.f32.mrf.mxu2  ;;  %v6770_v40 = vpop.f32.mrf.mxu3 }
 0x40b   : > { %v6786_v20 = vpop.f32.mrf.mxu0 }
 0x40e   : > { %v6788_v35 = vpop.f32.mrf.mxu1 }
 0x411   : > { %v2865_v14 = vpop.f32.mrf.mxu2  ;;  %v2879_v6 = vpop.f32.mrf.mxu3 }
 0x412   : > { %v2886_v0 = vadd.f32 %v2865_v14, %v2775_v23  ;;  %v2887_v62 = vadd.f32 %v2879_v6, %v2776_v57  ;;  %v2668_v14 = vadd.f32 %v6760_v32, %v6744_v5  ;;  %v2780_v5 = vadd.f32 %v6770_v40, %v2669_v43  ;;  %v5048_v57 = vpop.eup %5047 }
 0x413   : > { %v6810_v13 = vpop.f32.mrf.mxu0  ;;  %v727_v32 = vsub.f32 1.0, %v726_v54  ;;  %v696_v54 = vmul.f32 %v6865_v63, %v6830_v34 }
 0x414   : > { %v2779_v23 = vadd.f32 %v6768_v21, %v2668_v14 }
 0x416   : > { %v6812_v12 = vpop.f32.mrf.mxu1 }
 0x419   : > { %v6796_v4 = vpop.f32.mrf.mxu2  ;;  %v6798_v7 = vpop.f32.mrf.mxu3 }
 0x41a   : > { %v2890_v42 = vadd.f32 %v6796_v4, %v2779_v23  ;;  %v2891_v21 = vadd.f32 %v6798_v7, %v2780_v5  ;;  %v728_v23 = vmul.f32 %v6840_v45, %v727_v32  ;;  %v682_v5 = vsub.f32 1.0, %v681_v25 }
 0x41b   : > { %v6832_v16 = vpop.f32.mrf.mxu0 }
 0x41e   : > { %v6834_v36 = vpop.f32.mrf.mxu1 }
 0x421   : > { %v2976_v60 = vpop.f32.mrf.mxu2  ;;  %v2990_v58 = vpop.f32.mrf.mxu3 }
 0x422   : > { %v2997_v44 = vadd.f32 %v2976_v60, %v2886_v0  ;;  %v2998_v39 = vadd.f32 %v2990_v58, %v2887_v62  ;;  %v719_v60 = vand.u32 2147483647, %v6805_v55  ;;  %v6894_v58 = vpop.permute.xlu1 %3124 }
 0x424   : > { %vm6896_vm9 = vcmp.eq.f32.partialorder %v719_v60, 8.507059e+37 }
 0x429   : > { %v2978_v48 = vpop.f32.mrf.mxu2  ;;  %v2992_v51 = vpop.f32.mrf.mxu3 }
 0x42a   : > { %v3001_v14 = vadd.f32 %v2978_v48, %v2890_v42  ;;  %v3002_v43 = vadd.f32 %v2992_v51, %v2891_v21 }
 0x431   : > { %v3087_v11 = vpop.f32.mrf.mxu2  ;;  %v3101_v56 = vpop.f32.mrf.mxu3 }
 0x432   : > { %v3108_v6 = vadd.f32 %v3087_v11, %v2997_v44  ;;  %v3109_v0 = vadd.f32 %v3101_v56, %v2998_v39  ;;  %v713_v39 = vmul.f32 %v6828_v24, %v712_v28  ;;  %v5050_v11 = vpop.eup %5049  ;;  %v721_v56 = vand.u32 2147483648, %v6805_v55 }
 0x433   : > { %v6859_v29 = vpop.f32.mrf.mxu0  ;;  %v6861_v62 = vpop.f32.mrf.mxu1  ;;  %v736_v28 = vand.u32 2147483648, %v6815_v30 }
 0x434   : > { %v6870_v38 = vadd.f32 %v6779_v10, %v3108_v6  ;;  %v6873_v44 = vadd.f32 %v6779_v10, %v3109_v0  ;;  %v6889_v4 = vpop.eup %5051  ;;  %v714_v0 = vadd.f32 %v6828_v24, %v713_v39 }
 0x435   : > { %v6901_v21 = vpop.eup %5053  ;;  %v6909_v25 = vor.u32 1.1754944e-38, %v736_v28  ;;  %vm776_vm11 = vweird.f32 %v6889_v4 }
 0x436   : > { %v4845_v40 = vmul.f32 -1.442695, %v6870_v38  ;;  %v4846_v2 = vmul.f32 -1.442695, %v6873_v44  ;;  %v718_v28 = vsel %vm6922_vm10, %v6828_v24, %v714_v0  ;;  %vm7041_vm12 = vmor %vm775_vm2, %vm776_vm11  ;;  %vm790_vm2 = vweird.f32 %v6848_v52 }
 0x438   : > { %5055 = vpow2.f32 %v4845_v40  ;;  %v6903_v40 = vadd.f32 1.0, %v5048_v57 }
 0x439   : > { %5057 = vpow2.f32 %v4846_v2  ;;  %v3089_v7 = vpop.f32.mrf.mxu2  ;;  %v3103_v6 = vpop.f32.mrf.mxu3  ;;  %v722_v2 = vor.u32 1.1754944e-38, %v721_v56  ;;  %v697_v56 = vsub.f32 1.0, %v696_v54  ;;  %v2774_v54 = vadd.f32 %v6774_v61, %v6758_v50 }
 0x43a   : > { %v3112_v8 = vadd.f32 %v3089_v7, %v3001_v14  ;;  %v3113_v48 = vadd.f32 %v3103_v6, %v3002_v43  ;;  %v6933_v7 = vadd.f32 %v6840_v45, %v728_v23  ;;  %v683_v6 = vmul.f32 %v6852_v1, %v682_v5 }
 0x43b   : > { %v6905_v39 = vpop.f32.mrf.mxu0  ;;  %v6907_v32 = vpop.f32.mrf.mxu1  ;;  %v2773_v14 = vadd.f32 %v6772_v22, %v6756_v15  ;;  %5059 = vrcp.f32 %v6903_v40  ;;  %v786_v5 = vmul.f32 %v6901_v21, %v6848_v52  ;;  %v2885_v42 = vadd.f32 %v6812_v12, %v2774_v54 }
 0x43c   : > { %v6913_v60 = vadd.f32 %v6894_v58, %v3112_v8  ;;  %v6916_v43 = vadd.f32 %v6894_v58, %v3113_v48  ;;  %v771_v8 = vmul.f32 %v6889_v4, %v6846_v3  ;;  %v6936_v48 = vadd.f32 1.0, %v5050_v11 }
 0x43d   : > { %v2884_v11 = vadd.f32 %v6810_v13, %v2773_v14  ;;  %v6955_v22 = vadd.f32 %v6852_v1, %v683_v6  ;;  %v6958_v61 = vmul.f32 %v6865_v63, %v697_v56  ;;  %v2996_v13 = vadd.f32 %v6861_v62, %v2885_v42  ;;  %v8614_v14 = vld [vmem:[#allocation29_spill] sm:$0xff] }
 0x43e   : > { %v5056_v55 = vpop.eup %5055  ;;  %v4849_v57 = vmul.f32 -1.442695, %v6913_v60  ;;  %v4850_v23 = vmul.f32 -1.442695, %v6916_v43  ;;  %v772_v50 = vsub.f32 1.0, %v771_v8  ;;  %v6965_v12 = vsel %vm6896_vm9, %v722_v2, %v718_v28 }
 0x43f   : > { %v5058_v24 = vpop.eup %5057  ;;  %v6944_v0 = vadd.f32 1.0, %v5056_v55  ;;  %v2995_v55 = vadd.f32 %v6859_v29, %v2884_v11  ;;  %v781_v6 = vand.u32 2147483648, %v6846_v3  ;;  %v787_v62 = vsub.f32 1.0, %v786_v5 }
 0x440   : > { %v6951_v15 = vadd.f32 1.0, %v5058_v24  ;;  %5061 = vpow2.f32 %v4849_v57  ;;  %v2666_v28 = vadd.f32 %v6764_v41, %v6748_v33  ;;  %v773_v54 = vmul.f32 %v6889_v4, %v772_v50 }
 0x441   : > { %5063 = vrcp.f32 %v6944_v0  ;;  %v6982_v2 = vpop.eup %5059  ;;  %v2667_v5 = vadd.f32 %v6766_v27, %v6750_v9  ;;  %v7003_v50 = vor.u32 1.1754944e-38, %v781_v6  ;;  %vm3202_vm13 = vweird.f32 %v6944_v0 }
 0x442   : > { %5065 = vrcp.f32 %v6951_v15  ;;  %v2777_v33 = vadd.f32 %v6786_v20, %v2666_v28  ;;  %vm3217_vm14 = vweird.f32 %v6951_v15  ;;  %v3223_v47 = vand.u32 2147483648, %v6951_v15 }
 0x443   : > { %5067 = vpow2.f32 %v4850_v23  ;;  %v3059_v56 = vpop.f32.mrf.mxu0  ;;  %v3073_v8 = vpop.f32.mrf.mxu1  ;;  %v2778_v9 = vadd.f32 %v6788_v35, %v2667_v5  ;;  %vm791_vm9 = vweird.f32 %v6901_v21 }
 0x444   : > { %5069 = vrcp.f32 %v6936_v48  ;;  %v3106_v51 = vadd.f32 %v3059_v56, %v2995_v55  ;;  %v3107_v42 = vadd.f32 %v3073_v8, %v2996_v13  ;;  %v788_v8 = vmul.f32 %v6901_v21, %v787_v62 }
 0x445   : > { %v2888_v20 = vadd.f32 %v6832_v16, %v2777_v33  ;;  %v7018_v62 = vadd.f32 %v6889_v4, %v773_v54  ;;  %v2889_v35 = vadd.f32 %v6834_v36, %v2778_v9  ;;  %v7031_v54 = vmul.f32 %v6982_v2, %v6903_v40 }
 0x446   : > { %v5062_v23 = vpop.eup %5061  ;;  %v6992_v11 = vadd.f32 %v6779_v10, %v3106_v51  ;;  %v6995_v55 = vadd.f32 %v6779_v10, %v3107_v42  ;;  %v7027_v13 = vadd.f32 %v6901_v21, %v788_v8  ;;  %v3206_v8 = vand.u32 2147483647, %v6944_v0 }
 0x447   : > { %v6998_v56 = vpop.eup %5063  ;;  %v7001_v41 = vadd.f32 1.0, %v5062_v23  ;;  %v2999_v36 = vadd.f32 %v6905_v39, %v2888_v20  ;;  %v3000_v9 = vadd.f32 %v6907_v32, %v2889_v35 }
 0x448   : > { %v7006_v24 = vpop.eup %5065  ;;  %v3198_v27 = vmul.f32 %v6998_v56, %v6944_v0  ;;  %v4843_v10 = vmul.f32 -1.442695, %v6992_v11  ;;  %v4844_v5 = vmul.f32 -1.442695, %v6995_v55  ;;  %vm3203_vm15 = vweird.f32 %v6998_v56 }
 0x449   : > { %v5068_v51 = vpop.eup %5067  ;;  %v3213_v6 = vmul.f32 %v7006_v24, %v6951_v15  ;;  %5071 = vrcp.f32 %v7001_v41  ;;  %v3268_v39 = vand.u32 2147483648, %v7001_v41  ;;  %vm7063_vm0 = vcmp.eq.f32.partialorder %v3206_v8, 8.507059e+37  ;;  %vm7072_vm10 = vmor %vm3202_vm13, %vm3203_vm15 }
 0x44a   : > { %v7020_v42 = vpop.eup %5069  ;;  %v3199_v28 = vsub.f32 1.0, %v3198_v27  ;;  %v7023_v23 = vadd.f32 1.0, %v5068_v51  ;;  %5073 = vpow2.f32 %v4843_v10  ;;  %v3208_v10 = vand.u32 2147483648, %v6944_v0 }
 0x44b   : > { %v3214_v29 = vsub.f32 1.0, %v3213_v6  ;;  %v3061_v16 = vpop.f32.mrf.mxu0  ;;  %v3075_v33 = vpop.f32.mrf.mxu1  ;;  %vm3218_vm4 = vweird.f32 %v7006_v24  ;;  %vm3262_vm5 = vweird.f32 %v7001_v41 }
 0x44c   : > { %v3200_v57 = vmul.f32 %v6998_v56, %v3199_v28  ;;  %5075 = vrcp.f32 %v7023_v23  ;;  %v3110_v32 = vadd.f32 %v3061_v16, %v2999_v36  ;;  %v3111_v51 = vadd.f32 %v3075_v33, %v3000_v9  ;;  %vm7105_vm13 = vmor %vm3217_vm14, %vm3218_vm4 }
 0x44d   : > { %5077 = vpow2.f32 %v4844_v5  ;;  %v3215_v35 = vmul.f32 %v7006_v24, %v3214_v29  ;;  %v3221_v28 = vand.u32 2147483647, %v6951_v15  ;;  %v3266_v9 = vand.u32 2147483647, %v7001_v41 }
 0x44e   : > { %v3201_v6 = vadd.f32 %v6998_v56, %v3200_v57  ;;  %v7061_v17 = vadd.f32 %v6894_v58, %v3110_v32  ;;  %v3209_v57 = vor.u32 1.1754944e-38, %v3208_v10  ;;  %v7080_v10 = vadd.f32 %v6894_v58, %v3111_v51 }
 0x44f   : > { %v5072_v20 = vpop.eup %5071  ;;  %v3216_v18 = vadd.f32 %v7006_v24, %v3215_v35  ;;  %v3283_v33 = vand.u32 2147483648, %v7023_v23  ;;  %vm3222_vm6 = vcmp.eq.f32.partialorder %v3221_v28, 8.507059e+37  ;;  %vm3277_vm3 = vweird.f32 %v7023_v23 }
 0x450   : > { %v3258_v19 = vmul.f32 %v5072_v20, %v7001_v41  ;;  %v5074_v5 = vpop.eup %5073  ;;  %v3205_v32 = vsel %vm7072_vm10, %v6998_v56, %v3201_v6  ;;  %v4847_v46 = vmul.f32 -1.442695, %v7061_v17  ;;  %vm3263_vm11 = vweird.f32 %v5072_v20 }
 0x451   : > { %v7077_v8 = vadd.f32 1.0, %v5074_v5  ;;  %v3269_v5 = vor.u32 1.1754944e-38, %v3268_v39  ;;  %v3281_v6 = vand.u32 2147483647, %v7023_v23  ;;  %v3210_v3 = vsel %vm7063_vm0, %v3209_v57, %v3205_v32  ;;  %vm3264_vm14 = vmor %vm3262_vm5, %vm3263_vm11 }
 0x452   : > { %v5076_v29 = vpop.eup %5075  ;;  %v3259_v36 = vsub.f32 1.0, %v3258_v19  ;;  %vm686_vm0 = vweird.f32 %v6852_v1  ;;  %v3220_v15 = vsel %vm7105_vm13, %v7006_v24, %v3216_v18  ;;  %v3224_v57 = vor.u32 1.1754944e-38, %v3223_v47 }
 0x453   : > { %v3273_v0 = vmul.f32 %v5076_v29, %v7023_v23  ;;  %v5078_v58 = vpop.eup %5077  ;;  %5079 = vrcp.f32 %v7077_v8  ;;  %vm3278_vm4 = vweird.f32 %v5076_v29  ;;  %vm3267_vm10 = vcmp.eq.f32.partialorder %v3266_v9, 8.507059e+37 }
 0x454   : > { %v3260_v51 = vmul.f32 %v5072_v20, %v3259_v36  ;;  %v7097_v35 = vadd.f32 1.0, %v5078_v58  ;;  %5081 = vpow2.f32 %v4847_v46  ;;  %v4848_v36 = vmul.f32 -1.442695, %v7080_v10  ;;  %vm3279_vm5 = vmor %vm3277_vm3, %vm3278_vm4 }
 0x455   : > { %v3274_v56 = vsub.f32 1.0, %v3273_v0  ;;  %v8602_v0 = vand.u32 2147483647, %v6815_v30  ;;  %v3289_v24 = vmul.f32 %v3210_v3, %v6870_v38  ;;  %v3225_v41 = vsel %vm3222_vm6, %v3224_v57, %v3220_v15  ;;  %vm7150_vm3 = vmor %vm790_vm2, %vm791_vm9 }
 0x456   : > { %v3261_v39 = vadd.f32 %v5072_v20, %v3260_v51  ;;  %5083 = vrcp.f32 %v7097_v35  ;;  %v3284_v47 = vor.u32 1.1754944e-38, %v3283_v33  ;;  %vm3282_vm11 = vcmp.eq.f32.partialorder %v3281_v6, 8.507059e+37 }
 0x457   : > { %vm7113_vm15 = vcmp.eq.f32.partialorder %v8602_v0, 8.507059e+37  ;;  %v3275_v16 = vmul.f32 %v5076_v29, %v3274_v56  ;;  %5085 = vpow2.f32 %v4848_v36  ;;  %v8605_v38 = vsel %vm7041_vm12, %v6889_v4, %v7018_v62 }
 0x458   : > { %v3265_v30 = vsel %vm3264_vm14, %v5072_v20, %v3261_v39  ;;  %v3290_v3 = vmul.f32 %v3225_v41, %v6873_v44  ;;  %v793_v4 = vsel %vm7150_vm3, %v6901_v21, %v7027_v13  ;;  %v8608_v19 = vand.u32 2147483648, %v6848_v52 }
 0x459   : > { %v3270_v32 = vsel %vm3267_vm10, %v3269_v5, %v3265_v30  ;;  %v3276_v58 = vadd.f32 %v5076_v29, %v3275_v16  ;;  %v7127_v18 = vpop.eup %5079  ;;  %v756_v5 = vmul.f32 %v7020_v42, %v6936_v48  ;;  %v742_v44 = vsub.f32 1.0, %v7031_v54 }
 0x45a   : > { %v3293_v51 = vmul.f32 %v3270_v32, %v6913_v60  ;;  %v5082_v20 = vpop.eup %5081  ;;  %v3168_v28 = vmul.f32 %v7127_v18, %v7077_v8  ;;  %v783_v60 = vsel %vm7090_vm8, %v7003_v50, %v8605_v38  ;;  %v797_v33 = vor.u32 1.1754944e-38, %v8608_v19 }
 0x45b   : > { %v3280_v9 = vsel %vm3279_vm5, %v5076_v29, %v3276_v58  ;;  %v7136_v31 = vadd.f32 1.0, %v5082_v20  ;;  %v8610_v13 = vand.u32 2147483647, %v6848_v52  ;;  %v757_v0 = vsub.f32 1.0, %v756_v5 }
 0x45c   : > { %v3301_v23 = vpack.c.bf16 %v3293_v51, %v3289_v24  ;;  %v3285_v56 = vsel %vm3282_vm11, %v3284_v47, %v3280_v9  ;;  %v7154_v6 = vpop.eup %5083  ;;  %v3169_v39 = vsub.f32 1.0, %v3168_v28  ;;  %v926_v54 = vmul.f32 %v783_v60, %v6803_v37  ;;  %v8615_v28 = vld [vmem:[#allocation33_spill] sm:$0xff] }
 0x45d   : > { %v3294_v27 = vmul.f32 %v3285_v56, %v6916_v43  ;;  %v5086_v50 = vpop.eup %5085  ;;  %v3183_v62 = vmul.f32 %v7154_v6, %v7097_v35  ;;  %5087 = vrcp.f32 %v7136_v31  ;;  %v8609_v43 = vsel %vm6971_vm1, %v6840_v45, %v6933_v7  ;;  %vm7186_vm1 = vmor %vm685_vm7, %vm686_vm0  ;;  %v8634_v45 = vld [vmem:[#allocation32_spill] sm:$0xff] }
 0x45e   : > { %3391 = vmatpush.bf16.msrb.mxu2 %v3301_v23  ;;  %v738_v21 = vsel %vm7113_vm15, %v6909_v25, %v8609_v43  ;;  %vm795_vm6 = vcmp.eq.f32.partialorder %v8610_v13, 8.507059e+37  ;;  %v3170_v15 = vmul.f32 %v7127_v18, %v3169_v39  ;;  %v7179_v16 = vadd.f32 1.0, %v5086_v50 }
 0x45f   : > { %v3302_v36 = vpack.c.bf16 %v3294_v27, %v3290_v3  ;;  %v798_v57 = vsel %vm795_vm6, %v797_v33, %v793_v4  ;;  %v3184_v30 = vsub.f32 1.0, %v3183_v62  ;;  %v8613_v52 = vand.u32 2147483648, %v6820_v59  ;;  %v7353_v4 = vpop.permute.xlu1 %3323 }
 0x460   : > { %v751_v7 = vand.u32 2147483648, %v6903_v40  ;;  %v7197_v37 = vadd.f32 %v6865_v63, %v6958_v61  ;;  %5089 = vrcp.f32 %v7179_v16  ;;  %v922_v46 = vmul.f32 %v6965_v12, %v6777_v49 }
 0x461   : > { %3410 = vmatpush.bf16.msrb.mxu3 %v3302_v36  ;;  %v7192_v25 = vor.u32 1.1754944e-38, %v8613_v52  ;;  %v688_v32 = vsel %vm7186_vm1, %v6852_v1, %v6955_v22  ;;  %v743_v58 = vmul.f32 %v6982_v2, %v742_v44  ;;  %v923_v24 = vmul.f32 %v738_v21, %v6782_v26 }
 0x462   : > { %3392 = vmatpush.bf16.msrb.mxu2 %v8614_v14  ;;  %v927_v41 = vmul.f32 %v798_v57, %v6808_v53  ;;  %v749_v61 = vand.u32 2147483647, %v6903_v40  ;;  %v758_v51 = vmul.f32 %v7020_v42, %v757_v0  ;;  %v3171_v20 = vadd.f32 %v7127_v18, %v3170_v15  ;;  %v7222_v53 = vld [vmem:[%s8355_s8] sm:$0xff] }
 0x463   : > { %v5088_v47 = vpop.eup %5087  ;;  %vm3173_vm7 = vweird.f32 %v7127_v18  ;;  %v3176_v49 = vand.u32 2147483647, %v7077_v8  ;;  %v3297_v12 = vpack.c.bf16 %v926_v54, %v922_v46  ;;  %vm745_vm12 = vweird.f32 %v6903_v40 }
 0x464   : > { %v3185_v9 = vmul.f32 %v7154_v6, %v3184_v30  ;;  %v3228_v26 = vmul.f32 %v5088_v47, %v7136_v31  ;;  %vm746_vm9 = vweird.f32 %v6982_v2  ;;  %v7225_v5 = vor.u32 1.1754944e-38, %v751_v7 }
 0x465   : > { %3411 = vmatpush.bf16.msrb.mxu3 %v8615_v28  ;;  %vm3172_vm8 = vweird.f32 %v7077_v8  ;;  %v3178_v23 = vand.u32 2147483648, %v7077_v8  ;;  %vm3341_vm2 = vcmask 392192   ;;  %v744_v56 = vadd.f32 %v6982_v2, %v743_v58 }
 0x466   : > { %3393 = vmatpush.bf16.msrb.mxu2 %v3297_v12  ;;  %vm7232_vm13 = vmor %vm3172_vm8, %vm3173_vm7  ;;  %v3229_v60 = vsub.f32 1.0, %v3228_v26  ;;  %v3236_v29 = vand.u32 2147483647, %v7136_v31  ;;  %v3298_v3 = vpack.c.bf16 %v927_v41, %v923_v24  ;;  %v7238_v27 = vadd.f32 %v7020_v42, %v758_v51  ;;  %v5090_v8 = vpop.eup %5089 }
 0x467   : > { %vm761_vm15 = vweird.f32 %v7020_v42  ;;  %v3175_v39 = vsel %vm7232_vm13, %v7127_v18, %v3171_v20  ;;  %vm7244_vm0 = vcmp.eq.f32.partialorder %v3176_v49, 8.507059e+37  ;;  %vm3188_vm14 = vweird.f32 %v7154_v6 }
 0x468   : > { %v3238_v50 = vand.u32 2147483648, %v7136_v31  ;;  %v3186_v62 = vadd.f32 %v7154_v6, %v3185_v9  ;;  %v3230_v19 = vmul.f32 %v5088_v47, %v3229_v60  ;;  %vm3233_vm4 = vweird.f32 %v5088_v47 }
 0x469   : > { %v3243_v33 = vmul.f32 %v5090_v8, %v7179_v16  ;;  %3412 = vmatpush.bf16.msrb.mxu3 %v3298_v3  ;;  %4863 = vmatmul.msk.bf16.vlgmr.msrb.gmra.mxu2 %vm3341_vm2, %v7222_v53  ;;  %vm7254_vm10 = vcmp.eq.f32.partialorder %v749_v61, 8.507059e+37  ;;  %vm701_vm5 = vweird.f32 %v6865_v63  ;;  %v3179_v44 = vor.u32 1.1754944e-38, %v3178_v23  ;;  %v8636_v3 = vld [vmem:[#allocation20_spill] sm:$0xff] }
 0x46a   : > { %vm3187_vm11 = vweird.f32 %v7097_v35  ;;  %v3191_v36 = vand.u32 2147483647, %v7097_v35  ;;  %v3193_v43 = vand.u32 2147483648, %v7097_v35  ;;  %v3231_v13 = vadd.f32 %v5088_v47, %v3230_v19 }
 0x46b   : > { %vm7262_vm3 = vmor %vm3187_vm11, %vm3188_vm14  ;;  %vm3232_vm6 = vweird.f32 %v7136_v31  ;;  %vm7267_vm7 = vcmp.eq.f32.partialorder %v3236_v29, 8.507059e+37  ;;  %v3244_v15 = vsub.f32 1.0, %v3243_v33  ;;  %v8626_v54 = vand.u32 2147483647, %v6820_v59 }
 0x46c   : > { %v3180_v35 = vsel %vm7244_vm0, %v3179_v44, %v3175_v39  ;;  %vm3234_vm13 = vmor %vm3232_vm6, %vm3233_vm4  ;;  %v3239_v30 = vor.u32 1.1754944e-38, %v3238_v50  ;;  %v3251_v52 = vand.u32 2147483647, %v7179_v16  ;;  %v3253_v31 = vand.u32 2147483648, %v7179_v16  ;;  %4865 = vmatmul.msk.bf16.vlgmr.msrb.gmra.mxu3 %vm3341_vm2, %v7222_v53  ;;  %v3314_v50 = vpop.permute.xlu0 %3313 }
 0x46d   : > { %vm7273_vm8 = vcmp.eq.f32.partialorder %v8626_v54, 8.507059e+37  ;;  %v3190_v59 = vsel %vm7262_vm3, %v7154_v6, %v3186_v62  ;;  %v3235_v7 = vsel %vm3234_vm13, %v5088_v47, %v3231_v13  ;;  %v3245_v14 = vmul.f32 %v5090_v8, %v3244_v15  ;;  %vm7291_vm0 = vmor %vm745_vm12, %vm746_vm9 }
 0x46e   : > { %vm3248_vm14 = vweird.f32 %v5090_v8  ;;  %vm3192_vm4 = vcmp.eq.f32.partialorder %v3191_v36, 8.507059e+37  ;;  %v3194_v58 = vor.u32 1.1754944e-38, %v3193_v43  ;;  %v3240_v24 = vsel %vm7267_vm7, %v3239_v30, %v3235_v7  ;;  %v7361_v43 = vpop.permute.xlu1 %3318 }
 0x46f   : > { %v748_v6 = vsel %vm7291_vm0, %v6982_v2, %v744_v56  ;;  %v3287_v41 = vmul.f32 %v3180_v35, %v6992_v11  ;;  %v3291_v61 = vmul.f32 %v3240_v24, %v7061_v17  ;;  %v3246_v51 = vadd.f32 %v5090_v8, %v3245_v14 }
 0x470   : > { %vm3247_vm11 = vweird.f32 %v7179_v16  ;;  %v3195_v40 = vsel %vm3192_vm4, %v3194_v58, %v3190_v59  ;;  %v3254_v47 = vor.u32 1.1754944e-38, %v3253_v31  ;;  %vm760_vm9 = vweird.f32 %v6936_v48 }
 0x471   : > { %vm3249_vm12 = vmor %vm3247_vm11, %vm3248_vm14  ;;  %v766_v20 = vand.u32 2147483648, %v6936_v48  ;;  %v3299_v49 = vpack.c.bf16 %v3291_v61, %v3287_v41  ;;  %vm3252_vm3 = vcmp.eq.f32.partialorder %v3251_v52, 8.507059e+37  ;;  %v764_v9 = vand.u32 2147483647, %v6936_v48 }
 0x472   : > { %v3250_v12 = vsel %vm3249_vm12, %v5090_v8, %v3246_v51  ;;  %v753_v17 = vsel %vm7254_vm10, %v7225_v5, %v748_v6  ;;  %vm700_vm6 = vweird.f32 %v6830_v34  ;;  %v706_v11 = vand.u32 2147483648, %v6830_v34  ;;  %vm7313_vm7 = vmor %vm760_vm9, %vm761_vm15 }
 0x473   : > { %v3255_v2 = vsel %vm3252_vm3, %v3254_v47, %v3250_v12  ;;  %v3288_v26 = vmul.f32 %v3195_v40, %v6995_v55  ;;  %3353 = vmatpush.bf16.msrb.mxu0 %v3299_v49  ;;  %v704_v48 = vand.u32 2147483647, %v6830_v34  ;;  %v763_v5 = vsel %vm7313_vm7, %v7020_v42, %v7238_v27  ;;  %vm702_vm15 = vmor %vm700_vm6, %vm701_vm5  ;;  %v8633_v34 = vld [vmem:[#allocation19_spill] sm:$0xff]  ;;  %v4930_v42 = vld [vmem:[%s8355_s8 + $0x8] sm:$0xff] }
 0x474   : > { %v3292_v28 = vmul.f32 %v3255_v2, %v7080_v10  ;;  %v693_v23 = vsel %vm7273_vm8, %v7192_v25, %v688_v32  ;;  %v767_v55 = vor.u32 1.1754944e-38, %v766_v20  ;;  %v924_v56 = vmul.f32 %v753_v17, %v8633_v34  ;;  %v8635_v25 = vld [vmem:[#allocation50_spill] sm:$0xff] }
 0x475   : > { %v703_v38 = vsel %vm702_vm15, %v6865_v63, %v7197_v37  ;;  %vm765_vm10 = vcmp.eq.f32.partialorder %v764_v9, 8.507059e+37  ;;  %v707_v1 = vor.u32 1.1754944e-38, %v706_v11  ;;  %v920_v32 = vmul.f32 %v693_v23, %v8635_v25  ;;  %v8637_v63 = vld [vmem:[#allocation31_spill] sm:$0xff] }
 0x476   : > { %v3300_v10 = vpack.c.bf16 %v3292_v28, %v3288_v26  ;;  %v768_v22 = vsel %vm765_vm10, %v767_v55, %v763_v5  ;;  %vm705_vm1 = vcmp.eq.f32.partialorder %v704_v48, 8.507059e+37  ;;  %v8638_v37 = vld [vmem:[#allocation51_spill] sm:$0xff] }
 0x477   : > { %3354 = vmatpush.bf16.msrb.mxu0 %v8634_v45  ;;  %v708_v60 = vsel %vm705_vm1, %v707_v1, %v703_v38  ;;  %v3295_v29 = vpack.c.bf16 %v924_v56, %v920_v32  ;;  %v925_v27 = vmul.f32 %v768_v22, %v8636_v3 }
 0x478   : > { %3372 = vmatpush.bf16.msrb.mxu1 %v3300_v10  ;;  %v921_v8 = vmul.f32 %v708_v60, %v8638_v37 }
 0x479   : > { %4864 = vmatmul.msk.bf16.gmra.mxu2 %vm3341_vm2, %v4930_v42 }
 0x47a   : > { %v3296_v39 = vpack.c.bf16 %v925_v27, %v921_v8 }
 0x47b   : > { %3355 = vmatpush.bf16.msrb.mxu0 %v3295_v29 }
 0x47c   : > { %3373 = vmatpush.bf16.msrb.mxu1 %v8637_v63  ;;  %4866 = vmatmul.msk.bf16.gmra.mxu3 %vm3341_vm2, %v4930_v42 }
 0x47e   : > { %4859 = vmatmul.msk.bf16.vlgmr.msrb.gmra.mxu0 %vm3341_vm2, %v7222_v53 }
 0x480   : > { %3374 = vmatpush.bf16.msrb.mxu1 %v3296_v39 }
 0x483   : > { %4861 = vmatmul.msk.bf16.vlgmr.msrb.gmra.mxu1 %vm3341_vm2, %v7222_v53 }
 0x48e   : > { %4860 = vmatmul.msk.bf16.gmra.mxu0 %vm3341_vm2, %v4930_v42 }
 0x493   : > { %4862 = vmatmul.msk.bf16.gmra.mxu1 %vm3341_vm2, %v4930_v42 }
 0x4ec   : > { %v3395_v62 = vpop.f32.mrf.mxu2 }
 0x4ed   : > { %v7355_v19 = vadd.f32 %v3395_v62, %v3314_v50 }
 0x4ef   : > { %v4869_v33 = vmul.f32 -1.442695, %v7355_v19  ;;  %v3414_v18 = vpop.f32.mrf.mxu3 }
 0x4f0   : > { %v7358_v44 = vadd.f32 %v3414_v18, %v3314_v50 }
 0x4f1   : > { %5091 = vpow2.f32 %v4869_v33  ;;  %v7438_v33 = vpop.permute.xlu2 %3328 }
 0x4f2   : > { %v4870_v36 = vmul.f32 -1.442695, %v7358_v44 }
 0x4f4   : > { %5093 = vpow2.f32 %v4870_v36  ;;  %v3397_v53 = vpop.f32.mrf.mxu2 }
 0x4f5   : > { %v7364_v21 = vadd.f32 %v3397_v53, %v7361_v43 }
 0x4f7   : > { %v5092_v13 = vpop.eup %5091  ;;  %v4873_v0 = vmul.f32 -1.442695, %v7364_v21  ;;  %v3416_v15 = vpop.f32.mrf.mxu3 }
 0x4f8   : > { %v7368_v54 = vadd.f32 %v3416_v15, %v7361_v43  ;;  %v7370_v57 = vadd.f32 1.0, %v5092_v13 }
 0x4f9   : > { %5095 = vpow2.f32 %v4873_v0 }
 0x4fa   : > { %v5094_v35 = vpop.eup %5093  ;;  %v4874_v52 = vmul.f32 -1.442695, %v7368_v54  ;;  %5097 = vrcp.f32 %v7370_v57  ;;  %v3527_v34 = vand.u32 2147483647, %v7370_v57  ;;  %vm3523_vm2 = vweird.f32 %v7370_v57 }
 0x4fb   : > { %v7372_v30 = vadd.f32 1.0, %v5094_v35  ;;  %v3357_v31 = vpop.f32.mrf.mxu0  ;;  %v3529_v32 = vand.u32 2147483648, %v7370_v57 }
 0x4fc   : > { %v7375_v59 = vadd.f32 %v3357_v31, %v3314_v50  ;;  %v3400_v7 = vpop.f32.mrf.mxu2  ;;  %5099 = vpow2.f32 %v4874_v52  ;;  %vm7426_vm8 = vcmp.eq.f32.partialorder %v3527_v34, 8.507059e+37 }
 0x4fd   : > { %5101 = vrcp.f32 %v7372_v30  ;;  %v7381_v24 = vadd.f32 %v3400_v7, %v7353_v4  ;;  %v3542_v60 = vand.u32 2147483647, %v7372_v30  ;;  %v3544_v27 = vand.u32 2147483648, %v7372_v30 }
 0x4fe   : > { %v4867_v14 = vmul.f32 -1.442695, %v7375_v59  ;;  %v3530_v13 = vor.u32 1.1754944e-38, %v3529_v32  ;;  %vm3538_vm14 = vweird.f32 %v7372_v30 }
 0x4ff   : > { %v5096_v46 = vpop.eup %5095  ;;  %v3419_v6 = vpop.f32.mrf.mxu3  ;;  %v4877_v47 = vmul.f32 -1.442695, %v7381_v24  ;;  %vm7447_vm0 = vcmp.eq.f32.partialorder %v3542_v60, 8.507059e+37  ;;  %v3545_v52 = vor.u32 1.1754944e-38, %v3544_v27 }
 0x500   : > { %v3376_v58 = vpop.f32.mrf.mxu1  ;;  %v7386_v61 = vadd.f32 %v3419_v6, %v7353_v4  ;;  %v7388_v51 = vadd.f32 1.0, %v5096_v46  ;;  %5103 = vpow2.f32 %v4867_v14  ;;  %v7390_v40 = vpop.eup %5097 }
 0x501   : > { %v7383_v41 = vadd.f32 %v3376_v58, %v3314_v50  ;;  %v3519_v17 = vmul.f32 %v7390_v40, %v7370_v57  ;;  %vm3524_vm5 = vweird.f32 %v7390_v40 }
 0x502   : > { %v5100_v20 = vpop.eup %5099  ;;  %v4878_v9 = vmul.f32 -1.442695, %v7386_v61  ;;  %5105 = vrcp.f32 %v7388_v51  ;;  %vm7458_vm4 = vmor %vm3523_vm2, %vm3524_vm5  ;;  %vm3583_vm11 = vweird.f32 %v7388_v51 }
 0x503   : > { %v4868_v49 = vmul.f32 -1.442695, %v7383_v41  ;;  %v7394_v12 = vpop.eup %5101  ;;  %v7398_v2 = vadd.f32 1.0, %v5100_v20  ;;  %5107 = vpow2.f32 %v4877_v47  ;;  %v3520_v26 = vsub.f32 1.0, %v3519_v17  ;;  %v3359_v55 = vpop.f32.mrf.mxu0 }
 0x504   : > { %v3534_v16 = vmul.f32 %v7394_v12, %v7372_v30  ;;  %v7420_v25 = vadd.f32 %v3359_v55, %v7361_v43  ;;  %v3402_v37 = vpop.f32.mrf.mxu2  ;;  %vm3539_vm13 = vweird.f32 %v7394_v12  ;;  %v3587_v30 = vand.u32 2147483647, %v7388_v51 }
 0x505   : > { %5109 = vpow2.f32 %v4868_v49  ;;  %v3521_v38 = vmul.f32 %v7390_v40, %v3520_v26  ;;  %v7452_v15 = vadd.f32 %v3402_v37, %v7438_v33  ;;  %vm7470_vm12 = vmor %vm3538_vm14, %vm3539_vm13  ;;  %v3589_v47 = vand.u32 2147483648, %v7388_v51 }
 0x506   : > { %v5104_v11 = vpop.eup %5103  ;;  %5111 = vpow2.f32 %v4878_v9  ;;  %v3535_v5 = vsub.f32 1.0, %v3534_v16  ;;  %v4871_v36 = vmul.f32 -1.442695, %v7420_v25  ;;  %v3602_v20 = vand.u32 2147483647, %v7398_v2 }
 0x507   : > { %5113 = vrcp.f32 %v7398_v2  ;;  %v7405_v28 = vadd.f32 1.0, %v5104_v11  ;;  %v3522_v8 = vadd.f32 %v7390_v40, %v3521_v38  ;;  %v3421_v31 = vpop.f32.mrf.mxu3  ;;  %v3604_v49 = vand.u32 2147483648, %v7398_v2 }
 0x508   : > { %v7407_v48 = vpop.eup %5105  ;;  %v3536_v22 = vmul.f32 %v7394_v12, %v3535_v5  ;;  %v3378_v29 = vpop.f32.mrf.mxu1  ;;  %v4881_v9 = vmul.f32 -1.442695, %v7452_v15  ;;  %v7486_v17 = vadd.f32 %v3421_v31, %v7438_v33  ;;  %vm7493_vm3 = vcmp.eq.f32.partialorder %v3587_v30, 8.507059e+37 }
 0x509   : > { %v5108_v23 = vpop.eup %5107  ;;  %v3579_v42 = vmul.f32 %v7407_v48, %v7388_v51  ;;  %5115 = vrcp.f32 %v7405_v28  ;;  %v3526_v7 = vsel %vm7458_vm4, %v7390_v40, %v3522_v8  ;;  %vm3584_vm9 = vweird.f32 %v7407_v48 }
 0x50a   : > { %v7417_v45 = vadd.f32 1.0, %v5108_v23  ;;  %v3537_v18 = vadd.f32 %v7394_v12, %v3536_v22  ;;  %v3499_v26 = vand.u32 2147483648, %v7405_v28  ;;  %v7499_v5 = vadd.f32 %v3378_v29, %v7361_v43  ;;  %vm7526_vm7 = vmor %vm3583_vm11, %vm3584_vm9 }
 0x50b   : > { %v5110_v10 = vpop.eup %5109  ;;  %v3580_v39 = vsub.f32 1.0, %v3579_v42  ;;  %v3362_v58 = vpop.f32.mrf.mxu0  ;;  %v3590_v38 = vor.u32 1.1754944e-38, %v3589_v47  ;;  %vm3598_vm6 = vweird.f32 %v7398_v2  ;;  %v4882_v22 = vmul.f32 -1.442695, %v7486_v17 }
 0x50c   : > { %v5112_v56 = vpop.eup %5111  ;;  %v7431_v63 = vadd.f32 1.0, %v5110_v10  ;;  %5117 = vrcp.f32 %v7417_v45  ;;  %v3541_v6 = vsel %vm7470_vm12, %v7394_v12, %v3537_v18  ;;  %v3531_v12 = vsel %vm7426_vm8, %v3530_v13, %v3526_v7 }
 0x50d   : > { %v7414_v1 = vpop.eup %5113  ;;  %v7436_v62 = vadd.f32 1.0, %v5112_v56  ;;  %v3581_v14 = vmul.f32 %v7407_v48, %v3580_v39  ;;  %v3546_v23 = vsel %vm7447_vm0, %v3545_v52, %v3541_v6  ;;  %v7512_v43 = vmul.f32 %v3531_v12, %v7355_v19 }
 0x50e   : > { %v3594_v50 = vmul.f32 %v7414_v1, %v7398_v2  ;;  %5119 = vrcp.f32 %v7431_v63  ;;  %v3605_v60 = vor.u32 1.1754944e-38, %v3604_v49  ;;  %v7517_v3 = vadd.f32 %v3362_v58, %v7353_v4 }
 0x50f   : > { %v7444_v53 = vpop.eup %5115  ;;  %5121 = vrcp.f32 %v7436_v62  ;;  %v3582_v55 = vadd.f32 %v7407_v48, %v3581_v14  ;;  %v7520_v37 = vmul.f32 %v3546_v23, %v7358_v44  ;;  %vm7530_vm15 = vcmp.eq.f32.partialorder %v3602_v20, 8.507059e+37 }
 0x510   : > { %v3595_v46 = vsub.f32 1.0, %v3594_v50  ;;  %v3489_v40 = vmul.f32 %v7444_v53, %v7405_v28  ;;  %5123 = vpow2.f32 %v4871_v36  ;;  %v3381_v34 = vpop.f32.mrf.mxu1  ;;  %vm3493_vm10 = vweird.f32 %v7405_v28 }
 0x511   : > { %5125 = vpow2.f32 %v4881_v9  ;;  %v3497_v39 = vand.u32 2147483647, %v7405_v28  ;;  %v4872_v50 = vmul.f32 -1.442695, %v7499_v5  ;;  %v3586_v44 = vsel %vm7526_vm7, %v7407_v48, %v3582_v55 }
 0x512   : > { %v7488_v11 = vpop.eup %5117  ;;  %v3596_v10 = vmul.f32 %v7414_v1, %v3595_v46  ;;  %v3490_v42 = vsub.f32 1.0, %v3489_v40  ;;  %vm3599_vm1 = vweird.f32 %v7414_v1  ;;  %v3500_v18 = vor.u32 1.1754944e-38, %v3499_v26 }
 0x513   : > { %v3639_v29 = vmul.f32 %v7488_v11, %v7417_v45  ;;  %5127 = vpow2.f32 %v4882_v22  ;;  %v7546_v0 = vadd.f32 %v3381_v34, %v7353_v4  ;;  %v4875_v31 = vmul.f32 -1.442695, %v7517_v3  ;;  %v3364_v7 = vpop.f32.mrf.mxu0  ;;  %vm7555_vm2 = vmor %vm3598_vm6, %vm3599_vm1 }
 0x514   : > { %v7505_v56 = vpop.eup %5119  ;;  %v3597_v51 = vadd.f32 %v7414_v1, %v3596_v10  ;;  %v3491_v36 = vmul.f32 %v7444_v53, %v3490_v42  ;;  %vm3494_vm5 = vweird.f32 %v7444_v53  ;;  %v3512_v4 = vand.u32 2147483647, %v7431_v63 }
 0x515   : > { %v7509_v32 = vpop.eup %5121  ;;  %v3504_v13 = vmul.f32 %v7505_v56, %v7431_v63  ;;  %v3640_v52 = vsub.f32 1.0, %v3639_v29  ;;  %5129 = vpow2.f32 %v4872_v50  ;;  %v3591_v46 = vsel %vm7493_vm3, %v3590_v38, %v3586_v44  ;;  %vm7593_vm14 = vmor %vm3493_vm10, %vm3494_vm5 }
 0x516   : > { %v5124_v27 = vpop.eup %5123  ;;  %v3654_v30 = vmul.f32 %v7509_v32, %v7436_v62  ;;  %v3601_v58 = vsel %vm7555_vm2, %v7414_v1, %v3597_v51  ;;  %vm7568_vm8 = vcmp.eq.f32.partialorder %v3497_v39, 8.507059e+37  ;;  %v3647_v6 = vand.u32 2147483647, %v7417_v45 }
 0x517   : > { %v5126_v35 = vpop.eup %5125  ;;  %v7550_v48 = vadd.f32 1.0, %v5124_v27  ;;  %5131 = vpow2.f32 %v4875_v31  ;;  %v3492_v47 = vadd.f32 %v7444_v53, %v3491_v36  ;;  %v4876_v40 = vmul.f32 -1.442695, %v7546_v0 }
 0x518   : > { %v7561_v14 = vadd.f32 1.0, %v5126_v35  ;;  %v7577_v20 = vadd.f32 %v3364_v7, %v7438_v33  ;;  %v3505_v49 = vsub.f32 1.0, %v3504_v13  ;;  %v3641_v9 = vmul.f32 %v7488_v11, %v3640_v52  ;;  %v3383_v12 = vpop.f32.mrf.mxu1 }
 0x519   : > { %v3655_v1 = vsub.f32 1.0, %v3654_v30  ;;  %v5128_v16 = vpop.eup %5127  ;;  %v7582_v26 = vmul.f32 %v3591_v46, %v7364_v21  ;;  %vm3643_vm13 = vweird.f32 %v7417_v45  ;;  %v3649_v23 = vand.u32 2147483648, %v7417_v45 }
 0x51a   : > { %5133 = vrcp.f32 %v7561_v14  ;;  %v3662_v55 = vand.u32 2147483647, %v7436_v62  ;;  %v3606_v10 = vsel %vm7530_vm15, %v3605_v60, %v3601_v58  ;;  %vm3644_vm0 = vweird.f32 %v7488_v11 }
 0x51b   : > { %5135 = vrcp.f32 %v7550_v48  ;;  %vm7598_vm4 = vcmp.eq.f32.partialorder %v3647_v6, 8.507059e+37  ;;  %v3664_v38 = vand.u32 2147483648, %v7436_v62  ;;  %v7603_v42 = vadd.f32 1.0, %v5128_v16  ;;  %v5130_v22 = vpop.eup %5129  ;;  %vm7635_vm12 = vmor %vm3643_vm13, %vm3644_vm0 }
 0x51c   : > { %v3496_v60 = vsel %vm7593_vm14, %v7444_v53, %v3492_v47  ;;  %5137 = vpow2.f32 %v4876_v40  ;;  %v4879_v28 = vmul.f32 -1.442695, %v7577_v20  ;;  %v7610_v29 = vadd.f32 %v3383_v12, %v7438_v33 }
 0x51d   : > { %v5132_v27 = vpop.eup %5131  ;;  %v3506_v8 = vmul.f32 %v7505_v56, %v3505_v49  ;;  %v3642_v19 = vadd.f32 %v7488_v11, %v3641_v9  ;;  %v3656_v39 = vmul.f32 %v7509_v32, %v3655_v1  ;;  %5139 = vrcp.f32 %v7603_v42 }
 0x51e   : > { %v3650_v44 = vor.u32 1.1754944e-38, %v3649_v23  ;;  %vm3658_vm11 = vweird.f32 %v7436_v62  ;;  %v7617_v53 = vadd.f32 1.0, %v5132_v27  ;;  %5141 = vpow2.f32 %v4879_v28 }
 0x51f   : > { %v7622_v33 = vmul.f32 %v3606_v10, %v7368_v54  ;;  %v3665_v36 = vor.u32 1.1754944e-38, %v3664_v38  ;;  %v7624_v13 = vadd.f32 1.0, %v5130_v22  ;;  %v7629_v52 = vsel %vm7568_vm8, %v3500_v18, %v3496_v60 }
 0x520   : > { %v5134_v50 = vpop.eup %5133  ;;  %vm3659_vm9 = vweird.f32 %v7509_v32  ;;  %5143 = vrcp.f32 %v7617_v53  ;;  %v4880_v54 = vmul.f32 -1.442695, %v7610_v29  ;;  %v7643_v31 = vadd.f32 %v7505_v56, %v3506_v8 }
 0x521   : > { %v7619_v51 = vpop.eup %5135  ;;  %v3699_v35 = vmul.f32 %v5134_v50, %v7561_v14  ;;  %v3646_v18 = vsel %vm7635_vm12, %v7488_v11, %v3642_v19  ;;  %v3657_v7 = vadd.f32 %v7509_v32, %v3656_v39  ;;  %vm7649_vm3 = vcmp.eq.f32.partialorder %v3662_v55, 8.507059e+37  ;;  %vm7667_vm7 = vmor %vm3658_vm11, %vm3659_vm9 }
 0x522   : > { %v5138_v46 = vpop.eup %5137  ;;  %v3549_v58 = vmul.f32 %v7619_v51, %v7550_v48  ;;  %v3557_v2 = vand.u32 2147483647, %v7550_v48  ;;  %v3707_v6 = vand.u32 2147483647, %v7561_v14  ;;  %v3709_v47 = vand.u32 2147483648, %v7561_v14 }
 0x523   : > { %v3700_v57 = vsub.f32 1.0, %v3699_v35  ;;  %v5140_v40 = vpop.eup %5139  ;;  %5145 = vrcp.f32 %v7624_v13  ;;  %vm3704_vm6 = vweird.f32 %v5134_v50  ;;  %v7659_v49 = vadd.f32 1.0, %v5138_v46 }
 0x524   : > { %v5142_v9 = vpop.eup %5141  ;;  %v3651_v1 = vsel %vm7598_vm4, %v3650_v44, %v3646_v18  ;;  %v3559_v16 = vand.u32 2147483648, %v7550_v48  ;;  %v3714_v23 = vmul.f32 %v5140_v40, %v7603_v42  ;;  %5147 = vpow2.f32 %v4880_v54 }
 0x525   : > { %v3701_v11 = vmul.f32 %v5134_v50, %v3700_v57  ;;  %v3661_v55 = vsel %vm7667_vm7, %v7509_v32, %v3657_v7  ;;  %vm3703_vm15 = vweird.f32 %v7561_v14  ;;  %5149 = vrcp.f32 %v7659_v49 }
 0x526   : > { %v7678_v34 = vpop.eup %5143  ;;  %v3550_v62 = vsub.f32 1.0, %v3549_v58  ;;  %vm3705_vm10 = vmor %vm3703_vm15, %vm3704_vm6  ;;  %v3710_v21 = vor.u32 1.1754944e-38, %v3709_v47  ;;  %v3715_v38 = vsub.f32 1.0, %v3714_v23  ;;  %v7680_v22 = vadd.f32 1.0, %v5142_v9  ;;  %v4087_v23 = vld [vmem:[%s8349_s2 + $0x178] sm:$0xff]  ;;  %v4084_v58 = vld [vmem:[%s8349_s2 + $0x160] sm:$0xff] }
 0x527   : > { %v3702_v10 = vadd.f32 %v5134_v50, %v3701_v11  ;;  %vm3708_vm1 = vcmp.eq.f32.partialorder %v3707_v6, 8.507059e+37  ;;  %v3724_v28 = vand.u32 2147483648, %v7603_v42  ;;  %v3609_v32 = vmul.f32 %v7678_v34, %v7617_v53 }
 0x528   : > { %vm3553_vm2 = vweird.f32 %v7550_v48  ;;  %v3716_v27 = vmul.f32 %v5140_v40, %v3715_v38  ;;  %vm3719_vm5 = vweird.f32 %v5140_v40  ;;  %v3722_v8 = vand.u32 2147483647, %v7603_v42 }
 0x529   : > { %v3706_v60 = vsel %vm3705_vm10, %v5134_v50, %v3702_v10  ;;  %v7687_v19 = vpop.eup %5145  ;;  %v7690_v39 = vmul.f32 %v3651_v1, %v7381_v24  ;;  %v3610_v44 = vsub.f32 1.0, %v3609_v32  ;;  %5151 = vrcp.f32 %v7680_v22  ;;  %v4082_v32 = vld [vmem:[%s8349_s2 + $0x150] sm:$0xff] }
 0x52a   : > { %v3711_v14 = vsel %vm3708_vm1, %v3710_v21, %v3706_v60  ;;  %v5148_v35 = vpop.eup %5147  ;;  %v3666_v30 = vsel %vm7649_vm3, %v3665_v36, %v3661_v55  ;;  %v3551_v54 = vmul.f32 %v7619_v51, %v3550_v62  ;;  %v3717_v18 = vadd.f32 %v5140_v40, %v3716_v27  ;;  %v4086_v27 = vld [vmem:[%s8349_s2 + $0x170] sm:$0xff] }
 0x52b   : > { %v7693_v50 = vmul.f32 %v3711_v14, %v7452_v15  ;;  %vm3718_vm8 = vweird.f32 %v7603_v42  ;;  %v7700_v7 = vpop.eup %5149  ;;  %v3560_v57 = vor.u32 1.1754944e-38, %v3559_v16  ;;  %v3725_v15 = vor.u32 1.1754944e-38, %v3724_v28  ;;  %v7753_v28 = vld [vmem:[%s8357_s10] sm:$0xf] }
 0x52c   : > { %vm3720_vm13 = vmor %vm3718_vm8, %vm3719_vm5  ;;  %v3611_v46 = vmul.f32 %v7678_v34, %v3610_v44  ;;  %vm7706_vm14 = vcmp.eq.f32.partialorder %v3557_v2, 8.507059e+37  ;;  %v3564_v36 = vmul.f32 %v7687_v19, %v7624_v13  ;;  %vm3723_vm0 = vcmp.eq.f32.partialorder %v3722_v8, 8.507059e+37 }
 0x52d   : > { %v3751_v24 = vpack.c.bf16 %v7693_v50, %v7690_v39  ;;  %v3721_v45 = vsel %vm3720_vm13, %v5140_v40, %v3717_v18  ;;  %v3624_v42 = vmul.f32 %v7700_v7, %v7659_v49  ;;  %v7715_v6 = vmul.f32 %v3666_v30, %v7386_v61 }
 0x52e   : > { %v3726_v47 = vsel %vm3723_vm0, %v3725_v15, %v3721_v45  ;;  %v7717_v11 = vadd.f32 1.0, %v5148_v35  ;;  %v3747_v2 = vpack.c.bf16 %v7582_v26, %v7512_v43  ;;  %v3552_v9 = vadd.f32 %v7619_v51, %v3551_v54 }
 0x52f   : > { %3789 = vmatpush.bf16.msra.mxu2 %v3751_v24  ;;  %vm3554_vm4 = vweird.f32 %v7619_v51  ;;  %v7724_v40 = vmul.f32 %v3726_v47, %v7486_v17  ;;  %v3625_v1 = vsub.f32 1.0, %v3624_v42  ;;  %v7726_v12 = vpop.eup %5151  ;;  %v3612_v61 = vadd.f32 %v7678_v34, %v3611_v46  ;;  %v4085_v24 = vld [vmem:[%s8349_s2 + $0x168] sm:$0xff] }
 0x530   : > { %vm3614_vm11 = vweird.f32 %v7678_v34  ;;  %v3619_v16 = vand.u32 2147483648, %v7617_v53  ;;  %5153 = vrcp.f32 %v7717_v11  ;;  %v3565_v55 = vsub.f32 1.0, %v3564_v36  ;;  %vm7743_vm9 = vmor %vm3553_vm2, %vm3554_vm4 }
 0x531   : > { %v3572_v10 = vand.u32 2147483647, %v7624_v13  ;;  %v3752_v17 = vpack.c.bf16 %v7724_v40, %v7715_v6  ;;  %v3669_v62 = vmul.f32 %v7726_v12, %v7680_v22  ;;  %vm3509_vm12 = vweird.f32 %v7505_v56 }
 0x532   : > { %v3574_v38 = vand.u32 2147483648, %v7624_v13  ;;  %vm3613_vm3 = vweird.f32 %v7617_v53  ;;  %v3617_v60 = vand.u32 2147483647, %v7617_v53  ;;  %vm3753_vm6 = vcmask 261120  }
 0x533   : > { %3790 = vmatpush.bf16.msra.mxu2 %v3747_v2  ;;  %v3556_v48 = vsel %vm7743_vm9, %v7619_v51, %v3552_v9  ;;  %vm3568_vm7 = vweird.f32 %v7624_v13  ;;  %vm3569_vm15 = vweird.f32 %v7687_v19  ;;  %vm7762_vm10 = vmor %vm3613_vm3, %vm3614_vm11  ;;  %v3626_v53 = vmul.f32 %v7700_v7, %v3625_v1  ;;  %3802 = vmatpush.bf16.msra.mxu3 %v3752_v17  ;;  %v4102_v9 = vld [vmem:[%s8349_s2 + $0x1f0] sm:$0xff] }
 0x534   : > { %v3670_v14 = vsub.f32 1.0, %v3669_v62  ;;  %vm3508_vm1 = vweird.f32 %v7431_v63  ;;  %v3616_v51 = vsel %vm7762_vm10, %v7678_v34, %v3612_v61  ;;  %v3620_v8 = vor.u32 1.1754944e-38, %v3619_v16  ;;  %v4103_v34 = vld [vmem:[%s8349_s2 + $0x1f8] sm:$0xff]  ;;  %vm7850_vm3 = vmor %vm3568_vm7, %vm3569_vm15 }
 0x535   : > { %v3679_v44 = vand.u32 2147483648, %v7680_v22  ;;  %v3748_v35 = vpack.c.bf16 %v7622_v33, %v7520_v37  ;;  %v3566_v30 = vmul.f32 %v7687_v19, %v3565_v55  ;;  %vm3674_vm2 = vweird.f32 %v7726_v12  ;;  %v4093_v55 = vld [vmem:[%s8349_s2 + $0x1a8] sm:$0xff] }
 0x536   : > { %v3671_v54 = vmul.f32 %v7726_v12, %v3670_v14  ;;  %v3677_v18 = vand.u32 2147483647, %v7680_v22  ;;  %4885 = vmatmul.msk.bf16.vlgmr.msra.gmra.mxu2 %vm3753_vm6, %v7753_v28  ;;  %v7789_v15 = vpop.eup %5153  ;;  %v3561_v46 = vsel %vm7706_vm14, %v3560_v57, %v3556_v48  ;;  %vm3618_vm5 = vcmp.eq.f32.partialorder %v3617_v60, 8.507059e+37 }
 0x537   : > { %4144 = vmatpush.msrb.mxu2 %v4087_v23  ;;  %vm3629_vm8 = vweird.f32 %v7700_v7  ;;  %vm3673_vm13 = vweird.f32 %v7680_v22  ;;  %v3621_v36 = vsel %vm3618_vm5, %v3620_v8, %v3616_v51  ;;  %v3627_v45 = vadd.f32 %v7700_v7, %v3626_v53  ;;  %3803 = vmatpush.bf16.msra.mxu3 %v3748_v35  ;;  %v4081_v35 = vld [vmem:[%s8349_s2 + $0x148] sm:$0xff] }
 0x538   : > { %v3672_v42 = vadd.f32 %v7726_v12, %v3671_v54  ;;  %v3684_v47 = vmul.f32 %v7789_v15, %v7717_v11  ;;  %vm3628_vm14 = vweird.f32 %v7659_v49  ;;  %v3632_v57 = vand.u32 2147483647, %v7659_v49  ;;  %vm3675_vm0 = vmor %vm3673_vm13, %vm3674_vm2 }
 0x539   : > { %4145 = vmatpush.msrb.mxu2 %v4086_v27  ;;  %v3634_v22 = vand.u32 2147483648, %v7659_v49  ;;  %v3680_v2 = vor.u32 1.1754944e-38, %v3679_v44  ;;  %v3567_v1 = vadd.f32 %v7687_v19, %v3566_v30  ;;  %vm3678_vm4 = vcmp.eq.f32.partialorder %v3677_v18, 8.507059e+37  ;;  %v4083_v49 = vld [vmem:[%s8349_s2 + $0x158] sm:$0xff]  ;;  %vm7820_vm11 = vmor %vm3628_vm14, %vm3629_vm8  ;;  %v4100_v27 = vld [vmem:[%s8349_s2 + $0x1e0] sm:$0xff] }
 0x53a   : > { %v3676_v61 = vsel %vm3675_vm0, %v7726_v12, %v3672_v42  ;;  %v3685_v16 = vsub.f32 1.0, %v3684_v47  ;;  %v7816_v23 = vmul.f32 %v3621_v36, %v7517_v3  ;;  %v3692_v62 = vand.u32 2147483647, %v7717_v11  ;;  %4886 = vmatmul.msk.bf16.vlgmr.msra.gmra.mxu3 %vm3753_vm6, %v7753_v28  ;;  %v4101_v3 = vld [vmem:[%s8349_s2 + $0x1e8] sm:$0xff]  ;;  %vm7861_vm2 = vmor %vm3508_vm1, %vm3509_vm12  ;;  %v4079_v36 = vld [vmem:[%s8349_s2 + $0x138] sm:$0xff] }
 0x53b   : > { %4164 = vmatpush.msrb.mxu3 %v4103_v34  ;;  %4146 = vmatpush.msrb.mxu2 %v4085_v24  ;;  %v3681_v17 = vsel %vm3678_vm4, %v3680_v2, %v3676_v61  ;;  %v3694_v12 = vand.u32 2147483648, %v7717_v11  ;;  %v3631_v21 = vsel %vm7820_vm11, %v7700_v7, %v3627_v45  ;;  %vm3689_vm9 = vweird.f32 %v7789_v15  ;;  %v4078_v45 = vld [vmem:[%s8349_s2 + $0x130] sm:$0xff]  ;;  %v4095_v2 = vld [vmem:[%s8349_s2 + $0x1b8] sm:$0xff] }
 0x53c   : > { %v7835_v60 = vmul.f32 %v3681_v17, %v7577_v20  ;;  %v3686_v48 = vmul.f32 %v7789_v15, %v3685_v16  ;;  %v3514_v53 = vand.u32 2147483648, %v7431_v63  ;;  %v7844_v14 = vmul.f32 %v3561_v46, %v7420_v25  ;;  %v4054_v42 = vld [vmem:[%s8349_s2 + $0x70] sm:$0xff]  ;;  %v4075_v17 = vld [vmem:[%s8349_s2 + $0x118] sm:$0xff] }
 0x53d   : > { %4147 = vmatpush.msrb.mxu2 %v4084_v58  ;;  %4165 = vmatpush.msrb.mxu3 %v4102_v9  ;;  %vm3633_vm10 = vcmp.eq.f32.partialorder %v3632_v57, 8.507059e+37  ;;  %v3635_v7 = vor.u32 1.1754944e-38, %v3634_v22  ;;  %v3571_v51 = vsel %vm7850_vm3, %v7687_v19, %v3567_v1  ;;  %vm3688_vm7 = vweird.f32 %v7717_v11  ;;  %v4099_v11 = vld [vmem:[%s8349_s2 + $0x1d8] sm:$0xff]  ;;  %v4077_v58 = vld [vmem:[%s8349_s2 + $0x128] sm:$0xff]  ;;  %v4052_v9 = vld [vmem:[%s8349_s2 + $0x60] sm:$0xff] }
 0x53e   : > { %v3749_v8 = vpack.c.bf16 %v7835_v60, %v7816_v23  ;;  %v3687_v44 = vadd.f32 %v7789_v15, %v3686_v48  ;;  %v7877_v30 = vmul.f32 %v7629_v52, %v7375_v59  ;;  %v3575_v54 = vor.u32 1.1754944e-38, %v3574_v38  ;;  %vm3690_vm12 = vmor %vm3688_vm7, %vm3689_vm9  ;;  %v4080_v52 = vld [vmem:[%s8349_s2 + $0x140] sm:$0xff]  ;;  %v4053_v57 = vld [vmem:[%s8349_s2 + $0x68] sm:$0xff] }
 0x53f   : > { %4148 = vmatpush.msrb.mxu2 %v4083_v49  ;;  %4166 = vmatpush.msrb.mxu3 %v4101_v3  ;;  %v3636_v19 = vsel %vm3633_vm10, %v3635_v7, %v3631_v21  ;;  %v3695_v18 = vor.u32 1.1754944e-38, %v3694_v12  ;;  %v3511_v34 = vsel %vm7861_vm2, %v7505_v56, %v7643_v31  ;;  %vm3573_vm15 = vcmp.eq.f32.partialorder %v3572_v10, 8.507059e+37  ;;  %v4098_v56 = vld [vmem:[%s8349_s2 + $0x1d0] sm:$0xff]  ;;  %v4076_v1 = vld [vmem:[%s8349_s2 + $0x120] sm:$0xff]  ;;  %v4051_v49 = vld [vmem:[%s8349_s2 + $0x58] sm:$0xff] }
 0x540   : > { %v3691_v59 = vsel %vm3690_vm12, %v7789_v15, %v3687_v44  ;;  %vm3693_vm1 = vcmp.eq.f32.partialorder %v3692_v62, 8.507059e+37  ;;  %3763 = vmatpush.bf16.msra.mxu0 %v3749_v8  ;;  %v3515_v38 = vor.u32 1.1754944e-38, %v3514_v53  ;;  %v3576_v24 = vsel %vm3573_vm15, %v3575_v54, %v3571_v51  ;;  %v4055_v15 = vld [vmem:[%s8349_s2 + $0x78] sm:$0xff]  ;;  %v4094_v61 = vld [vmem:[%s8349_s2 + $0x1b0] sm:$0xff]  ;;  %v4069_v62 = vld [vmem:[%s8349_s2 + $0xe8] sm:$0xff] }
 0x541   : > { %4149 = vmatpush.msrb.mxu2 %v4082_v32  ;;  %4167 = vmatpush.msrb.mxu3 %v4100_v27  ;;  %v3696_v46 = vsel %vm3693_vm1, %v3695_v18, %v3691_v59  ;;  %vm3513_vm5 = vcmp.eq.f32.partialorder %v3512_v4, 8.507059e+37  ;;  %v7902_v13 = vmul.f32 %v3636_v19, %v7546_v0  ;;  %v3745_v10 = vpack.c.bf16 %v7844_v14, %v7877_v30  ;;  %v4097_v0 = vld [vmem:[%s8349_s2 + $0x1c8] sm:$0xff]  ;;  %v4070_v16 = vld [vmem:[%s8349_s2 + $0xf0] sm:$0xff]  ;;  %v4092_v3 = vld [vmem:[%s8349_s2 + $0x1a0] sm:$0xff] }
 0x542   : > { %v7905_v31 = vmul.f32 %v3696_v46, %v7610_v29  ;;  %v3516_v63 = vsel %vm3513_vm5, %v3515_v38, %v3511_v34  ;;  %v7919_v4 = vmul.f32 %v3576_v24, %v7499_v5  ;;  %v4096_v5 = vld [vmem:[%s8349_s2 + $0x1c0] sm:$0xff]  ;;  %v4050_v12 = vld [vmem:[%s8349_s2 + $0x50] sm:$0xff]  ;;  %v4049_v48 = vld [vmem:[%s8349_s2 + $0x48] sm:$0xff] }
 0x543   : > { %4150 = vmatpush.msrb.mxu2 %v4081_v35  ;;  %4168 = vmatpush.msrb.mxu3 %v4099_v11  ;;  %v7933_v47 = vmul.f32 %v3516_v63, %v7383_v41  ;;  %v4071_v41 = vld [vmem:[%s8349_s2 + $0xf8] sm:$0xff]  ;;  %v4074_v21 = vld [vmem:[%s8349_s2 + $0x110] sm:$0xff]  ;;  %v4073_v53 = vld [vmem:[%s8349_s2 + $0x108] sm:$0xff] }
 0x544   : > { %v3750_v29 = vpack.c.bf16 %v7905_v31, %v7902_v13  ;;  %3764 = vmatpush.bf16.msra.mxu0 %v3745_v10  ;;  %v4091_v32 = vld [vmem:[%s8349_s2 + $0x198] sm:$0xff]  ;;  %v4048_v7 = vld [vmem:[%s8349_s2 + $0x40] sm:$0xff]  ;;  %v4090_v27 = vld [vmem:[%s8349_s2 + $0x190] sm:$0xff] }
 0x545   : > { %4151 = vmatpush.msrb.mxu2 %v4080_v52  ;;  %4169 = vmatpush.msrb.mxu3 %v4098_v56  ;;  %v3746_v22 = vpack.c.bf16 %v7919_v4, %v7933_v47  ;;  %v4067_v20 = vld [vmem:[%s8349_s2 + $0xd8] sm:$0xff]  ;;  %v4066_v25 = vld [vmem:[%s8349_s2 + $0xd0] sm:$0xff]  ;;  %v4065_v8 = vld [vmem:[%s8349_s2 + $0xc8] sm:$0xff] }
 0x546   : > { %3776 = vmatpush.bf16.msra.mxu1 %v3750_v29  ;;  %v4047_v51 = vld [vmem:[%s8349_s2 + $0x38] sm:$0xff]  ;;  %v4046_v44 = vld [vmem:[%s8349_s2 + $0x30] sm:$0xff]  ;;  %v4064_v35 = vld [vmem:[%s8349_s2 + $0xc0] sm:$0xff] }
 0x547   : > { %4152 = vmatpush.msrb.mxu2 %v4079_v36  ;;  %4170 = vmatpush.msrb.mxu3 %v4097_v0  ;;  %v4045_v54 = vld [vmem:[%s8349_s2 + $0x28] sm:$0xff]  ;;  %v4063_v19 = vld [vmem:[%s8349_s2 + $0xb8] sm:$0xff]  ;;  %v4044_v18 = vld [vmem:[%s8349_s2 + $0x20] sm:$0xff] }
 0x548   : > { %4104 = vmatpush.msrb.mxu0 %v4055_v15  ;;  %v4062_v11 = vld [vmem:[%s8349_s2 + $0xb0] sm:$0xff]  ;;  %v4043_v34 = vld [vmem:[%s8349_s2 + $0x18] sm:$0xff]  ;;  %v4061_v59 = vld [vmem:[%s8349_s2 + $0xa8] sm:$0xff] }
 0x549   : > { %4883 = vmatmul.msk.bf16.vlgmr.msra.gmra.mxu0 %vm3753_vm6, %v7753_v28  ;;  %4153 = vmatpush.msrb.mxu2 %v4078_v45  ;;  %v4060_v52 = vld [vmem:[%s8349_s2 + $0xa0] sm:$0xff]  ;;  %v4059_v38 = vld [vmem:[%s8349_s2 + $0x98] sm:$0xff]  ;;  %v4042_v24 = vld [vmem:[%s8349_s2 + $0x10] sm:$0xff] }
 0x54a   : > { %4105 = vmatpush.msrb.mxu0 %v4054_v42  ;;  %4171 = vmatpush.msrb.mxu3 %v4096_v5  ;;  %v4058_v46 = vld [vmem:[%s8349_s2 + $0x90] sm:$0xff]  ;;  %v4072_v56 = vld [vmem:[%s8349_s2 + $0x100] sm:$0xff]  ;;  %v4089_v10 = vld [vmem:[%s8349_s2 + $0x188] sm:$0xff] }
 0x54b   : > { %4154 = vmatpush.msrb.mxu2 %v4077_v58  ;;  %3777 = vmatpush.bf16.msra.mxu1 %v3746_v22  ;;  %v4041_v15 = vld [vmem:[%s8349_s2 + $0x8] sm:$0xff]  ;;  %v4088_v63 = vld [vmem:[%s8349_s2 + $0x180] sm:$0xff] }
 0x54c   : > { %4106 = vmatpush.msrb.mxu0 %v4053_v57  ;;  %4172 = vmatpush.msrb.mxu3 %v4095_v2  ;;  %v4057_v36 = vld [vmem:[%s8349_s2 + $0x88] sm:$0xff]  ;;  %v4040_v0 = vld [vmem:[%s8349_s2] sm:$0xff] }
 0x54d   : > { %4155 = vmatpush.msrb.mxu2 %v4076_v1  ;;  %v4056_v29 = vld [vmem:[%s8349_s2 + $0x80] sm:$0xff] }
 0x54e   : > { %4107 = vmatpush.msrb.mxu0 %v4052_v9  ;;  %4884 = vmatmul.msk.bf16.vlgmr.msra.gmra.mxu1 %vm3753_vm6, %v7753_v28  ;;  %v4068_v28 = vld [vmem:[%s8349_s2 + $0xe0] sm:$0xff]  ;;  %vm4185_vm6 = vcmask 64512  }
 0x54f   : > { %4124 = vmatpush.msrb.mxu1 %v4071_v41  ;;  %4173 = vmatpush.msrb.mxu3 %v4094_v61 }
 0x550   : > { %4108 = vmatpush.msrb.mxu0 %v4051_v49  ;;  %4156 = vmatpush.msrb.mxu2 %v4075_v17 }
 0x551   : > { %4125 = vmatpush.msrb.mxu1 %v4070_v16  ;;  %4174 = vmatpush.msrb.mxu3 %v4093_v55 }
 0x552   : > { %4109 = vmatpush.msrb.mxu0 %v4050_v12  ;;  %4157 = vmatpush.msrb.mxu2 %v4074_v21 }
 0x553   : > { %4126 = vmatpush.msrb.mxu1 %v4069_v62  ;;  %4175 = vmatpush.msrb.mxu3 %v4092_v3 }
 0x554   : > { %4110 = vmatpush.msrb.mxu0 %v4049_v48  ;;  %4158 = vmatpush.msrb.mxu2 %v4073_v53 }
 0x555   : > { %4127 = vmatpush.msrb.mxu1 %v4068_v28  ;;  %4176 = vmatpush.msrb.mxu3 %v4091_v32 }
 0x556   : > { %4111 = vmatpush.msrb.mxu0 %v4048_v7  ;;  %4159 = vmatpush.msrb.mxu2 %v4072_v56 }
 0x557   : > { %4128 = vmatpush.msrb.mxu1 %v4067_v20  ;;  %4177 = vmatpush.msrb.mxu3 %v4090_v27  ;;  %v4184_v27 = vld [vmem:[%s8358_s11] sm:$0xff] }
 0x558   : > { %4112 = vmatpush.msrb.mxu0 %v4047_v51  ;;  %v8679_v51 = vld [vmem:[#allocation13_spill] sm:$0xff] }
 0x559   : > { %4129 = vmatpush.msrb.mxu1 %v4066_v25  ;;  %4178 = vmatpush.msrb.mxu3 %v4089_v10  ;;  %vm8680_vm8 = vcmp.lt.s32.totalorder %v8679_v51, 112  ;;  %vm8681_vm13 = vcmp.lt.s32.totalorder %v8679_v51, 16  ;;  %vm8688_vm9 = vcmp.lt.s32.totalorder %v8679_v51, 1  ;;  %v8690_v10 = vld [vmem:[#allocation44_spill] sm:$0xff]  ;;  %vm8703_vm15 = vcmp.lt.s32.totalorder %v8679_v51, 127 }
 0x55a   : > { %4113 = vmatpush.msrb.mxu0 %v4046_v44  ;;  %vm8682_vm14 = vmmov %vm8680_vm8 }
 0x55b   : > { %4130 = vmatpush.msrb.mxu1 %v4065_v8  ;;  %4179 = vmatpush.msrb.mxu3 %v4088_v63  ;;  %vm8684_vm0 = vmmov %vm8681_vm13 }
 0x55c   : > { %4114 = vmatpush.msrb.mxu0 %v4045_v54  ;;  %vm8685_vm4 = vmmov %vm8680_vm8 }
 0x55d   : > { %4131 = vmatpush.msrb.mxu1 %v4064_v35  ;;  %vm8687_vm11 = vmmov %vm8684_vm0 }
 0x55e   : > { %4115 = vmatpush.msrb.mxu0 %v4044_v18  ;;  %vm8689_vm3 = vmmov %vm8688_vm9 }
 0x55f   : > { %4132 = vmatpush.msrb.mxu1 %v4063_v19  ;;  %v8683_v19 = vld [vmem:[#allocation43_spill] sm:$0xff]  ;;  %vm8693_vm10 = vmmov %vm8689_vm3 }
 0x560   : > { %4116 = vmatpush.msrb.mxu0 %v4043_v34  ;;  %vm8695_vm2 = vmmov %vm8684_vm0 }
 0x561   : > { %4133 = vmatpush.msrb.mxu1 %v4062_v11  ;;  %vm8696_vm7 = vmmov %vm8685_vm4 }
 0x562   : > { %4117 = vmatpush.msrb.mxu0 %v4042_v24  ;;  %vm8700_vm12 = vmmov %vm8689_vm3 }
 0x563   : > { %4134 = vmatpush.msrb.mxu1 %v4061_v59  ;;  %vm8705_vm1 = vmmov %vm8703_vm15 }
 0x564   : > { %4118 = vmatpush.msrb.mxu0 %v4041_v15  ;;  %vm8706_vm5 = vmmov %vm8705_vm1 }
 0x565   : > { %4135 = vmatpush.msrb.mxu1 %v4060_v52  ;;  %v8686_v52 = vld [vmem:[#allocation14_spill] sm:$0xff] }
 0x566   : > { %4119 = vmatpush.msrb.mxu0 %v4040_v0  ;;  %v8692_v0 = vld [vmem:[#allocation42_spill] sm:$0xff] }
 0x567   : > { %4136 = vmatpush.msrb.mxu1 %v4059_v38 }
 0x569   : > { %4137 = vmatpush.msrb.mxu1 %v4058_v46 }
 0x56b   : > { %4138 = vmatpush.msrb.mxu1 %v4057_v36  ;;  %v8691_v36 = vld [vmem:[#allocation15_spill] sm:$0xff] }
 0x56d   : > { %4139 = vmatpush.msrb.mxu1 %v4056_v29 }
 0x5b9   : > { %v8073_v45 = vpop.f32.mrf.mxu2 }
 0x5ba   : > { %4160 = vmatmul.f32.vlgmr.msrb.gmra.mxu2 %v8073_v45 }
 0x5bd   : > { %v8076_v42 = vpop.f32.mrf.mxu3 }
 0x5be   : > { %4180 = vmatmul.f32.vlgmr.msrb.gmra.mxu3 %v8076_v42 }
 0x5c1   : > { %v3794_v5 = vpop.f32.mrf.mxu2 }
 0x5c5   : > { %v3807_v57 = vpop.f32.mrf.mxu3 }
 0x5c6   : > { %v8079_v58 = vpop.f32.mrf.mxu0 }
 0x5c7   : > { %4120 = vmatmul.f32.vlgmr.msrb.gmra.mxu0 %v8079_v58 }
 0x5cb   : > { %v8082_v22 = vpop.f32.mrf.mxu1 }
 0x5cc   : > { %3847 = vrot.lane.b32.xlu2 %v8082_v22, %s5209_s20  ;;  %3827 = vrot.lane.b32.xlu1 %v8082_v22, %s5212_s23 }
 0x5cd   : > { %3811 = vrot.lane.b32.xlu0 %v8082_v22, %s5206_s17  ;;  %4140 = vmatmul.f32.vlgmr.msrb.gmra.mxu1 %v8082_v22 }
 0x5ce   : > { %v3768_v41 = vpop.f32.mrf.mxu0 }
 0x5cf   : > { %v8694_v41 = vld [vmem:[#allocation17_spill] sm:$0xff] }
 0x5d3   : > { %v3781_v2 = vpop.f32.mrf.mxu1 }
 0x5d4   : > { %3845 = vrot.lane.b32.xlu1 %v8079_v58, %s5209_s20  ;;  %3809 = vrot.lane.b32.xlu2 %v8079_v58, %s5206_s17 }
 0x5d5   : > { %3825 = vrot.lane.b32.xlu0 %v8079_v58, %s5212_s23 }
 0x5dc   : > { %3813 = vrot.lane.b32.xlu1 %v8073_v45, %s5206_s17  ;;  %3865 = vrot.lane.b32.xlu2 %v8079_v58, %s5210_s21 }
 0x5dd   : > { %3831 = vrot.lane.b32.xlu0 %v8076_v42, %s5212_s23 }
 0x5e4   : > { %3851 = vrot.lane.b32.xlu1 %v8076_v42, %s5209_s20  ;;  %3815 = vrot.lane.b32.xlu2 %v8076_v42, %s5206_s17 }
 0x5e5   : > { %3849 = vrot.lane.b32.xlu0 %v8073_v45, %s5209_s20 }
 0x5ec   : > { %3869 = vrot.lane.b32.xlu1 %v8073_v45, %s5210_s21  ;;  %3829 = vrot.lane.b32.xlu2 %v8073_v45, %s5212_s23 }
 0x5ed   : > { %3867 = vrot.lane.b32.xlu0 %v8082_v22, %s5210_s21 }
 0x5f4   : > { %3871 = vrot.lane.b32.xlu2 %v8076_v42, %s5210_s21 }
 0x626   : > { %v3848_v9 = vpop.permute.xlu2 %3847 }
 0x62e   : > { %v3810_v1 = vpop.permute.xlu2 %3809 }
 0x636   : > { %v8117_v61 = vpop.permute.xlu2 %3865 }
 0x63d   : > { %v4161_v21 = vpop.f32.mrf.mxu2 }
 0x63e   : > { %v3828_v16 = vpop.permute.xlu1 %3827  ;;  %v3816_v17 = vpop.permute.xlu2 %3815 }
 0x63f   : > { %v3812_v49 = vpop.permute.xlu0 %3811  ;;  %v3820_v24 = vsel %vm8687_vm11, %v3816_v17, %v3810_v1 }
 0x640   : > { %v3819_v44 = vsel %vm8681_vm13, %v3810_v1, %v3812_v49  ;;  %v3821_v2 = vmul.f32 %v3820_v24, %v8694_v41  ;;  %vm4234_vm13 = vcmask 10240  }
 0x641   : > { %v4181_v48 = vpop.f32.mrf.mxu3  ;;  %v3822_v38 = vmul.f32 %v3819_v44, %v8686_v52  ;;  %v8702_v44 = vld [vmem:[#allocation45_spill] sm:$0xff] }
 0x644   : > { %v4121_v12 = vpop.f32.mrf.mxu0 }
 0x646   : > { %v3846_v55 = vpop.permute.xlu1 %3845  ;;  %v3830_v25 = vpop.permute.xlu2 %3829 }
 0x647   : > { %v3826_v62 = vpop.permute.xlu0 %3825  ;;  %v3834_v8 = vsel %vm8680_vm8, %v3828_v16, %v3830_v25  ;;  %v3855_v46 = vsel %vm8688_vm9, %v3846_v55, %v3848_v9  ;;  %vm8710_vm8 = vmmov %vm8705_vm1  ;;  %vm4290_vm9 = vcmask 1040384  }
 0x648   : > { %v3835_v54 = vsel %vm8682_vm14, %v3826_v62, %v3828_v16  ;;  %v3838_v18 = vmul.f32 %v3834_v8, %v8683_v19 }
 0x649   : > { %v3837_v15 = vmul.f32 %v3835_v54, %v8690_v10 }
 0x64a   : > { %v4141_v3 = vpop.f32.mrf.mxu1  ;;  %v3842_v57 = vadd.f32 %v3838_v18, %v3822_v38  ;;  %v8704_v18 = vld [vmem:[#allocation37_spill] sm:$0xff]  ;;  %v8707_v38 = vld [vmem:[#allocation30_spill] sm:$0xff] }
 0x64b   : > { %v4142_v28 = vadd.f32 %v4141_v3, %v4121_v12  ;;  %v8698_v12 = vld [vmem:[#allocation27_spill] sm:$0xff] }
 0x64c   : > { %v3858_v3 = vmul.f32 %v3855_v46, %v8698_v12  ;;  %v8708_v46 = vld [vmem:[#allocation35_spill] sm:$0xff] }
 0x64d   : > { %v4162_v32 = vadd.f32 %v4161_v21, %v4142_v28  ;;  %v8699_v21 = vld [vmem:[#allocation28_spill] sm:$0xff] }
 0x64e   : > { %v3814_v53 = vpop.permute.xlu1 %3813 }
 0x64f   : > { %v4182_v20 = vadd.f32 %v4181_v48, %v4162_v32  ;;  %v3832_v7 = vpop.permute.xlu0 %3831  ;;  %v3818_v11 = vsel %vm8684_vm0, %v3812_v49, %v3814_v53  ;;  %v3817_v1 = vsel %vm8695_vm2, %v3814_v53, %v3816_v17  ;;  %v8697_v49 = vld [vmem:[#allocation26_spill] sm:$0xff]  ;;  %v3841_v48 = vadd.f32 %v3837_v15, %v3821_v2  ;;  %vm8713_vm2 = vmmov %vm8696_vm7 }
 0x650   : > { %v3833_v34 = vsel %vm8685_vm4, %v3830_v25, %v3832_v7  ;;  %v3823_v63 = vmul.f32 %v3818_v11, %v8691_v36  ;;  %v3836_v16 = vsel %vm8696_vm7, %v3832_v7, %v3826_v62  ;;  %v8701_v25 = vld [vmem:[#allocation18_spill] sm:$0xff]  ;;  %v3862_v7 = vadd.f32 %v3858_v3, %v3842_v57 }
 0x651   : > { %4204 = vmatpush.msra.mxu0 %v4182_v20  ;;  %v3839_v29 = vmul.f32 %v3833_v34, %v8692_v0  ;;  %v3872_v20 = vpop.permute.xlu2 %3871  ;;  %v3824_v8 = vmul.f32 %v3817_v1, %v8701_v25  ;;  %v3840_v17 = vmul.f32 %v3836_v16, %v8702_v44  ;;  %v8709_v15 = vld [vmem:[#allocation34_spill] sm:$0xff]  ;;  %v3885_v57 = vmul.f32 4.0, %v8079_v58 }
 0x652   : > { %4887 = vmatmul.msk.f32.vlgmr.msra.gmra.mxu0 %vm4185_vm6, %v4184_v27  ;;  %v3886_v1 = vmul.f32 4.0, %v8082_v22  ;;  %v3876_v3 = vsel %vm8710_vm8, %v3872_v20, %v8117_v61 }
 0x653   : > { %v3843_v32 = vadd.f32 %v3839_v29, %v3823_v63  ;;  %v3887_v29 = vmul.f32 4.0, %v8073_v45  ;;  %v3844_v2 = vadd.f32 %v3840_v17, %v3824_v8  ;;  %v8711_v45 = vld [vmem:[#allocation36_spill] sm:$0xff] }
 0x654   : > { %v3880_v58 = vmul.f32 %v3876_v3, %v8711_v45  ;;  %v4210_v8 = vld [vmem:[%s8359_s12] sm:$0x7] }
 0x656   : > { %v3852_v35 = vpop.permute.xlu1 %3851 }
 0x657   : > { %v3850_v59 = vpop.permute.xlu0 %3849  ;;  %v3856_v5 = vsel %vm8693_vm10, %v3852_v35, %v3846_v55  ;;  %vm8712_vm10 = vmmov %vm8696_vm7  ;;  %vm8714_vm7 = vcmp.lt.s32.totalorder %v8679_v51, 16 }
 0x658   : > { %v3854_v56 = vsel %vm8689_vm3, %v3848_v9, %v3850_v59  ;;  %v3857_v28 = vmul.f32 %v3856_v5, %v8699_v21  ;;  %v3853_v55 = vsel %vm8700_vm12, %v3850_v59, %v3852_v35  ;;  %vm4299_vm3 = vcmask 15360   ;;  %vm8715_vm12 = vmmov %vm8714_vm7 }
 0x659   : > { %v3859_v9 = vmul.f32 %v3854_v56, %v8697_v49  ;;  %v3860_v24 = vmul.f32 %v3853_v55, %v8707_v38  ;;  %vm8719_vm8 = vmmov %vm8714_vm7 }
 0x65a   : > { %v3861_v59 = vadd.f32 %v3857_v28, %v3841_v48 }
 0x65b   : > { %v3863_v54 = vadd.f32 %v3859_v9, %v3843_v32  ;;  %v3864_v48 = vadd.f32 %v3860_v24, %v3844_v2 }
 0x65d   : > { %v3884_v22 = vadd.f32 %v3880_v58, %v3864_v48 }
 0x65e   : > { %v3870_v27 = vpop.permute.xlu1 %3869 }
 0x65f   : > { %v3873_v62 = vsel %vm8703_vm15, %v3870_v27, %v3872_v20  ;;  %v3868_v53 = vpop.permute.xlu0 %3867  ;;  %vm8716_vm15 = vcmp.lt.s32.totalorder %v8679_v51, 1 }
 0x660   : > { %v3879_v11 = vmul.f32 %v3873_v62, %v8704_v18  ;;  %v3874_v34 = vsel %vm8705_vm1, %v3868_v53, %v3870_v27  ;;  %v3875_v35 = vsel %vm8706_vm5, %v8117_v61, %v3868_v53  ;;  %v3888_v61 = vmul.f32 4.0, %v8076_v42  ;;  %vm8717_vm1 = vmmov %vm8716_vm15 }
 0x661   : > { %v3877_v56 = vmul.f32 %v3875_v35, %v8708_v46  ;;  %v3878_v63 = vmul.f32 %v3874_v34, %v8709_v15  ;;  %vm8718_vm5 = vmmov %vm8713_vm2 }
 0x662   : > { %v3883_v5 = vadd.f32 %v3879_v11, %v3863_v54  ;;  %v8189_v20 = vsub.f32 %v3884_v22, %v3888_v61 }
 0x663   : > { %v3881_v16 = vadd.f32 %v3877_v56, %v3861_v59  ;;  %v3882_v9 = vadd.f32 %v3878_v63, %v3862_v7  ;;  %v4292_v56 = vld [vmem:[%s8350_s3] sm:$0xff] }
 0x664   : > { %v8175_v28 = vsub.f32 %v3883_v5, %v3887_v29  ;;  %4294 = vst [vmem:[#allocation1] ss:$4 sm:$0xff] %v4292_v56 }
 0x665   : > { %v8177_v32 = vsub.f32 %v3881_v16, %v3885_v57  ;;  %v8179_v55 = vsub.f32 %v3882_v9, %v3886_v1 }
 0x666   : > { %3897 = vrot.lane.b32.xlu2 %v8175_v28, %s5206_s17 }
 0x667   : > { %3895 = vrot.lane.b32.xlu1 %v8179_v55, %s5206_s17  ;;  %3893 = vrot.lane.b32.xlu0 %v8177_v32, %s5206_s17 }
 0x66b   : > { %v4295_v1 = vld.sshfl [vmem:[#allocation1] sm:$0xff pattern:$0x73625140]  ;;  %v4296_v16 = vld.sshfl [vmem:[#allocation1 + $0x8] sm:$0xff pattern:$0x73625140] }
 0x66c   : > { %v4297_v3 = vld.sshfl [vmem:[#allocation1 + $0x10] sm:$0xff pattern:$0x73625140]  ;;  %v4298_v48 = vld.sshfl [vmem:[#allocation1 + $0x18] sm:$0xff pattern:$0x73625140] }
 0x66e   : > { %3911 = vrot.lane.b32.xlu2 %v8179_v55, %s5212_s23 }
 0x66f   : > { %3909 = vrot.lane.b32.xlu1 %v8177_v32, %s5212_s23  ;;  %3899 = vrot.lane.b32.xlu0 %v8189_v20, %s5206_s17 }
 0x676   : > { %3929 = vrot.lane.b32.xlu2 %v8177_v32, %s5209_s20 }
 0x677   : > { %3915 = vrot.lane.b32.xlu1 %v8189_v20, %s5212_s23  ;;  %3913 = vrot.lane.b32.xlu0 %v8175_v28, %s5212_s23 }
 0x67e   : > { %3935 = vrot.lane.b32.xlu2 %v8189_v20, %s5209_s20 }
 0x67f   : > { %3933 = vrot.lane.b32.xlu1 %v8175_v28, %s5209_s20  ;;  %3931 = vrot.lane.b32.xlu0 %v8179_v55, %s5209_s20 }
 0x686   : > { %3953 = vrot.lane.b32.xlu2 %v8175_v28, %s5210_s21 }
 0x687   : > { %3951 = vrot.lane.b32.xlu1 %v8179_v55, %s5210_s21  ;;  %3949 = vrot.lane.b32.xlu0 %v8177_v32, %s5210_s21 }
 0x68f   : > { %3955 = vrot.lane.b32.xlu0 %v8189_v20, %s5210_s21 }
 0x6cf   : > { %v4206_v42 = vpop.f32.mrf.mxu0 }
 0x6d0   : > { %v4209_v27 = vmax.f32 %v4206_v42, 0.0 }
 0x6d2   : > { %4229 = vmatpush.msra.mxu1 %v4209_v27 }
 0x6d3   : > { %4888 = vmatmul.msk.f32.vlgmr.msra.gmra.mxu1 %vm4185_vm6, %v4210_v8  ;;  %vm4303_vm6 = vcmask 1041408  }
 0x6d4   : > { %4892 = vmatpush.msk.msra.mxu2 %vm4303_vm6, %v4295_v1  ;;  %4894 = vmatpush.msk.msra.mxu3 %vm4303_vm6, %v4296_v16 }
 0x6d5   : > { %4896 = vmatpush.msk.msrb.mxu0 %vm4303_vm6, %v4297_v3  ;;  %4898 = vmatpush.msk.msrb.mxu1 %vm4303_vm6, %v4298_v48 }
 0x750   : > { %v4231_v17 = vpop.f32.mrf.mxu1 }
 0x751   : > { %v4235_v62 = vsel %vm4234_vm13, %v4231_v17, -inf }
 0x752   : > { %v4236_v53 = vrot.slane %v4235_v62, 4 }
 0x754   : > { %v4237_v7 = vmax.f32 %v4235_v62, %v4236_v53 }
 0x756   : > { %v4238_v54 = vrot.slane %v4237_v7, 2 }
 0x758   : > { %v4239_v11 = vmax.f32 %v4237_v7, %v4238_v54 }
 0x75a   : > { %v4240_v34 = vrot.slane %v4239_v11, 1 }
 0x75c   : > { %v4241_v35 = vmax.f32 %v4239_v11, %v4240_v34  ;;  %v4274_v34 = vstv %s4890_s18 }
 0x75e   : > { %v4242_v59 = vsub.f32 %v4231_v17, %v4241_v35  ;;  %v4281_v35 = vstv %s4891_s19 }
 0x760   : > { %v4243_v24 = vmul.f32 1.442695, %v4242_v59 }
 0x762   : > { %5155 = vpow2.f32 %v4243_v24  ;;  %v4271_v24 = vstv %s4889_s26 }
 0x768   : > { %v5156_v63 = vpop.eup %5155 }
 0x769   : > { %v4245_v29 = vsel %vm4234_vm13, %v5156_v63, 0.0  ;;  %vm8720_vm13 = vcmp.lt.s32.totalorder %v8679_v51, 127 }
 0x76a   : > { %v4246_v5 = vrot.slane %v4245_v29, 4  ;;  %vm8721_vm6 = vmmov %vm8720_vm13 }
 0x76c   : > { %v4247_v57 = vadd.f32 %v4246_v5, %v4245_v29  ;;  %v4268_v5 = vstv %s4267_s27 }
 0x76e   : > { %v4248_v2 = vrot.slane %v4247_v57, 2 }
 0x770   : > { %v4249_v9 = vadd.f32 %v4248_v2, %v4247_v57 }
 0x772   : > { %v4250_v58 = vrot.slane %v4249_v9, 1 }
 0x774   : > { %v4251_v22 = vadd.f32 %v4250_v58, %v4249_v9 }
 0x776   : > { %5157 = vrcp.f32 %v4251_v22  ;;  %v4263_v8 = vand.u32 2147483648, %v4251_v22  ;;  %v4261_v62 = vand.u32 2147483647, %v4251_v22  ;;  %vm4257_vm0 = vweird.f32 %v4251_v22 }
 0x778   : > { %v4264_v7 = vor.u32 1.1754944e-38, %v4263_v8  ;;  %vm4262_vm11 = vcmp.eq.f32.partialorder %v4261_v62, 8.507059e+37 }
 0x77c   : > { %v5158_v61 = vpop.eup %5157 }
 0x77d   : > { %v4253_v42 = vmul.f32 %v5158_v61, %v4251_v22  ;;  %vm4258_vm14 = vweird.f32 %v5158_v61  ;;  %v3894_v22 = vpop.permute.xlu0 %3893 }
 0x77e   : > { %vm4259_vm4 = vmor %vm4257_vm0, %vm4258_vm14 }
 0x77f   : > { %v4254_v27 = vsub.f32 1.0, %v4253_v42  ;;  %v3896_v42 = vpop.permute.xlu1 %3895  ;;  %vm8722_vm14 = vmmov %vm8713_vm2 }
 0x780   : > { %vm8723_vm0 = vmmov %vm8714_vm7 }
 0x781   : > { %v4255_v17 = vmul.f32 %v5158_v61, %v4254_v27 }
 0x783   : > { %v4256_v53 = vadd.f32 %v5158_v61, %v4255_v17 }
 0x785   : > { %v4260_v54 = vsel %vm4259_vm4, %v5158_v61, %v4256_v53  ;;  %v3898_v61 = vpop.permute.xlu2 %3897  ;;  %vm8724_vm4 = vmmov %vm8717_vm1 }
 0x786   : > { %v4265_v11 = vsel %vm4262_vm11, %v4264_v7, %v4260_v54  ;;  %vm8725_vm11 = vmmov %vm8717_vm1 }
 0x787   : > { %v4266_v59 = vmul.f32 %v5156_v63, %v4265_v11  ;;  %v3900_v63 = vpop.permute.xlu0 %3899  ;;  %v3910_v17 = vpop.permute.xlu1 %3909 }
 0x789   : > { %v4275_v56 = vmul.f32 %v4274_v34, %v4266_v59  ;;  %v4282_v29 = vmul.f32 %v4281_v35, %v4266_v59  ;;  %v4272_v57 = vmul.f32 %v4271_v24, %v4266_v59  ;;  %v4269_v16 = vmul.f32 %v4268_v5, %v4266_v59 }
 0x78a   : > { %v3901_v24 = vsel %vm8714_vm7, %v3898_v61, %v3900_v63 }
 0x78b   : > { %v4277_v2 = vrot.slane %v4275_v56, 1  ;;  %v4284_v1 = vrot.slane %v4282_v29, 1  ;;  %v3902_v29 = vsel %vm8715_vm12, %v3896_v42, %v3898_v61 }
 0x78c   : > { %v3907_v61 = vmul.f32 %v3902_v29, %v8691_v36 }
 0x78d   : > { %v4286_v9 = vadd.f32 %v4284_v1, %v4272_v57  ;;  %v4279_v3 = vadd.f32 %v4277_v2, %v4269_v16  ;;  %v3912_v8 = vpop.permute.xlu2 %3911 }
 0x78e   : > { %v3919_v16 = vsel %vm8718_vm5, %v3910_v17, %v3912_v8 }
 0x78f   : > { %v4288_v48 = vrot.slane %v4286_v9, 7  ;;  %v3914_v27 = vpop.permute.xlu0 %3913  ;;  %v3916_v7 = vpop.permute.xlu1 %3915  ;;  %v3904_v9 = vsel %vm8719_vm8, %v3900_v63, %v3894_v22 }
 0x790   : > { %v3920_v35 = vsel %vm8712_vm10, %v3916_v7, %v3910_v17  ;;  %v3917_v59 = vsel %vm8713_vm2, %v3914_v27, %v3916_v7  ;;  %v3918_v7 = vsel %vm8722_vm14, %v3912_v8, %v3914_v27  ;;  %v3905_v63 = vmul.f32 %v3904_v9, %v8694_v41 }
 0x791   : > { %v4291_v58 = vsel %vm4290_vm9, %v4279_v3, %v4288_v48  ;;  %v3924_v5 = vmul.f32 %v3920_v35, %v8702_v44  ;;  %v3923_v3 = vmul.f32 %v3917_v59, %v8692_v0  ;;  %v3908_v48 = vmul.f32 %v3901_v24, %v8701_v25  ;;  %vm8726_vm9 = vmmov %vm8721_vm6 }
 0x792   : > { %4893 = vmatmul.msk.f32.vlgmr.msra.gmra.mxu2 %vm4299_vm3, %v4291_v58  ;;  %4895 = vmatmul.msk.f32.vlgmr.msra.gmra.mxu3 %vm4299_vm3, %v4291_v58  ;;  %v3903_v0 = vsel %vm8723_vm0, %v3894_v22, %v3896_v42  ;;  %v3921_v25 = vmul.f32 %v3919_v16, %v8690_v10 }
 0x793   : > { %4897 = vmatmul.msk.f32.vlgmr.msrb.gmra.mxu0 %vm4299_vm3, %v4291_v58  ;;  %4899 = vmatmul.msk.f32.vlgmr.msrb.gmra.mxu1 %vm4299_vm3, %v4291_v58  ;;  %v3928_v35 = vadd.f32 %v3924_v5, %v3908_v48  ;;  %v3927_v24 = vadd.f32 %v3923_v3, %v3907_v61  ;;  %vm8727_vm3 = vmmov %vm8721_vm6  ;;  %v3906_v8 = vmul.f32 %v3903_v0, %v8686_v52  ;;  %v3970_v3 = vmul.f32 4.0, %v8179_v55 }
 0x794   : > { %v3995_v61 = vrot.slane %v8189_v20, 4 }
 0x795   : > { %v3930_v53 = vpop.permute.xlu2 %3929 }
 0x797   : > { %v3932_v62 = vpop.permute.xlu0 %3931  ;;  %v3934_v34 = vpop.permute.xlu1 %3933 }
 0x798   : > { %v3938_v2 = vsel %vm8717_vm1, %v3932_v62, %v3934_v34  ;;  %v3939_v36 = vsel %vm8724_vm4, %v3930_v53, %v3932_v62  ;;  %v3925_v62 = vadd.f32 %v3921_v25, %v3905_v63 }
 0x79d   : > { %v3936_v11 = vpop.permute.xlu2 %3935 }
 0x79e   : > { %v3937_v57 = vsel %vm8716_vm15, %v3934_v34, %v3936_v11  ;;  %v3943_v34 = vmul.f32 %v3938_v2, %v8697_v49  ;;  %v3940_v49 = vsel %vm8725_vm11, %v3936_v11, %v3930_v53  ;;  %v3972_v2 = vmul.f32 4.0, %v8189_v20 }
 0x79f   : > { %v3950_v54 = vpop.permute.xlu0 %3949  ;;  %v3944_v17 = vmul.f32 %v3937_v57, %v8707_v38  ;;  %v3952_v59 = vpop.permute.xlu1 %3951  ;;  %v3922_v38 = vmul.f32 %v3918_v7, %v8683_v19  ;;  %v3941_v5 = vmul.f32 %v3940_v49, %v8699_v21  ;;  %v3971_v57 = vmul.f32 4.0, %v8175_v28 }
 0x7a0   : > { %v3947_v42 = vadd.f32 %v3943_v34, %v3927_v24  ;;  %v3959_v41 = vsel %vm8727_vm3, %v3950_v54, %v3952_v59  ;;  %v3969_v21 = vmul.f32 4.0, %v8177_v32  ;;  %v3977_v24 = vrot.slane %v8177_v32, 4 }
 0x7a1   : > { %v3948_v22 = vadd.f32 %v3944_v17, %v3928_v35  ;;  %v3926_v53 = vadd.f32 %v3922_v38, %v3906_v8  ;;  %v3961_v11 = vmul.f32 %v3959_v41, %v8708_v46  ;;  %v3996_v35 = vadd.f32 %v3995_v61, %v8189_v20 }
 0x7a2   : > { %v3978_v41 = vadd.f32 %v3977_v24, %v8177_v32 }
 0x7a5   : > { %v3954_v1 = vpop.permute.xlu2 %3953 }
 0x7a6   : > { %v3958_v10 = vsel %vm8726_vm9, %v3952_v59, %v3954_v1 }
 0x7a7   : > { %v3956_v56 = vpop.permute.xlu0 %3955  ;;  %v3962_v19 = vmul.f32 %v3958_v10, %v8709_v15 }
 0x7a8   : > { %v3957_v44 = vsel %vm8720_vm13, %v3954_v1, %v3956_v56  ;;  %v3960_v58 = vsel %vm8721_vm6, %v3956_v56, %v3950_v54  ;;  %v3945_v54 = vadd.f32 %v3941_v5, %v3925_v62 }
 0x7a9   : > { %v3963_v56 = vmul.f32 %v3957_v44, %v8704_v18  ;;  %v3964_v27 = vmul.f32 %v3960_v58, %v8711_v45  ;;  %v3942_v18 = vmul.f32 %v3939_v36, %v8698_v12  ;;  %v5214_v12 = vmov 8.0  }
 0x7aa   : > { %v3965_v9 = vadd.f32 %v3961_v11, %v3945_v54  ;;  %5159 = vrcp.f32 %v5214_v12  ;;  %v3989_v58 = vrot.slane %v8175_v28, 4  ;;  %v3983_v36 = vrot.slane %v8179_v55, 4 }
 0x7ab   : > { %v3967_v29 = vadd.f32 %v3963_v56, %v3947_v42  ;;  %v3968_v45 = vadd.f32 %v3964_v27, %v3948_v22  ;;  %v3946_v51 = vadd.f32 %v3942_v18, %v3926_v53  ;;  %v3997_v42 = vrot.slane %v3996_v35, 2 }
 0x7ac   : > { %v3973_v46 = vsub.f32 %v3965_v9, %v3969_v21  ;;  %v3990_v63 = vadd.f32 %v3989_v58, %v8175_v28  ;;  %v3984_v8 = vadd.f32 %v3983_v36, %v8179_v55  ;;  %v3979_v53 = vrot.slane %v3978_v41, 2 }
 0x7ad   : > { %v3975_v1 = vsub.f32 %v3967_v29, %v3971_v57  ;;  %v3976_v52 = vsub.f32 %v3968_v45, %v3972_v2  ;;  %v3966_v16 = vadd.f32 %v3962_v19, %v3946_v51  ;;  %v3998_v45 = vadd.f32 %v3997_v42, %v3996_v35 }
 0x7ae   : > { %v4012_v25 = vrot.slane %v3973_v46, 4  ;;  %v3991_v22 = vrot.slane %v3990_v63, 2  ;;  %v3985_v19 = vrot.slane %v3984_v8, 2  ;;  %v4417_v42 = vstv %s4900_s22 }
 0x7af   : > { %v4024_v48 = vrot.slane %v3975_v1, 4  ;;  %v4030_v15 = vrot.slane %v3976_v52, 4  ;;  %v3974_v44 = vsub.f32 %v3966_v16, %v3970_v3  ;;  %v3980_v16 = vadd.f32 %v3979_v53, %v3978_v41 }
 0x7b0   : > { %v5160_v7 = vpop.eup %5159  ;;  %v4013_v49 = vadd.f32 %v4012_v25, %v3973_v46  ;;  %v3992_v29 = vadd.f32 %v3991_v22, %v3990_v63  ;;  %v3986_v32 = vadd.f32 %v3985_v19, %v3984_v8 }
 0x7b1   : > { %v4025_v17 = vadd.f32 %v4024_v48, %v3975_v1  ;;  %v4031_v34 = vadd.f32 %v4030_v15, %v3976_v52  ;;  %v4018_v0 = vrot.slane %v3974_v44, 4  ;;  %v4002_v59 = vmul.f32 8.0, %v5160_v7 }
 0x7b2   : > { %v4014_v18 = vrot.slane %v4013_v49, 2  ;;  %v3993_v54 = vrot.slane %v3992_v29, 1  ;;  %v3999_v1 = vrot.slane %v3998_v45, 1  ;;  %vm4006_vm10 = vweird.f32 %v5160_v7 }
 0x7b3   : > { %v4026_v56 = vrot.slane %v4025_v17, 2  ;;  %v4032_v27 = vrot.slane %v4031_v34, 2  ;;  %v4019_v38 = vadd.f32 %v4018_v0, %v3974_v44  ;;  %v4003_v10 = vsub.f32 1.0, %v4002_v59 }
 0x7b4   : > { %v4015_v2 = vadd.f32 %v4014_v18, %v4013_v49  ;;  %v3994_v21 = vadd.f32 %v3993_v54, %v3992_v29  ;;  %v4000_v48 = vadd.f32 %v3999_v1, %v3998_v45  ;;  %v3981_v44 = vrot.slane %v3980_v16, 1 }
 0x7b5   : > { %v4027_v62 = vadd.f32 %v4026_v56, %v4025_v17  ;;  %v4033_v28 = vadd.f32 %v4032_v27, %v4031_v34  ;;  %v4020_v20 = vrot.slane %v4019_v38, 2  ;;  %v4004_v5 = vmul.f32 %v5160_v7, %v4003_v10 }
 0x7b6   : > { %v4016_v12 = vrot.slane %v4015_v2, 1  ;;  %v3987_v46 = vrot.slane %v3986_v32, 1  ;;  %v3982_v36 = vadd.f32 %v3981_v44, %v3980_v16 }
 0x7b7   : > { %v4028_v11 = vrot.slane %v4027_v62, 1  ;;  %v4034_v57 = vrot.slane %v4033_v28, 1  ;;  %v4021_v51 = vadd.f32 %v4020_v20, %v4019_v38  ;;  %v4005_v52 = vadd.f32 %v5160_v7, %v4004_v5 }
 0x7b8   : > { %v4017_v0 = vadd.f32 %v4016_v12, %v4015_v2  ;;  %v3988_v56 = vadd.f32 %v3987_v46, %v3986_v32 }
 0x7b9   : > { %v4029_v55 = vadd.f32 %v4028_v11, %v4027_v62  ;;  %v4035_v9 = vadd.f32 %v4034_v57, %v4033_v28  ;;  %v4022_v3 = vrot.slane %v4021_v51, 1  ;;  %v4007_v15 = vsel %vm4006_vm10, %v5160_v7, %v4005_v52 }
 0x7ba   : > { %v4010_v63 = vmul.f32 %v4007_v15, %v3994_v21  ;;  %v4011_v59 = vmul.f32 %v4007_v15, %v4000_v48  ;;  %v4036_v7 = vmul.f32 %v4017_v0, %v4007_v15  ;;  %v4008_v18 = vmul.f32 %v4007_v15, %v3982_v36 }
 0x7bb   : > { %v4038_v58 = vmul.f32 %v4029_v55, %v4007_v15  ;;  %v4039_v61 = vmul.f32 %v4035_v9, %v4007_v15  ;;  %v4023_v25 = vadd.f32 %v4022_v3, %v4021_v51  ;;  %v4009_v29 = vmul.f32 %v4007_v15, %v3988_v56 }
 0x7bd   : > { %v4037_v10 = vmul.f32 %v4023_v25, %v4007_v15 }
 0x810   : > { %v4369_v17 = vpop.f32.mrf.mxu0  ;;  %v4389_v34 = vpop.f32.mrf.mxu1 }
 0x811   : > { %v4399_v35 = vmul.f32 %v4369_v17, %v4038_v58  ;;  %v4400_v24 = vmul.f32 %v4389_v34, %v4039_v61  ;;  %v4395_v27 = vmul.f32 %v4369_v17, %v4010_v63  ;;  %v4396_v38 = vmul.f32 %v4389_v34, %v4011_v59 }
 0x813   : > { %v4407_v49 = vrot.slane %v4399_v35, 1  ;;  %v4408_v22 = vrot.slane %v4400_v24, 1 }
 0x815   : > { %v4415_v41 = vadd.f32 %v4407_v49, %v4395_v27  ;;  %v4416_v8 = vadd.f32 %v4408_v22, %v4396_v38  ;;  %v4329_v62 = vpop.f32.mrf.mxu2  ;;  %v4349_v28 = vpop.f32.mrf.mxu3 }
 0x816   : > { %v4397_v20 = vmul.f32 %v4329_v62, %v4036_v7  ;;  %v4398_v45 = vmul.f32 %v4349_v28, %v4037_v10  ;;  %v4393_v19 = vmul.f32 %v4329_v62, %v4008_v18  ;;  %v4394_v57 = vmul.f32 %v4349_v28, %v4009_v29 }
 0x817   : > { %v4420_v5 = vmul.f32 %v4417_v42, %v4415_v41  ;;  %v4421_v53 = vmul.f32 %v4417_v42, %v4416_v8 }
 0x818   : > { %v4405_v11 = vrot.slane %v4397_v20, 1  ;;  %v4406_v2 = vrot.slane %v4398_v45, 1 }
 0x819   : > { %v4903_v51 = vmul.f32 -1.442695, %v4420_v5  ;;  %v4904_v54 = vmul.f32 -1.442695, %v4421_v53 }
 0x81a   : > { %v4413_v1 = vadd.f32 %v4405_v11, %v4393_v19  ;;  %v4414_v52 = vadd.f32 %v4406_v2, %v4394_v57 }
 0x81b   : > { %5161 = vpow2.f32 %v4903_v51 }
 0x81c   : > { %5163 = vpow2.f32 %v4904_v54  ;;  %v4418_v16 = vmul.f32 %v4417_v42, %v4413_v1  ;;  %v4419_v32 = vmul.f32 %v4417_v42, %v4414_v52 }
 0x81e   : > { %v4901_v55 = vmul.f32 -1.442695, %v4418_v16  ;;  %v4902_v9 = vmul.f32 -1.442695, %v4419_v32 }
 0x820   : > { %5165 = vpow2.f32 %v4901_v55 }
 0x821   : > { %v5162_v12 = vpop.eup %5161  ;;  %5167 = vpow2.f32 %v4902_v9 }
 0x822   : > { %v5164_v3 = vpop.eup %5163  ;;  %v4436_v21 = vadd.f32 1.0, %v5162_v12 }
 0x823   : > { %v4437_v48 = vadd.f32 1.0, %v5164_v3 }
 0x824   : > { %5169 = vrcp.f32 %v4436_v21  ;;  %v4477_v63 = vand.u32 2147483647, %v4436_v21  ;;  %v4479_v35 = vand.u32 2147483648, %v4436_v21  ;;  %vm4473_vm7 = vweird.f32 %v4436_v21 }
 0x825   : > { %5171 = vrcp.f32 %v4437_v48  ;;  %v4492_v24 = vand.u32 2147483647, %v4437_v48  ;;  %v4494_v27 = vand.u32 2147483648, %v4437_v48  ;;  %vm4488_vm1 = vweird.f32 %v4437_v48 }
 0x826   : > { %v5166_v15 = vpop.eup %5165  ;;  %vm4478_vm15 = vcmp.eq.f32.partialorder %v4477_v63, 8.507059e+37  ;;  %v4480_v10 = vor.u32 1.1754944e-38, %v4479_v35 }
 0x827   : > { %v5168_v44 = vpop.eup %5167  ;;  %v8284_v46 = vadd.f32 1.0, %v5166_v15  ;;  %vm4493_vm8 = vcmp.eq.f32.partialorder %v4492_v24, 8.507059e+37  ;;  %v4495_v28 = vor.u32 1.1754944e-38, %v4494_v27 }
 0x828   : > { %v8286_v58 = vadd.f32 1.0, %v5168_v44 }
 0x829   : > { %5173 = vrcp.f32 %v8284_v46  ;;  %vm4443_vm6 = vweird.f32 %v8284_v46  ;;  %v4449_v19 = vand.u32 2147483648, %v8284_v46  ;;  %v4447_v51 = vand.u32 2147483647, %v8284_v46 }
 0x82a   : > { %v5170_v61 = vpop.eup %5169  ;;  %5175 = vrcp.f32 %v8286_v58  ;;  %v4464_v54 = vand.u32 2147483648, %v8286_v58  ;;  %v4462_v32 = vand.u32 2147483647, %v8286_v58  ;;  %vm4458_vm11 = vweird.f32 %v8286_v58 }
 0x82b   : > { %v5172_v17 = vpop.eup %5171  ;;  %v4469_v34 = vmul.f32 %v5170_v61, %v4436_v21  ;;  %vm4474_vm2 = vweird.f32 %v5170_v61  ;;  %vm4448_vm9 = vcmp.eq.f32.partialorder %v4447_v51, 8.507059e+37 }
 0x82c   : > { %v4484_v0 = vmul.f32 %v5172_v17, %v4437_v48  ;;  %vm4489_vm12 = vweird.f32 %v5172_v17  ;;  %vm4475_vm5 = vmor %vm4473_vm7, %vm4474_vm2  ;;  %v4450_v48 = vor.u32 1.1754944e-38, %v4449_v19  ;;  %v4465_v44 = vor.u32 1.1754944e-38, %v4464_v54 }
 0x82d   : > { %v4470_v25 = vsub.f32 1.0, %v4469_v34  ;;  %vm4490_vm13 = vmor %vm4488_vm1, %vm4489_vm12  ;;  %vm4463_vm10 = vcmp.eq.f32.partialorder %v4462_v32, 8.507059e+37 }
 0x82e   : > { %v4485_v59 = vsub.f32 1.0, %v4484_v0 }
 0x82f   : > { %v5174_v36 = vpop.eup %5173  ;;  %v4471_v56 = vmul.f32 %v5170_v61, %v4470_v25 }
 0x830   : > { %v5176_v49 = vpop.eup %5175  ;;  %v4486_v38 = vmul.f32 %v5172_v17, %v4485_v59  ;;  %v4439_v22 = vmul.f32 %v5174_v36, %v8284_v46  ;;  %vm4444_vm14 = vweird.f32 %v5174_v36 }
 0x831   : > { %v4472_v42 = vadd.f32 %v5170_v61, %v4471_v56  ;;  %v4454_v7 = vmul.f32 %v5176_v49, %v8286_v58  ;;  %vm8299_vm0 = vmor %vm4443_vm6, %vm4444_vm14  ;;  %vm4459_vm4 = vweird.f32 %v5176_v49 }
 0x832   : > { %v4487_v41 = vadd.f32 %v5172_v17, %v4486_v38  ;;  %v4440_v8 = vsub.f32 1.0, %v4439_v22  ;;  %vm4460_vm3 = vmor %vm4458_vm11, %vm4459_vm4 }
 0x833   : > { %v4476_v62 = vsel %vm4475_vm5, %v5170_v61, %v4472_v42  ;;  %v4455_v18 = vsub.f32 1.0, %v4454_v7 }
 0x834   : > { %v4481_v20 = vsel %vm4478_vm15, %v4480_v10, %v4476_v62  ;;  %v4491_v29 = vsel %vm4490_vm13, %v5172_v17, %v4487_v41  ;;  %v4441_v45 = vmul.f32 %v5174_v36, %v4440_v8 }
 0x835   : > { %v4500_v5 = vadd.f32 1.0, %v4481_v20  ;;  %v4496_v53 = vsel %vm4493_vm8, %v4495_v28, %v4491_v29  ;;  %v4456_v11 = vmul.f32 %v5176_v49, %v4455_v18 }
 0x836   : > { %v4501_v57 = vadd.f32 1.0, %v4496_v53  ;;  %v4442_v2 = vadd.f32 %v5174_v36, %v4441_v45 }
 0x837   : > { %v4504_v1 = vperm.slane %v4500_v5, 0  ;;  %v4457_v16 = vadd.f32 %v5176_v49, %v4456_v11 }
 0x838   : > { %v4505_v55 = vperm.slane %v4501_v57, 0  ;;  %v4446_v9 = vsel %vm8299_vm0, %v5174_v36, %v4442_v2 }
 0x839   : > { %v4508_v12 = vmul.f32 %v4504_v1, %v7512_v43  ;;  %v4512_v3 = vmul.f32 %v4504_v1, %v7582_v26  ;;  %v4516_v21 = vmul.f32 %v4504_v1, %v7690_v39  ;;  %v4520_v15 = vmul.f32 %v4504_v1, %v7693_v50 }
 0x83a   : > { %v4509_v46 = vmul.f32 %v4505_v55, %v7520_v37  ;;  %v4451_v58 = vsel %vm4448_vm9, %v4450_v48, %v4446_v9  ;;  %v4461_v61 = vsel %vm4460_vm3, %v5176_v49, %v4457_v16  ;;  %v4513_v43 = vmul.f32 %v4505_v55, %v7622_v33 }
 0x83b   : > { %4524 = vst [vmem:[%s8307_s15 + $0x10] sm:$0xff] %v4508_v12  ;;  %v4498_v26 = vadd.f32 1.0, %v4451_v58  ;;  %v4466_v39 = vsel %vm4463_vm10, %v4465_v44, %v4461_v61  ;;  %v4517_v50 = vmul.f32 %v4505_v55, %v7715_v6  ;;  %v4521_v37 = vmul.f32 %v4505_v55, %v7724_v40 }
 0x83c   : > { %4528 = vst [vmem:[%s8307_s15 + $0x30] sm:$0xff] %v4512_v3  ;;  %v4499_v17 = vadd.f32 1.0, %v4466_v39 }
 0x83d   : > { %4532 = vst [vmem:[%s8307_s15 + $0x50] sm:$0xff] %v4516_v21  ;;  %v4502_v34 = vperm.slane %v4498_v26, 0 }
 0x83e   : > { %4536 = vst [vmem:[%s8307_s15 + $0x70] sm:$0xff] %v4520_v15  ;;  %v4503_v0 = vperm.slane %v4499_v17, 0 }
 0x83f   : > { %4525 = vst [vmem:[%s8307_s15 + $0x18] sm:$0xff] %v4509_v46  ;;  %v4506_v33 = vmul.f32 %v4502_v34, %v7877_v30  ;;  %v4510_v25 = vmul.f32 %v4502_v34, %v7844_v14  ;;  %v4514_v6 = vmul.f32 %v4502_v34, %v7816_v23  ;;  %v4518_v63 = vmul.f32 %v4502_v34, %v7835_v60 }
 0x840   : > { %4529 = vst [vmem:[%s8307_s15 + $0x38] sm:$0xff] %v4513_v43  ;;  %v4507_v40 = vmul.f32 %v4503_v0, %v7933_v47  ;;  %v4511_v35 = vmul.f32 %v4503_v0, %v7919_v4  ;;  %v4515_v59 = vmul.f32 %v4503_v0, %v7902_v13  ;;  %v4519_v30 = vmul.f32 %v4503_v0, %v7905_v31 }
 0x841   : > { %4533 = vst [vmem:[%s8307_s15 + $0x58] sm:$0xff] %v4517_v50 }
 0x842   : > { %4537 = vst [vmem:[%s8307_s15 + $0x78] sm:$0xff] %v4521_v37 }
 0x843   : > { %4522 = vst [vmem:[%s8307_s15] sm:$0xff] %v4506_v33 }
 0x844   : > { %4526 = vst [vmem:[%s8307_s15 + $0x20] sm:$0xff] %v4510_v25 }
 0x845   : > { %4530 = vst [vmem:[%s8307_s15 + $0x40] sm:$0xff] %v4514_v6 }
 0x846   : > { %4534 = vst [vmem:[%s8307_s15 + $0x60] sm:$0xff] %v4518_v63 }
 0x847   : > { %4523 = vst [vmem:[%s8307_s15 + $0x8] sm:$0xff] %v4507_v40 }
 0x848   : > { %4527 = vst [vmem:[%s8307_s15 + $0x28] sm:$0xff] %v4511_v35 }
 0x849   : > { %4531 = vst [vmem:[%s8307_s15 + $0x48] sm:$0xff] %v4515_v59 }
 0x84a   : > { %4535 = vst [vmem:[%s8307_s15 + $0x68] sm:$0xff] %v4519_v30 }
 0x84b PF: > { %s25_s29 = sadd.s32 1, %s5202_s29  }
 0x84c   : > { %p22_p7 = scmp.ge.s32.totalorder %s25_s29, 4  }
 0x84e   :  { %24 = sbr.rel (!%p22_p7) target bundleno = 1 (0x1), region = 136 }
 0x853   :  { %4559 = vsyncpa [#allocation3], 1 }
 0x854   :  { %4561 = vsyncpa [#allocation3 + $0x1], 1 }

</bundles_post_ra>
